<compile_context>
chip_gen: v6e
topology: v6e:2x2x1
jax: 0.10.0
libtpu: 0.0.40
codegen_flags: <defaults>
</compile_context>

<pallas_src>
import math

import jax
import jax.numpy as jnp
from jax.experimental import pallas as pl
from jax.experimental.pallas import tpu as pltpu

LANES = 128
MAX_ROW_TILE = 4096          # rows per block; (4096,128) f32 = 2 MiB per input
SMALL_N_FALLBACK = 256 * 1024  # below this, a fused XLA reduce beats a launch
VMEM_LIMIT_BYTES = 32 * 1024 * 1024  # safe on v5e/v6e/v7x; >> our ~12 MiB need


def _cdiv(a: int, b: int) -> int:
    return (a + b - 1) // b


def _num_tensorcores_per_chip() -> int:
    """v7x has 2 TensorCores per chip; v5e/v6e have 1.  Conservative default 1."""
    try:
        kind = jax.devices()[0].device_kind.lower()
    except Exception:
        return 1
    return 2 if "v7" in kind else 1


_NUM_TC = _num_tensorcores_per_chip()


# ----------------------------------------------------------------------------
# Pallas kernel: sum of squared differences over full (row_tile, 128) blocks.
# Grid = (nsplit, inner): leading axis is "parallel" (megacore split on v7x),
# trailing axis is the sequential reduction.  Each j keeps an (8, 128) per-lane
# f32 partial-sum accumulator in VMEM (pure VPU adds per step, no per-step
# cross-lane XLU reduce) and writes it once at the last inner step; the tiny
# final cross-lane reduce happens in the JAX wrapper.
# ----------------------------------------------------------------------------
def _make_sq_diff_kernel(row_tile: int):
    def kernel(x_ref, y_ref, o_ref, acc_ref):
        i = pl.program_id(1)

        @pl.when(i == 0)
        def _():
            acc_ref[...] = jnp.zeros_like(acc_ref)

        d = x_ref[...].astype(jnp.float32) - y_ref[...].astype(jnp.float32)
        sq = d * d
        # Per-lane partial sums: the reshape keeps each (8,128) group on one
        # f32 vreg, so the axis-0 reduce is a plain chain of VPU adds.
        acc_ref[...] += jnp.sum(sq.reshape(row_tile // 8, 8, LANES), axis=0)

        @pl.when(i == pl.num_programs(1) - 1)
        def _():
            o_ref[...] = acc_ref[...].reshape(o_ref.shape)

    return kernel


def _sq_diff_sum(x: jax.Array, y: jax.Array) -> jax.Array:
    """Sum((x - y)^2) over all elements (f32 accumulation)."""
    assert x.shape == y.shape, (x.shape, y.shape)
    n = math.prod(x.shape) if x.shape else 1

    # dtype-aware sublane granularity: 8 (f32) / 16 (bf16) / 32 (int8/fp8).
    itemsize = min(jnp.dtype(x.dtype).itemsize, jnp.dtype(y.dtype).itemsize)
    sub = max(8, 32 // max(1, itemsize))

    rows_total = n // LANES
    lane_rem = n % LANES

    # Small-input fallback: launch/plumbing would dominate a streaming kernel.
    if n < SMALL_N_FALLBACK or rows_total < sub:
        d = x.astype(jnp.float32) - y.astype(jnp.float32)
        return jnp.sum(d * d)

    x_flat = jnp.ravel(x)
    y_flat = jnp.ravel(y)

    # Equal-sized blocks of at most MAX_ROW_TILE rows; make the block count
    # even on 2-TensorCore parts so the core split divides cleanly.
    num_blocks = max(1, _cdiv(rows_total, MAX_ROW_TILE))
    if _NUM_TC >= 2 and num_blocks > 1 and num_blocks % 2 == 1:
        num_blocks += 1
    row_tile = ((rows_total // num_blocks) // sub) * sub
    if row_tile == 0:  # defensive; should not trigger given the guards above
        d = x.astype(jnp.float32) - y.astype(jnp.float32)
        return jnp.sum(d * d)

    main_rows = num_blocks * row_tile
    main_elems = main_rows * LANES

    # 2-D slab for the kernel.  When n is lane-aligned this is a free reshape
    # of the full array (no copy) and the kernel simply never reads the rows
    # past main_rows.  Only when n % 128 != 0 does the prefix slice materialize
    # one copy per input.
    if lane_rem == 0:
        x2d = x_flat.reshape(rows_total, LANES)
        y2d = y_flat.reshape(rows_total, LANES)
    else:
        x2d = x_flat[: rows_total * LANES].reshape(rows_total, LANES)
        y2d = y_flat[: rows_total * LANES].reshape(rows_total, LANES)

    nsplit = 2 if (_NUM_TC >= 2 and num_blocks >= 2 and num_blocks % 2 == 0) else 1
    inner = num_blocks // nsplit

    in_bytes = jnp.dtype(x2d.dtype).itemsize + jnp.dtype(y2d.dtype).itemsize
    cost = pl.CostEstimate(
        flops=3 * main_elems,
        transcendentals=0,
        bytes_accessed=main_elems * in_bytes + nsplit * 8 * LANES * 4,
    )

    partial = pl.pallas_call(
        _make_sq_diff_kernel(row_tile),
        out_shape=jax.ShapeDtypeStruct((nsplit, 8, LANES), jnp.float32),
        grid_spec=pltpu.PrefetchScalarGridSpec(
            num_scalar_prefetch=0,
            grid=(nsplit, inner),
            in_specs=[
                pl.BlockSpec((row_tile, LANES), lambda j, i: (j * inner + i, 0)),
                pl.BlockSpec((row_tile, LANES), lambda j, i: (j * inner + i, 0)),
            ],
            out_specs=pl.BlockSpec((1, 8, LANES), lambda j, i: (j, 0, 0)),
            scratch_shapes=[pltpu.VMEM((8, LANES), jnp.float32)],
        ),
        compiler_params=pltpu.CompilerParams(
            # TODO(synk): on v7x verify the leading axis shards across both
            # TensorCores; if not, switch it to pltpu.CORE_PARALLEL.
            dimension_semantics=("parallel", "arbitrary"),
            vmem_limit_bytes=VMEM_LIMIT_BYTES,
        ),
        cost_estimate=cost,
    )(x2d, y2d)

    total = jnp.sum(partial)  # tiny final reduce of nsplit * (8,128) partials

    # Ragged tail: rows not covered by full blocks plus the sub-128 remainder.
    if main_elems < n:
        xt = x_flat[main_elems:].astype(jnp.float32)
        yt = y_flat[main_elems:].astype(jnp.float32)
        dt = xt - yt
        total = total + jnp.sum(dt * dt)
    return total


def mse_loss(x: jax.Array, y: jax.Array) -> jax.Array:
    """Equivalent of nn.MSELoss() (mean reduction)."""
    n = math.prod(x.shape) if x.shape else 1
    return _sq_diff_sum(x, y) / jnp.float32(n)


def none_loss(x: jax.Array, y: jax.Array) -> jax.Array:
    """Equivalent of NoneLoss: returns zeros(1)."""
    del x, y
    return jnp.zeros((1,), dtype=jnp.float32)


def build_loss(loss_name: str):
    if loss_name == "none":
        return none_loss
    elif loss_name == "mse":
        return mse_loss
    else:
        # TODO(synk): lpips/dists/watson_*/ssim/msssim/jnd/yuv/focal require
        # pretrained weights / external modules not defined in the reference.
        raise ValueError(f"Loss type {loss_name} not supported in Pallas port.")


class PerceptualLoss:
    """JAX port of videoseal PerceptualLoss (forward-pass semantics)."""

    def __init__(self, percep_loss: str):
        self.percep_loss = percep_loss
        self.perceptual_loss = self._create_perceptual_loss(percep_loss)

    def _create_perceptual_loss(self, percep_loss: str):
        parts = percep_loss.split("+")
        if len(parts) == 1:
            loss = parts[0]
            self.losses = {loss: build_loss(loss)}
            return self.losses[loss]
        self.losses = {}
        for part in parts:
            if "_" in part:
                _, loss_key = part.split("_")
            else:
                loss_key = part
            self.losses[loss_key] = build_loss(loss_key)

        def combined_loss(x, y):
            total_loss = jnp.float32(0.0)
            cached = {}  # dedupe identical loss keys -> the stream runs once
            for part in parts:
                if "_" in part:
                    weight, loss_key = part.split("_")
                else:
                    weight, loss_key = (1, part)
                weight = float(weight)
                if loss_key not in cached:
                    cached[loss_key] = jnp.mean(self.losses[loss_key](x, y))
                total_loss = total_loss + weight * cached[loss_key]
            return total_loss

        return combined_loss

    def __call__(self, imgs: jax.Array, imgs_w: jax.Array) -> jax.Array:
        return self.perceptual_loss(imgs, imgs_w)

    def __repr__(self):
        return f"PerceptualLoss(percep_loss={self.percep_loss})"


if __name__ == "__main__":
    key = jax.random.PRNGKey(0)
    k1, k2, k3, k4, k5, k6 = jax.random.split(key, 6)

    # layout: NCHW, matching the PyTorch reference (small shapes).
    imgs = jax.random.normal(k1, (2, 4, 16, 16), dtype=jnp.float32)
    imgs_w = imgs + 0.1 * jax.random.normal(k2, (2, 4, 16, 16), dtype=jnp.float32)

    # Single-loss path ("mse"); small shapes take the fused-XLA fallback.
    loss_mse = PerceptualLoss("mse")
    out_mse = jax.block_until_ready(loss_mse(imgs, imgs_w))

    # Combined weighted path, "mse+0.5_mse" -> 1.5 * mse (dedup: stream once).
    loss_comb = PerceptualLoss("mse+0.5_mse")
    out_comb = jax.block_until_ready(loss_comb(imgs, imgs_w))

    # "none" path.
    loss_none = PerceptualLoss("none")
    out_none = jax.block_until_ready(loss_none(imgs, imgs_w))

    ref_mse = jnp.mean((imgs - imgs_w) ** 2)
    assert jnp.allclose(out_mse, ref_mse, rtol=1e-5, atol=1e-6), (out_mse, ref_mse)
    assert jnp.allclose(out_comb, 1.5 * ref_mse, rtol=1e-5, atol=1e-6)
    assert jnp.allclose(out_none, jnp.zeros((1,)))

    # Lane-aligned large input -> Pallas streaming path (zero-copy reshape).
    a = jax.random.normal(k3, (2, 3, 256, 256), dtype=jnp.float32)
    b = a + 0.05 * jax.random.normal(k4, (2, 3, 256, 256), dtype=jnp.float32)
    out_big = jax.block_until_ready(loss_mse(a, b))
    ref_big = jnp.mean((a - b) ** 2)
    assert jnp.allclose(out_big, ref_big, rtol=1e-5, atol=1e-6), (out_big, ref_big)

    # Ragged large input -> multi-block grid + tiny jnp tail (no jnp.pad).
    c = jax.random.normal(k5, (2, 3, 300, 300), dtype=jnp.float32)
    d = c + 0.05 * jax.random.normal(k6, (2, 3, 300, 300), dtype=jnp.float32)
    out_rag = jax.block_until_ready(loss_mse(c, d))
    ref_rag = jnp.mean((c - d) ** 2)
    assert jnp.allclose(out_rag, ref_rag, rtol=1e-5, atol=1e-6), (out_rag, ref_rag)

    print("KERNEL_OK")
</pallas_src>

<mosaic_0001>
module attributes {stable_mosaic.version = 11 : i64} {
  func.func @kernel(%arg0: i32, %arg1: i32, %arg2: memref<3072x128xf32, #tpu.memory_space<vmem>>, %arg3: memref<3072x128xf32, #tpu.memory_space<vmem>>, %arg4: memref<1x8x128xf32, #tpu.memory_space<vmem>>, %arg5: memref<8x128xf32, #tpu.memory_space<vmem>>) attributes {dimension_semantics = [#tpu.dimension_semantics<parallel>, #tpu.dimension_semantics<arbitrary>], iteration_bounds = array<i64: 1, 1>, scalar_prefetch = 0 : i64, scratch_operands = 1 : i64, tpu.core_type = #tpu.core_type<tc>, window_params = [{transform_indices = @transform_0, window_bounds = array<i64: 3072, 128>}, {transform_indices = @transform_1, window_bounds = array<i64: 3072, 128>}, {transform_indices = @transform_2, window_bounds = array<i64: 1, 8, 128>}]} {
    %c0_i32 = arith.constant 0 : i32
    %0 = arith.cmpi eq, %arg1, %c0_i32 : i32
    %1 = arith.extui %0 : i1 to i32
    %c0_i32_0 = arith.constant 0 : i32
    %2 = arith.cmpi ne, %1, %c0_i32_0 : i32
    scf.if %2 {
      %cst_10 = arith.constant 0.000000e+00 : f32
      %15 = vector.broadcast %cst_10 : f32 to vector<8x128xf32>
      %c0_11 = arith.constant 0 : index
      %c0_12 = arith.constant 0 : index
      %16 = vector.load %arg5[%c0_11, %c0_12] : memref<8x128xf32, #tpu.memory_space<vmem>>, vector<8x128xf32>
      tpu.vector_store %arg5[%c0_11, %c0_12], %15 {strides = array<i32>} : memref<8x128xf32, #tpu.memory_space<vmem>>, vector<8x128xf32>,
    } else {
    }
    %c0 = arith.constant 0 : index
    %c0_1 = arith.constant 0 : index
    %3 = vector.load %arg2[%c0, %c0_1] : memref<3072x128xf32, #tpu.memory_space<vmem>>, vector<3072x128xf32>
    %c0_2 = arith.constant 0 : index
    %c0_3 = arith.constant 0 : index
    %4 = vector.load %arg3[%c0_2, %c0_3] : memref<3072x128xf32, #tpu.memory_space<vmem>>, vector<3072x128xf32>
    %5 = arith.subf %3, %4 : vector<3072x128xf32>
    %6 = arith.mulf %5, %5 : vector<3072x128xf32>
    %c0_4 = arith.constant 0 : index
    %c0_5 = arith.constant 0 : index
    %7 = vector.load %arg5[%c0_4, %c0_5] : memref<8x128xf32, #tpu.memory_space<vmem>>, vector<8x128xf32>
    %8 = vector.shape_cast %6 : vector<3072x128xf32> to vector<384x8x128xf32>
    %cst = arith.constant dense<0.000000e+00> : vector<8x128xf32>
    %9 = vector.multi_reduction <add>, %8, %cst [0] : vector<384x8x128xf32> to vector<8x128xf32>
    %10 = arith.addf %7, %9 : vector<8x128xf32>
    %c0_6 = arith.constant 0 : index
    %c0_7 = arith.constant 0 : index
    %11 = vector.load %arg5[%c0_6, %c0_7] : memref<8x128xf32, #tpu.memory_space<vmem>>, vector<8x128xf32>
    tpu.vector_store %arg5[%c0_6, %c0_7], %10 {strides = array<i32>} : memref<8x128xf32, #tpu.memory_space<vmem>>, vector<8x128xf32>,
    %c0_i32_8 = arith.constant 0 : i32
    %12 = arith.cmpi eq, %arg1, %c0_i32_8 : i32
    %13 = arith.extui %12 : i1 to i32
    %c0_i32_9 = arith.constant 0 : i32
    %14 = arith.cmpi ne, %13, %c0_i32_9 : i32
    scf.if %14 {
      %c0_10 = arith.constant 0 : index
      %c0_11 = arith.constant 0 : index
      %15 = vector.load %arg5[%c0_10, %c0_11] : memref<8x128xf32, #tpu.memory_space<vmem>>, vector<8x128xf32>
      %16 = vector.shape_cast %15 : vector<8x128xf32> to vector<1x8x128xf32>
      %c0_12 = arith.constant 0 : index
      %c0_13 = arith.constant 0 : index
      %c0_14 = arith.constant 0 : index
      %17 = vector.load %arg4[%c0_12, %c0_13, %c0_14] : memref<1x8x128xf32, #tpu.memory_space<vmem>>, vector<1x8x128xf32>
      tpu.vector_store %arg4[%c0_12, %c0_13, %c0_14], %16 {strides = array<i32>} : memref<1x8x128xf32, #tpu.memory_space<vmem>>, vector<1x8x128xf32>,
    } else {
    }
    return
  }
  func.func @transform_0(%arg0: i32, %arg1: i32) -> (i32, i32) {
    %c1_i32 = arith.constant 1 : i32
    %0 = arith.muli %arg0, %c1_i32 : i32
    %1 = arith.addi %0, %arg1 : i32
    %c0_i32 = arith.constant 0 : i32
    %c0_i32_0 = arith.constant 0 : i32
    return %1, %c0_i32 : i32, i32
  }
  func.func @transform_1(%arg0: i32, %arg1: i32) -> (i32, i32) {
    %c1_i32 = arith.constant 1 : i32
    %0 = arith.muli %arg0, %c1_i32 : i32
    %1 = arith.addi %0, %arg1 : i32
    %c0_i32 = arith.constant 0 : i32
    %c0_i32_0 = arith.constant 0 : i32
    return %1, %c0_i32 : i32, i32
  }
  func.func @transform_2(%arg0: i32, %arg1: i32) -> (i32, i32, i32) {
    %c0_i32 = arith.constant 0 : i32
    %c0_i32_0 = arith.constant 0 : i32
    %c0_i32_1 = arith.constant 0 : i32
    return %arg0, %c0_i32, %c0_i32_0 : i32, i32, i32
  }
}

</mosaic_0001>

<bundles_post_ra>
// kernel: tpu_custom_call.1
= control target key start
LH: loop header
LB: loop body
LE: loop exit
PB: predicated region body
PF: predicated region fallthrough
CT: control target
= control target key end

     0   :  { %7 = vsyncpa [#allocation4], 0  ;;  %s2100_s0 = inlined_call_operand.hbm [shape: f32[3072,128], index: 0, kind: input, shape index: {}]   ;;  %s2101_s1 = inlined_call_operand.hbm [shape: f32[3072,128], index: 1, kind: input, shape index: {}]   ;;  %s2102_s2 = inlined_call_operand.hbm [shape: f32[1,8,128], index: 2, kind: output, shape index: {}]  }
   0x1   :  { %8 = vsyncpa [#allocation7], 0 }
   0x2   :  { %9 = vsyncpa [#allocation5], 0  ;;  %s2071_s9 = smov [#allocation3]  }
   0x3   :  { %s19_s10 = sshll.u32 %s2071_s9, 4  ;;  %s20_s10 = int_to_ptr.vmem [resolvable:$true] %s19_s10 }
   0x4   :  { %s2013_s11 = scalar_lea.vmem %s20_s10, 49152  ;;  %p2018_p1 = scmp.lt.s32.totalorder %s20_s10, %s20_s10 }
   0x5   :  { %p2014_p0 = scmp.ne.s32.totalorder %s20_s10, %s2013_s11  ;;  %p2019_p2 = scmp.lt.s32.totalorder %s2013_s11, %s2013_s11 }
   0x7   :  { %p2020_p3 = por %p2019_p2, %p2018_p1 }
   0x9   :  { %p2021_p4 = pnand %p2020_p3, %p2014_p0 }
   0xb   :  { %2024 = shalt.err (!%p2021_p4)
}
   0xc   :  { %s2072_s12 = smov 128   ;;  %s2073_s13 = smov 8  }
   0xd   :  { %25 = dma.hbm_to_vmem [thread:$0]  %s2100_s0, 49152, %s20_s10, [#allocation4], %s2072_s12, %s2072_s12, %s2073_s13  }
   0xe   :  { %s2074_s16 = smov [#allocation6]  }
   0xf   :  { %s35_s17 = sshll.u32 %s2074_s16, 4  ;;  %s36_s17 = int_to_ptr.vmem [resolvable:$true] %s35_s17 }
  0x10   :  { %s2033_s18 = scalar_lea.vmem %s36_s17, 49152  ;;  %p2038_p6 = scmp.lt.s32.totalorder %s36_s17, %s36_s17 }
  0x11   :  { %p2034_p5 = scmp.ne.s32.totalorder %s36_s17, %s2033_s18  ;;  %p2039_p7 = scmp.lt.s32.totalorder %s2033_s18, %s2033_s18 }
  0x13   :  { %p2040_p8 = por %p2039_p7, %p2038_p6 }
  0x15   :  { %p2041_p9 = pnand %p2040_p8, %p2034_p5 }
  0x17   :  { %2044 = shalt.err (!%p2041_p9)
}
  0x18   :  { %41 = dma.hbm_to_vmem [thread:$0]  %s2101_s1, 49152, %s36_s17, [#allocation7], %s2072_s12, %s2072_s12, %s2073_s13  }
  0x19   :  { %2065 = dma.done.wait [#allocation4], 49152  }
  0x1a   :  { %2066 = vsyncadd [#allocation4], 4294918144 }
  0x1b   :  { %2067 = dma.done.wait [#allocation7], 49152  }
  0x1c   :  { %2068 = vsyncadd [#allocation7], 4294918144  ;;  %v57_v0 = vld [vmem:[#allocation3] sm:$0xff]  ;;  %v58_v1 = vld [vmem:[#allocation3 + $0x8] sm:$0xff]  ;;  %s2075_s0 = smov [#allocation8]  }
  0x1d   :  { %v441_v2 = vld [vmem:[#allocation6] sm:$0xff]  ;;  %v442_v3 = vld [vmem:[#allocation6 + $0x8] sm:$0xff]  ;;  %v59_v4 = vld [vmem:[#allocation3 + $0x10] sm:$0xff]  ;;  %s1990_s1 = sshll.u32 %s2075_s0, 4  ;;  %s1991_s1 = int_to_ptr.vmem [resolvable:$true] %s1990_s1 }
  0x1e   :  { %v443_v5 = vld [vmem:[#allocation6 + $0x10] sm:$0xff]  ;;  %v825_v6 = vsub.f32 %v57_v0, %v441_v2  ;;  %v826_v7 = vsub.f32 %v58_v1, %v442_v3  ;;  %v60_v8 = vld [vmem:[#allocation3 + $0x18] sm:$0xff]  ;;  %v61_v11 = vld [vmem:[#allocation3 + $0x20] sm:$0xff]  ;;  %s2045_s21 = scalar_lea.vmem %s1991_s1, 128  ;;  %p2050_p11 = scmp.lt.s32.totalorder %s1991_s1, %s1991_s1 }
  0x1f   :  { %v444_v9 = vld [vmem:[#allocation6 + $0x18] sm:$0xff]  ;;  %v827_v10 = vsub.f32 %v59_v4, %v443_v5  ;;  %v445_v12 = vld [vmem:[#allocation6 + $0x20] sm:$0xff]  ;;  %v62_v16 = vld [vmem:[#allocation3 + $0x28] sm:$0xff]  ;;  %p2046_p10 = scmp.ne.s32.totalorder %s1991_s1, %s2045_s21  ;;  %p2051_p12 = scmp.lt.s32.totalorder %s2045_s21, %s2045_s21 }
  0x20   :  { %v828_v13 = vsub.f32 %v60_v8, %v444_v9  ;;  %v1209_v14 = vmul.f32 %v825_v6, %v825_v6  ;;  %v1210_v15 = vmul.f32 %v826_v7, %v826_v7  ;;  %v446_v17 = vld [vmem:[#allocation6 + $0x28] sm:$0xff]  ;;  %v829_v18 = vsub.f32 %v61_v11, %v445_v12  ;;  %v63_v20 = vld [vmem:[#allocation3 + $0x30] sm:$0xff]  ;;  %v64_v25 = vld [vmem:[#allocation3 + $0x38] sm:$0xff] }
  0x21   :  { %v1211_v19 = vmul.f32 %v827_v10, %v827_v10  ;;  %v447_v21 = vld [vmem:[#allocation6 + $0x30] sm:$0xff]  ;;  %v830_v22 = vsub.f32 %v62_v16, %v446_v17  ;;  %v448_v26 = vld [vmem:[#allocation6 + $0x38] sm:$0xff]  ;;  %v65_v30 = vld [vmem:[#allocation3 + $0x40] sm:$0xff]  ;;  %p2052_p13 = por %p2051_p12, %p2050_p11 }
  0x22   :  { %v1212_v23 = vmul.f32 %v828_v13, %v828_v13  ;;  %v1594_v24 = vadd.f32 %v1210_v15, %v1209_v14  ;;  %v831_v27 = vsub.f32 %v63_v20, %v447_v21  ;;  %v1213_v28 = vmul.f32 %v829_v18, %v829_v18  ;;  %v449_v31 = vld [vmem:[#allocation6 + $0x40] sm:$0xff]  ;;  %v66_v35 = vld [vmem:[#allocation3 + $0x48] sm:$0xff]  ;;  %v67_v40 = vld [vmem:[#allocation3 + $0x50] sm:$0xff] }
  0x23   :  { %v832_v32 = vsub.f32 %v64_v25, %v448_v26  ;;  %v1214_v33 = vmul.f32 %v830_v22, %v830_v22  ;;  %v450_v36 = vld [vmem:[#allocation6 + $0x48] sm:$0xff]  ;;  %v833_v37 = vsub.f32 %v65_v30, %v449_v31  ;;  %v451_v41 = vld [vmem:[#allocation6 + $0x50] sm:$0xff]  ;;  %v68_v45 = vld [vmem:[#allocation3 + $0x58] sm:$0xff]  ;;  %p2053_p0 = pnand %p2052_p13, %p2046_p10 }
  0x24   :  { %v1595_v29 = vadd.f32 %v1594_v24, %v1211_v19  ;;  %v1215_v38 = vmul.f32 %v831_v27, %v831_v27  ;;  %v834_v42 = vsub.f32 %v66_v35, %v450_v36  ;;  %v452_v46 = vld [vmem:[#allocation6 + $0x58] sm:$0xff]  ;;  %v835_v47 = vsub.f32 %v67_v40, %v451_v41  ;;  %v69_v50 = vld [vmem:[#allocation3 + $0x60] sm:$0xff]  ;;  %v70_v55 = vld [vmem:[#allocation3 + $0x68] sm:$0xff] }
  0x25   :  { %v1216_v43 = vmul.f32 %v832_v32, %v832_v32  ;;  %v1217_v48 = vmul.f32 %v833_v37, %v833_v37  ;;  %v453_v51 = vld [vmem:[#allocation6 + $0x60] sm:$0xff]  ;;  %v836_v52 = vsub.f32 %v68_v45, %v452_v46  ;;  %v454_v56 = vld [vmem:[#allocation6 + $0x68] sm:$0xff]  ;;  %v71_v60 = vld [vmem:[#allocation3 + $0x70] sm:$0xff] }
  0x26   :  { %v1596_v34 = vadd.f32 %v1595_v29, %v1212_v23  ;;  %v1218_v53 = vmul.f32 %v834_v42, %v834_v42  ;;  %v837_v57 = vsub.f32 %v69_v50, %v453_v51  ;;  %v1219_v58 = vmul.f32 %v835_v47, %v835_v47  ;;  %v455_v61 = vld [vmem:[#allocation6 + $0x70] sm:$0xff]  ;;  %v72_v1 = vld [vmem:[#allocation3 + $0x78] sm:$0xff]  ;;  %v73_v6 = vld [vmem:[#allocation3 + $0x80] sm:$0xff] }
  0x27   :  { %v838_v62 = vsub.f32 %v70_v55, %v454_v56  ;;  %v1220_v63 = vmul.f32 %v836_v52, %v836_v52  ;;  %v456_v2 = vld [vmem:[#allocation6 + $0x78] sm:$0xff]  ;;  %v839_v3 = vsub.f32 %v71_v60, %v455_v61  ;;  %v457_v7 = vld [vmem:[#allocation6 + $0x80] sm:$0xff]  ;;  %v74_v11 = vld [vmem:[#allocation3 + $0x88] sm:$0xff] }
  0x28   :  { %v1597_v39 = vadd.f32 %v1596_v34, %v1213_v28  ;;  %v1221_v4 = vmul.f32 %v837_v57, %v837_v57  ;;  %v840_v8 = vsub.f32 %v72_v1, %v456_v2  ;;  %v458_v12 = vld [vmem:[#allocation6 + $0x88] sm:$0xff]  ;;  %v841_v13 = vsub.f32 %v73_v6, %v457_v7  ;;  %v75_v16 = vld [vmem:[#allocation3 + $0x90] sm:$0xff]  ;;  %v76_v21 = vld [vmem:[#allocation3 + $0x98] sm:$0xff] }
  0x29   :  { %v1222_v9 = vmul.f32 %v838_v62, %v838_v62  ;;  %v1223_v14 = vmul.f32 %v839_v3, %v839_v3  ;;  %v459_v17 = vld [vmem:[#allocation6 + $0x90] sm:$0xff]  ;;  %v842_v18 = vsub.f32 %v74_v11, %v458_v12  ;;  %v460_v22 = vld [vmem:[#allocation6 + $0x98] sm:$0xff]  ;;  %v77_v26 = vld [vmem:[#allocation3 + $0xa0] sm:$0xff] }
  0x2a   :  { %v1598_v44 = vadd.f32 %v1597_v39, %v1214_v33  ;;  %v1224_v19 = vmul.f32 %v840_v8, %v840_v8  ;;  %v843_v23 = vsub.f32 %v75_v16, %v459_v17  ;;  %v1225_v24 = vmul.f32 %v841_v13, %v841_v13  ;;  %v461_v27 = vld [vmem:[#allocation6 + $0xa0] sm:$0xff]  ;;  %v78_v31 = vld [vmem:[#allocation3 + $0xa8] sm:$0xff]  ;;  %v79_v36 = vld [vmem:[#allocation3 + $0xb0] sm:$0xff] }
  0x2b   :  { %v844_v28 = vsub.f32 %v76_v21, %v460_v22  ;;  %v1226_v29 = vmul.f32 %v842_v18, %v842_v18  ;;  %v462_v32 = vld [vmem:[#allocation6 + $0xa8] sm:$0xff]  ;;  %v845_v33 = vsub.f32 %v77_v26, %v461_v27  ;;  %v463_v37 = vld [vmem:[#allocation6 + $0xb0] sm:$0xff]  ;;  %v80_v41 = vld [vmem:[#allocation3 + $0xb8] sm:$0xff] }
  0x2c   :  { %v1599_v49 = vadd.f32 %v1598_v44, %v1215_v38  ;;  %v1227_v34 = vmul.f32 %v843_v23, %v843_v23  ;;  %v846_v38 = vsub.f32 %v78_v31, %v462_v32  ;;  %v464_v42 = vld [vmem:[#allocation6 + $0xb8] sm:$0xff]  ;;  %v81_v46 = vld [vmem:[#allocation3 + $0xc0] sm:$0xff]  ;;  %v82_v51 = vld [vmem:[#allocation3 + $0xc8] sm:$0xff] }
  0x2d   :  { %v1228_v39 = vmul.f32 %v844_v28, %v844_v28  ;;  %v1229_v44 = vmul.f32 %v845_v33, %v845_v33  ;;  %v465_v47 = vld [vmem:[#allocation6 + $0xc0] sm:$0xff]  ;;  %v466_v52 = vld [vmem:[#allocation6 + $0xc8] sm:$0xff]  ;;  %v83_v56 = vld [vmem:[#allocation3 + $0xd0] sm:$0xff] }
  0x2e   :  { %v1600_v54 = vadd.f32 %v1599_v49, %v1216_v43  ;;  %v847_v43 = vsub.f32 %v79_v36, %v463_v37  ;;  %v1230_v49 = vmul.f32 %v846_v38, %v846_v38  ;;  %v467_v57 = vld [vmem:[#allocation6 + $0xd0] sm:$0xff]  ;;  %v84_v61 = vld [vmem:[#allocation3 + $0xd8] sm:$0xff]  ;;  %v85_v2 = vld [vmem:[#allocation3 + $0xe0] sm:$0xff] }
  0x2f   :  { %v468_v62 = vld [vmem:[#allocation6 + $0xd8] sm:$0xff]  ;;  %v469_v3 = vld [vmem:[#allocation6 + $0xe0] sm:$0xff]  ;;  %v86_v7 = vld [vmem:[#allocation3 + $0xe8] sm:$0xff] }
  0x30   :  { %v1601_v59 = vadd.f32 %v1600_v54, %v1217_v48  ;;  %v848_v48 = vsub.f32 %v80_v41, %v464_v42  ;;  %v1231_v54 = vmul.f32 %v847_v43, %v847_v43  ;;  %v470_v8 = vld [vmem:[#allocation6 + $0xe8] sm:$0xff]  ;;  %v87_v12 = vld [vmem:[#allocation3 + $0xf0] sm:$0xff]  ;;  %v88_v17 = vld [vmem:[#allocation3 + $0xf8] sm:$0xff] }
  0x31   :  { %v471_v13 = vld [vmem:[#allocation6 + $0xf0] sm:$0xff]  ;;  %v472_v18 = vld [vmem:[#allocation6 + $0xf8] sm:$0xff]  ;;  %v89_v22 = vld [vmem:[#allocation3 + $0x100] sm:$0xff] }
  0x32   :  { %v1602_v0 = vadd.f32 %v1601_v59, %v1218_v53  ;;  %v849_v53 = vsub.f32 %v81_v46, %v465_v47  ;;  %v1232_v59 = vmul.f32 %v848_v48, %v848_v48  ;;  %v473_v23 = vld [vmem:[#allocation6 + $0x100] sm:$0xff]  ;;  %v90_v27 = vld [vmem:[#allocation3 + $0x108] sm:$0xff]  ;;  %v91_v32 = vld [vmem:[#allocation3 + $0x110] sm:$0xff] }
  0x33   :  { %v474_v28 = vld [vmem:[#allocation6 + $0x108] sm:$0xff]  ;;  %v475_v33 = vld [vmem:[#allocation6 + $0x110] sm:$0xff]  ;;  %v92_v37 = vld [vmem:[#allocation3 + $0x118] sm:$0xff] }
  0x34   :  { %v1603_v5 = vadd.f32 %v1602_v0, %v1219_v58  ;;  %v850_v58 = vsub.f32 %v82_v51, %v466_v52  ;;  %v1233_v0 = vmul.f32 %v849_v53, %v849_v53  ;;  %v476_v38 = vld [vmem:[#allocation6 + $0x118] sm:$0xff]  ;;  %v93_v42 = vld [vmem:[#allocation3 + $0x120] sm:$0xff]  ;;  %v94_v47 = vld [vmem:[#allocation3 + $0x128] sm:$0xff] }
  0x35   :  { %v477_v43 = vld [vmem:[#allocation6 + $0x120] sm:$0xff]  ;;  %v478_v48 = vld [vmem:[#allocation6 + $0x128] sm:$0xff]  ;;  %v95_v52 = vld [vmem:[#allocation3 + $0x130] sm:$0xff] }
  0x36   :  { %v1604_v10 = vadd.f32 %v1603_v5, %v1220_v63  ;;  %v851_v63 = vsub.f32 %v83_v56, %v467_v57  ;;  %v1234_v5 = vmul.f32 %v850_v58, %v850_v58  ;;  %v479_v53 = vld [vmem:[#allocation6 + $0x130] sm:$0xff]  ;;  %v96_v57 = vld [vmem:[#allocation3 + $0x138] sm:$0xff] }
  0x37   :  { %v480_v58 = vld [vmem:[#allocation6 + $0x138] sm:$0xff] }
  0x38   :  { %v1605_v15 = vadd.f32 %v1604_v10, %v1221_v4  ;;  %v852_v4 = vsub.f32 %v84_v61, %v468_v62  ;;  %v1235_v10 = vmul.f32 %v851_v63, %v851_v63  ;;  %v97_v62 = vld [vmem:[#allocation3 + $0x140] sm:$0xff] }
  0x39   :  { %v481_v63 = vld [vmem:[#allocation6 + $0x140] sm:$0xff] }
  0x3a   :  { %v1606_v20 = vadd.f32 %v1605_v15, %v1222_v9  ;;  %v853_v9 = vsub.f32 %v85_v2, %v469_v3  ;;  %v1236_v15 = vmul.f32 %v852_v4, %v852_v4  ;;  %v98_v3 = vld [vmem:[#allocation3 + $0x148] sm:$0xff] }
  0x3b   :  { %v482_v4 = vld [vmem:[#allocation6 + $0x148] sm:$0xff] }
  0x3c   :  { %v1607_v25 = vadd.f32 %v1606_v20, %v1223_v14  ;;  %v854_v14 = vsub.f32 %v86_v7, %v470_v8  ;;  %v1237_v20 = vmul.f32 %v853_v9, %v853_v9  ;;  %v99_v8 = vld [vmem:[#allocation3 + $0x150] sm:$0xff] }
  0x3d   :  { %v483_v9 = vld [vmem:[#allocation6 + $0x150] sm:$0xff] }
  0x3e   :  { %v1608_v30 = vadd.f32 %v1607_v25, %v1224_v19  ;;  %v855_v19 = vsub.f32 %v87_v12, %v471_v13  ;;  %v1238_v25 = vmul.f32 %v854_v14, %v854_v14  ;;  %v100_v13 = vld [vmem:[#allocation3 + $0x158] sm:$0xff] }
  0x3f   :  { %v484_v14 = vld [vmem:[#allocation6 + $0x158] sm:$0xff] }
  0x40   :  { %v1609_v35 = vadd.f32 %v1608_v30, %v1225_v24  ;;  %v856_v24 = vsub.f32 %v88_v17, %v472_v18  ;;  %v1239_v30 = vmul.f32 %v855_v19, %v855_v19  ;;  %v101_v18 = vld [vmem:[#allocation3 + $0x160] sm:$0xff] }
  0x41   :  { %v485_v19 = vld [vmem:[#allocation6 + $0x160] sm:$0xff] }
  0x42   :  { %v1610_v40 = vadd.f32 %v1609_v35, %v1226_v29  ;;  %v857_v29 = vsub.f32 %v89_v22, %v473_v23  ;;  %v1240_v35 = vmul.f32 %v856_v24, %v856_v24  ;;  %v102_v23 = vld [vmem:[#allocation3 + $0x168] sm:$0xff] }
  0x43   :  { %v486_v24 = vld [vmem:[#allocation6 + $0x168] sm:$0xff] }
  0x44   :  { %v1611_v45 = vadd.f32 %v1610_v40, %v1227_v34  ;;  %v858_v34 = vsub.f32 %v90_v27, %v474_v28  ;;  %v1241_v40 = vmul.f32 %v857_v29, %v857_v29  ;;  %v103_v28 = vld [vmem:[#allocation3 + $0x170] sm:$0xff] }
  0x45   :  { %v487_v29 = vld [vmem:[#allocation6 + $0x170] sm:$0xff] }
  0x46   :  { %v1612_v50 = vadd.f32 %v1611_v45, %v1228_v39  ;;  %v859_v39 = vsub.f32 %v91_v32, %v475_v33  ;;  %v1242_v45 = vmul.f32 %v858_v34, %v858_v34  ;;  %v104_v33 = vld [vmem:[#allocation3 + $0x178] sm:$0xff] }
  0x47   :  { %v488_v34 = vld [vmem:[#allocation6 + $0x178] sm:$0xff] }
  0x48   :  { %v1613_v55 = vadd.f32 %v1612_v50, %v1229_v44  ;;  %v860_v44 = vsub.f32 %v92_v37, %v476_v38  ;;  %v1243_v50 = vmul.f32 %v859_v39, %v859_v39  ;;  %v105_v38 = vld [vmem:[#allocation3 + $0x180] sm:$0xff] }
  0x49   :  { %v489_v39 = vld [vmem:[#allocation6 + $0x180] sm:$0xff] }
  0x4a   :  { %v1614_v60 = vadd.f32 %v1613_v55, %v1230_v49  ;;  %v861_v49 = vsub.f32 %v93_v42, %v477_v43  ;;  %v1244_v55 = vmul.f32 %v860_v44, %v860_v44  ;;  %v106_v43 = vld [vmem:[#allocation3 + $0x188] sm:$0xff] }
  0x4b   :  { %v490_v44 = vld [vmem:[#allocation6 + $0x188] sm:$0xff] }
  0x4c   :  { %v1615_v1 = vadd.f32 %v1614_v60, %v1231_v54  ;;  %v862_v54 = vsub.f32 %v94_v47, %v478_v48  ;;  %v1245_v60 = vmul.f32 %v861_v49, %v861_v49  ;;  %v107_v48 = vld [vmem:[#allocation3 + $0x190] sm:$0xff] }
  0x4d   :  { %v491_v49 = vld [vmem:[#allocation6 + $0x190] sm:$0xff] }
  0x4e   :  { %v1616_v6 = vadd.f32 %v1615_v1, %v1232_v59  ;;  %v863_v59 = vsub.f32 %v95_v52, %v479_v53  ;;  %v1246_v1 = vmul.f32 %v862_v54, %v862_v54  ;;  %v108_v53 = vld [vmem:[#allocation3 + $0x198] sm:$0xff] }
  0x4f   :  { %v492_v54 = vld [vmem:[#allocation6 + $0x198] sm:$0xff] }
  0x50   :  { %v1617_v11 = vadd.f32 %v1616_v6, %v1233_v0  ;;  %v864_v0 = vsub.f32 %v96_v57, %v480_v58  ;;  %v1247_v6 = vmul.f32 %v863_v59, %v863_v59  ;;  %v109_v58 = vld [vmem:[#allocation3 + $0x1a0] sm:$0xff] }
  0x51   :  { %v493_v59 = vld [vmem:[#allocation6 + $0x1a0] sm:$0xff] }
  0x52   :  { %v1618_v16 = vadd.f32 %v1617_v11, %v1234_v5  ;;  %v865_v5 = vsub.f32 %v97_v62, %v481_v63  ;;  %v1248_v11 = vmul.f32 %v864_v0, %v864_v0  ;;  %v110_v63 = vld [vmem:[#allocation3 + $0x1a8] sm:$0xff] }
  0x53   :  { %v494_v0 = vld [vmem:[#allocation6 + $0x1a8] sm:$0xff] }
  0x54   :  { %v1619_v21 = vadd.f32 %v1618_v16, %v1235_v10  ;;  %v866_v10 = vsub.f32 %v98_v3, %v482_v4  ;;  %v1249_v16 = vmul.f32 %v865_v5, %v865_v5  ;;  %v111_v4 = vld [vmem:[#allocation3 + $0x1b0] sm:$0xff] }
  0x55   :  { %v495_v5 = vld [vmem:[#allocation6 + $0x1b0] sm:$0xff] }
  0x56   :  { %v1620_v26 = vadd.f32 %v1619_v21, %v1236_v15  ;;  %v867_v15 = vsub.f32 %v99_v8, %v483_v9  ;;  %v1250_v21 = vmul.f32 %v866_v10, %v866_v10  ;;  %v112_v9 = vld [vmem:[#allocation3 + $0x1b8] sm:$0xff] }
  0x57   :  { %v496_v10 = vld [vmem:[#allocation6 + $0x1b8] sm:$0xff] }
  0x58   :  { %v1621_v31 = vadd.f32 %v1620_v26, %v1237_v20  ;;  %v868_v20 = vsub.f32 %v100_v13, %v484_v14  ;;  %v1251_v26 = vmul.f32 %v867_v15, %v867_v15  ;;  %v113_v14 = vld [vmem:[#allocation3 + $0x1c0] sm:$0xff] }
  0x59   :  { %v497_v15 = vld [vmem:[#allocation6 + $0x1c0] sm:$0xff] }
  0x5a   :  { %v1622_v36 = vadd.f32 %v1621_v31, %v1238_v25  ;;  %v869_v25 = vsub.f32 %v101_v18, %v485_v19  ;;  %v1252_v31 = vmul.f32 %v868_v20, %v868_v20  ;;  %v114_v19 = vld [vmem:[#allocation3 + $0x1c8] sm:$0xff] }
  0x5b   :  { %v498_v20 = vld [vmem:[#allocation6 + $0x1c8] sm:$0xff] }
  0x5c   :  { %v1623_v41 = vadd.f32 %v1622_v36, %v1239_v30  ;;  %v870_v30 = vsub.f32 %v102_v23, %v486_v24  ;;  %v1253_v36 = vmul.f32 %v869_v25, %v869_v25  ;;  %v115_v24 = vld [vmem:[#allocation3 + $0x1d0] sm:$0xff] }
  0x5d   :  { %v499_v25 = vld [vmem:[#allocation6 + $0x1d0] sm:$0xff] }
  0x5e   :  { %v1624_v46 = vadd.f32 %v1623_v41, %v1240_v35  ;;  %v871_v35 = vsub.f32 %v103_v28, %v487_v29  ;;  %v1254_v41 = vmul.f32 %v870_v30, %v870_v30  ;;  %v116_v29 = vld [vmem:[#allocation3 + $0x1d8] sm:$0xff] }
  0x5f   :  { %v500_v30 = vld [vmem:[#allocation6 + $0x1d8] sm:$0xff] }
  0x60   :  { %v1625_v51 = vadd.f32 %v1624_v46, %v1241_v40  ;;  %v872_v40 = vsub.f32 %v104_v33, %v488_v34  ;;  %v1255_v46 = vmul.f32 %v871_v35, %v871_v35  ;;  %v117_v34 = vld [vmem:[#allocation3 + $0x1e0] sm:$0xff] }
  0x61   :  { %v501_v35 = vld [vmem:[#allocation6 + $0x1e0] sm:$0xff] }
  0x62   :  { %v1626_v56 = vadd.f32 %v1625_v51, %v1242_v45  ;;  %v873_v45 = vsub.f32 %v105_v38, %v489_v39  ;;  %v1256_v51 = vmul.f32 %v872_v40, %v872_v40  ;;  %v118_v39 = vld [vmem:[#allocation3 + $0x1e8] sm:$0xff] }
  0x63   :  { %v502_v40 = vld [vmem:[#allocation6 + $0x1e8] sm:$0xff] }
  0x64   :  { %v1627_v61 = vadd.f32 %v1626_v56, %v1243_v50  ;;  %v874_v50 = vsub.f32 %v106_v43, %v490_v44  ;;  %v1257_v56 = vmul.f32 %v873_v45, %v873_v45  ;;  %v119_v44 = vld [vmem:[#allocation3 + $0x1f0] sm:$0xff] }
  0x65   :  { %v503_v45 = vld [vmem:[#allocation6 + $0x1f0] sm:$0xff] }
  0x66   :  { %v1628_v2 = vadd.f32 %v1627_v61, %v1244_v55  ;;  %v875_v55 = vsub.f32 %v107_v48, %v491_v49  ;;  %v1258_v61 = vmul.f32 %v874_v50, %v874_v50  ;;  %v120_v49 = vld [vmem:[#allocation3 + $0x1f8] sm:$0xff] }
  0x67   :  { %v504_v50 = vld [vmem:[#allocation6 + $0x1f8] sm:$0xff] }
  0x68   :  { %v1629_v7 = vadd.f32 %v1628_v2, %v1245_v60  ;;  %v876_v60 = vsub.f32 %v108_v53, %v492_v54  ;;  %v1259_v2 = vmul.f32 %v875_v55, %v875_v55  ;;  %v121_v54 = vld [vmem:[#allocation3 + $0x200] sm:$0xff] }
  0x69   :  { %v505_v55 = vld [vmem:[#allocation6 + $0x200] sm:$0xff] }
  0x6a   :  { %v1630_v12 = vadd.f32 %v1629_v7, %v1246_v1  ;;  %v877_v1 = vsub.f32 %v109_v58, %v493_v59  ;;  %v1260_v7 = vmul.f32 %v876_v60, %v876_v60  ;;  %v122_v59 = vld [vmem:[#allocation3 + $0x208] sm:$0xff] }
  0x6b   :  { %v506_v60 = vld [vmem:[#allocation6 + $0x208] sm:$0xff] }
  0x6c   :  { %v1631_v17 = vadd.f32 %v1630_v12, %v1247_v6  ;;  %v878_v6 = vsub.f32 %v110_v63, %v494_v0  ;;  %v1261_v12 = vmul.f32 %v877_v1, %v877_v1  ;;  %v123_v0 = vld [vmem:[#allocation3 + $0x210] sm:$0xff] }
  0x6d   :  { %v507_v1 = vld [vmem:[#allocation6 + $0x210] sm:$0xff] }
  0x6e   :  { %v1632_v22 = vadd.f32 %v1631_v17, %v1248_v11  ;;  %v879_v11 = vsub.f32 %v111_v4, %v495_v5  ;;  %v1262_v17 = vmul.f32 %v878_v6, %v878_v6  ;;  %v124_v5 = vld [vmem:[#allocation3 + $0x218] sm:$0xff] }
  0x6f   :  { %v508_v6 = vld [vmem:[#allocation6 + $0x218] sm:$0xff] }
  0x70   :  { %v1633_v27 = vadd.f32 %v1632_v22, %v1249_v16  ;;  %v880_v16 = vsub.f32 %v112_v9, %v496_v10  ;;  %v1263_v22 = vmul.f32 %v879_v11, %v879_v11  ;;  %v125_v10 = vld [vmem:[#allocation3 + $0x220] sm:$0xff] }
  0x71   :  { %v509_v11 = vld [vmem:[#allocation6 + $0x220] sm:$0xff] }
  0x72   :  { %v1634_v32 = vadd.f32 %v1633_v27, %v1250_v21  ;;  %v881_v21 = vsub.f32 %v113_v14, %v497_v15  ;;  %v1264_v27 = vmul.f32 %v880_v16, %v880_v16  ;;  %v126_v15 = vld [vmem:[#allocation3 + $0x228] sm:$0xff] }
  0x73   :  { %v510_v16 = vld [vmem:[#allocation6 + $0x228] sm:$0xff] }
  0x74   :  { %v1635_v37 = vadd.f32 %v1634_v32, %v1251_v26  ;;  %v882_v26 = vsub.f32 %v114_v19, %v498_v20  ;;  %v1265_v32 = vmul.f32 %v881_v21, %v881_v21  ;;  %v127_v20 = vld [vmem:[#allocation3 + $0x230] sm:$0xff] }
  0x75   :  { %v511_v21 = vld [vmem:[#allocation6 + $0x230] sm:$0xff] }
  0x76   :  { %v1636_v42 = vadd.f32 %v1635_v37, %v1252_v31  ;;  %v883_v31 = vsub.f32 %v115_v24, %v499_v25  ;;  %v1266_v37 = vmul.f32 %v882_v26, %v882_v26  ;;  %v128_v25 = vld [vmem:[#allocation3 + $0x238] sm:$0xff] }
  0x77   :  { %v512_v26 = vld [vmem:[#allocation6 + $0x238] sm:$0xff] }
  0x78   :  { %v1637_v47 = vadd.f32 %v1636_v42, %v1253_v36  ;;  %v884_v36 = vsub.f32 %v116_v29, %v500_v30  ;;  %v1267_v42 = vmul.f32 %v883_v31, %v883_v31  ;;  %v129_v30 = vld [vmem:[#allocation3 + $0x240] sm:$0xff] }
  0x79   :  { %v513_v31 = vld [vmem:[#allocation6 + $0x240] sm:$0xff] }
  0x7a   :  { %v1638_v52 = vadd.f32 %v1637_v47, %v1254_v41  ;;  %v885_v41 = vsub.f32 %v117_v34, %v501_v35  ;;  %v1268_v47 = vmul.f32 %v884_v36, %v884_v36  ;;  %v130_v35 = vld [vmem:[#allocation3 + $0x248] sm:$0xff] }
  0x7b   :  { %v514_v36 = vld [vmem:[#allocation6 + $0x248] sm:$0xff] }
  0x7c   :  { %v1639_v57 = vadd.f32 %v1638_v52, %v1255_v46  ;;  %v886_v46 = vsub.f32 %v118_v39, %v502_v40  ;;  %v1269_v52 = vmul.f32 %v885_v41, %v885_v41  ;;  %v131_v40 = vld [vmem:[#allocation3 + $0x250] sm:$0xff] }
  0x7d   :  { %v515_v41 = vld [vmem:[#allocation6 + $0x250] sm:$0xff] }
  0x7e   :  { %v1640_v62 = vadd.f32 %v1639_v57, %v1256_v51  ;;  %v887_v51 = vsub.f32 %v119_v44, %v503_v45  ;;  %v1270_v57 = vmul.f32 %v886_v46, %v886_v46  ;;  %v132_v45 = vld [vmem:[#allocation3 + $0x258] sm:$0xff] }
  0x7f   :  { %v516_v46 = vld [vmem:[#allocation6 + $0x258] sm:$0xff] }
  0x80   :  { %v1641_v3 = vadd.f32 %v1640_v62, %v1257_v56  ;;  %v888_v56 = vsub.f32 %v120_v49, %v504_v50  ;;  %v1271_v62 = vmul.f32 %v887_v51, %v887_v51  ;;  %v133_v50 = vld [vmem:[#allocation3 + $0x260] sm:$0xff] }
  0x81   :  { %v517_v51 = vld [vmem:[#allocation6 + $0x260] sm:$0xff] }
  0x82   :  { %v1642_v8 = vadd.f32 %v1641_v3, %v1258_v61  ;;  %v889_v61 = vsub.f32 %v121_v54, %v505_v55  ;;  %v1272_v3 = vmul.f32 %v888_v56, %v888_v56  ;;  %v134_v55 = vld [vmem:[#allocation3 + $0x268] sm:$0xff] }
  0x83   :  { %v518_v56 = vld [vmem:[#allocation6 + $0x268] sm:$0xff] }
  0x84   :  { %v1643_v13 = vadd.f32 %v1642_v8, %v1259_v2  ;;  %v890_v2 = vsub.f32 %v122_v59, %v506_v60  ;;  %v1273_v8 = vmul.f32 %v889_v61, %v889_v61  ;;  %v135_v60 = vld [vmem:[#allocation3 + $0x270] sm:$0xff] }
  0x85   :  { %v519_v61 = vld [vmem:[#allocation6 + $0x270] sm:$0xff] }
  0x86   :  { %v1644_v18 = vadd.f32 %v1643_v13, %v1260_v7  ;;  %v891_v7 = vsub.f32 %v123_v0, %v507_v1  ;;  %v1274_v13 = vmul.f32 %v890_v2, %v890_v2  ;;  %v136_v1 = vld [vmem:[#allocation3 + $0x278] sm:$0xff] }
  0x87   :  { %v520_v2 = vld [vmem:[#allocation6 + $0x278] sm:$0xff] }
  0x88   :  { %v1645_v23 = vadd.f32 %v1644_v18, %v1261_v12  ;;  %v892_v12 = vsub.f32 %v124_v5, %v508_v6  ;;  %v1275_v18 = vmul.f32 %v891_v7, %v891_v7  ;;  %v137_v6 = vld [vmem:[#allocation3 + $0x280] sm:$0xff] }
  0x89   :  { %v521_v7 = vld [vmem:[#allocation6 + $0x280] sm:$0xff] }
  0x8a   :  { %v1646_v28 = vadd.f32 %v1645_v23, %v1262_v17  ;;  %v893_v17 = vsub.f32 %v125_v10, %v509_v11  ;;  %v1276_v23 = vmul.f32 %v892_v12, %v892_v12  ;;  %v138_v11 = vld [vmem:[#allocation3 + $0x288] sm:$0xff] }
  0x8b   :  { %v522_v12 = vld [vmem:[#allocation6 + $0x288] sm:$0xff] }
  0x8c   :  { %v1647_v33 = vadd.f32 %v1646_v28, %v1263_v22  ;;  %v894_v22 = vsub.f32 %v126_v15, %v510_v16  ;;  %v1277_v28 = vmul.f32 %v893_v17, %v893_v17  ;;  %v139_v16 = vld [vmem:[#allocation3 + $0x290] sm:$0xff] }
  0x8d   :  { %v523_v17 = vld [vmem:[#allocation6 + $0x290] sm:$0xff] }
  0x8e   :  { %v1648_v38 = vadd.f32 %v1647_v33, %v1264_v27  ;;  %v895_v27 = vsub.f32 %v127_v20, %v511_v21  ;;  %v1278_v33 = vmul.f32 %v894_v22, %v894_v22  ;;  %v140_v21 = vld [vmem:[#allocation3 + $0x298] sm:$0xff] }
  0x8f   :  { %v524_v22 = vld [vmem:[#allocation6 + $0x298] sm:$0xff] }
  0x90   :  { %v1649_v43 = vadd.f32 %v1648_v38, %v1265_v32  ;;  %v896_v32 = vsub.f32 %v128_v25, %v512_v26  ;;  %v1279_v38 = vmul.f32 %v895_v27, %v895_v27  ;;  %v141_v26 = vld [vmem:[#allocation3 + $0x2a0] sm:$0xff] }
  0x91   :  { %v525_v27 = vld [vmem:[#allocation6 + $0x2a0] sm:$0xff] }
  0x92   :  { %v1650_v48 = vadd.f32 %v1649_v43, %v1266_v37  ;;  %v897_v37 = vsub.f32 %v129_v30, %v513_v31  ;;  %v1280_v43 = vmul.f32 %v896_v32, %v896_v32  ;;  %v142_v31 = vld [vmem:[#allocation3 + $0x2a8] sm:$0xff] }
  0x93   :  { %v526_v32 = vld [vmem:[#allocation6 + $0x2a8] sm:$0xff] }
  0x94   :  { %v1651_v53 = vadd.f32 %v1650_v48, %v1267_v42  ;;  %v898_v42 = vsub.f32 %v130_v35, %v514_v36  ;;  %v1281_v48 = vmul.f32 %v897_v37, %v897_v37  ;;  %v143_v36 = vld [vmem:[#allocation3 + $0x2b0] sm:$0xff] }
  0x95   :  { %v527_v37 = vld [vmem:[#allocation6 + $0x2b0] sm:$0xff] }
  0x96   :  { %v1652_v58 = vadd.f32 %v1651_v53, %v1268_v47  ;;  %v899_v47 = vsub.f32 %v131_v40, %v515_v41  ;;  %v1282_v53 = vmul.f32 %v898_v42, %v898_v42  ;;  %v144_v41 = vld [vmem:[#allocation3 + $0x2b8] sm:$0xff] }
  0x97   :  { %v528_v42 = vld [vmem:[#allocation6 + $0x2b8] sm:$0xff] }
  0x98   :  { %v1653_v63 = vadd.f32 %v1652_v58, %v1269_v52  ;;  %v900_v52 = vsub.f32 %v132_v45, %v516_v46  ;;  %v1283_v58 = vmul.f32 %v899_v47, %v899_v47  ;;  %v145_v46 = vld [vmem:[#allocation3 + $0x2c0] sm:$0xff] }
  0x99   :  { %v529_v47 = vld [vmem:[#allocation6 + $0x2c0] sm:$0xff] }
  0x9a   :  { %v1654_v4 = vadd.f32 %v1653_v63, %v1270_v57  ;;  %v901_v57 = vsub.f32 %v133_v50, %v517_v51  ;;  %v1284_v63 = vmul.f32 %v900_v52, %v900_v52  ;;  %v146_v51 = vld [vmem:[#allocation3 + $0x2c8] sm:$0xff] }
  0x9b   :  { %v530_v52 = vld [vmem:[#allocation6 + $0x2c8] sm:$0xff] }
  0x9c   :  { %v1655_v9 = vadd.f32 %v1654_v4, %v1271_v62  ;;  %v902_v62 = vsub.f32 %v134_v55, %v518_v56  ;;  %v1285_v4 = vmul.f32 %v901_v57, %v901_v57  ;;  %v147_v56 = vld [vmem:[#allocation3 + $0x2d0] sm:$0xff] }
  0x9d   :  { %v531_v57 = vld [vmem:[#allocation6 + $0x2d0] sm:$0xff] }
  0x9e   :  { %v1656_v14 = vadd.f32 %v1655_v9, %v1272_v3  ;;  %v903_v3 = vsub.f32 %v135_v60, %v519_v61  ;;  %v1286_v9 = vmul.f32 %v902_v62, %v902_v62  ;;  %v148_v61 = vld [vmem:[#allocation3 + $0x2d8] sm:$0xff] }
  0x9f   :  { %v532_v62 = vld [vmem:[#allocation6 + $0x2d8] sm:$0xff] }
  0xa0   :  { %v1657_v19 = vadd.f32 %v1656_v14, %v1273_v8  ;;  %v904_v8 = vsub.f32 %v136_v1, %v520_v2  ;;  %v1287_v14 = vmul.f32 %v903_v3, %v903_v3  ;;  %v149_v2 = vld [vmem:[#allocation3 + $0x2e0] sm:$0xff] }
  0xa1   :  { %v533_v3 = vld [vmem:[#allocation6 + $0x2e0] sm:$0xff] }
  0xa2   :  { %v1658_v24 = vadd.f32 %v1657_v19, %v1274_v13  ;;  %v905_v13 = vsub.f32 %v137_v6, %v521_v7  ;;  %v1288_v19 = vmul.f32 %v904_v8, %v904_v8  ;;  %v150_v7 = vld [vmem:[#allocation3 + $0x2e8] sm:$0xff] }
  0xa3   :  { %v534_v8 = vld [vmem:[#allocation6 + $0x2e8] sm:$0xff] }
  0xa4   :  { %v1659_v29 = vadd.f32 %v1658_v24, %v1275_v18  ;;  %v906_v18 = vsub.f32 %v138_v11, %v522_v12  ;;  %v1289_v24 = vmul.f32 %v905_v13, %v905_v13  ;;  %v151_v12 = vld [vmem:[#allocation3 + $0x2f0] sm:$0xff] }
  0xa5   :  { %v535_v13 = vld [vmem:[#allocation6 + $0x2f0] sm:$0xff] }
  0xa6   :  { %v1660_v34 = vadd.f32 %v1659_v29, %v1276_v23  ;;  %v907_v23 = vsub.f32 %v139_v16, %v523_v17  ;;  %v1290_v29 = vmul.f32 %v906_v18, %v906_v18  ;;  %v152_v17 = vld [vmem:[#allocation3 + $0x2f8] sm:$0xff] }
  0xa7   :  { %v536_v18 = vld [vmem:[#allocation6 + $0x2f8] sm:$0xff] }
  0xa8   :  { %v1661_v39 = vadd.f32 %v1660_v34, %v1277_v28  ;;  %v908_v28 = vsub.f32 %v140_v21, %v524_v22  ;;  %v1291_v34 = vmul.f32 %v907_v23, %v907_v23  ;;  %v153_v22 = vld [vmem:[#allocation3 + $0x300] sm:$0xff] }
  0xa9   :  { %v537_v23 = vld [vmem:[#allocation6 + $0x300] sm:$0xff] }
  0xaa   :  { %v1662_v44 = vadd.f32 %v1661_v39, %v1278_v33  ;;  %v909_v33 = vsub.f32 %v141_v26, %v525_v27  ;;  %v1292_v39 = vmul.f32 %v908_v28, %v908_v28  ;;  %v154_v27 = vld [vmem:[#allocation3 + $0x308] sm:$0xff] }
  0xab   :  { %v538_v28 = vld [vmem:[#allocation6 + $0x308] sm:$0xff] }
  0xac   :  { %v1663_v49 = vadd.f32 %v1662_v44, %v1279_v38  ;;  %v910_v38 = vsub.f32 %v142_v31, %v526_v32  ;;  %v1293_v44 = vmul.f32 %v909_v33, %v909_v33  ;;  %v155_v32 = vld [vmem:[#allocation3 + $0x310] sm:$0xff] }
  0xad   :  { %v539_v33 = vld [vmem:[#allocation6 + $0x310] sm:$0xff] }
  0xae   :  { %v1664_v54 = vadd.f32 %v1663_v49, %v1280_v43  ;;  %v911_v43 = vsub.f32 %v143_v36, %v527_v37  ;;  %v1294_v49 = vmul.f32 %v910_v38, %v910_v38  ;;  %v156_v37 = vld [vmem:[#allocation3 + $0x318] sm:$0xff] }
  0xaf   :  { %v540_v38 = vld [vmem:[#allocation6 + $0x318] sm:$0xff] }
  0xb0   :  { %v1665_v59 = vadd.f32 %v1664_v54, %v1281_v48  ;;  %v912_v48 = vsub.f32 %v144_v41, %v528_v42  ;;  %v1295_v54 = vmul.f32 %v911_v43, %v911_v43  ;;  %v157_v42 = vld [vmem:[#allocation3 + $0x320] sm:$0xff] }
  0xb1   :  { %v541_v43 = vld [vmem:[#allocation6 + $0x320] sm:$0xff] }
  0xb2   :  { %v1666_v0 = vadd.f32 %v1665_v59, %v1282_v53  ;;  %v913_v53 = vsub.f32 %v145_v46, %v529_v47  ;;  %v1296_v59 = vmul.f32 %v912_v48, %v912_v48  ;;  %v158_v47 = vld [vmem:[#allocation3 + $0x328] sm:$0xff] }
  0xb3   :  { %v542_v48 = vld [vmem:[#allocation6 + $0x328] sm:$0xff] }
  0xb4   :  { %v1667_v5 = vadd.f32 %v1666_v0, %v1283_v58  ;;  %v914_v58 = vsub.f32 %v146_v51, %v530_v52  ;;  %v1297_v0 = vmul.f32 %v913_v53, %v913_v53  ;;  %v159_v52 = vld [vmem:[#allocation3 + $0x330] sm:$0xff] }
  0xb5   :  { %v543_v53 = vld [vmem:[#allocation6 + $0x330] sm:$0xff] }
  0xb6   :  { %v1668_v10 = vadd.f32 %v1667_v5, %v1284_v63  ;;  %v915_v63 = vsub.f32 %v147_v56, %v531_v57  ;;  %v1298_v5 = vmul.f32 %v914_v58, %v914_v58  ;;  %v160_v57 = vld [vmem:[#allocation3 + $0x338] sm:$0xff] }
  0xb7   :  { %v544_v58 = vld [vmem:[#allocation6 + $0x338] sm:$0xff] }
  0xb8   :  { %v1669_v15 = vadd.f32 %v1668_v10, %v1285_v4  ;;  %v916_v4 = vsub.f32 %v148_v61, %v532_v62  ;;  %v1299_v10 = vmul.f32 %v915_v63, %v915_v63  ;;  %v161_v62 = vld [vmem:[#allocation3 + $0x340] sm:$0xff] }
  0xb9   :  { %v545_v63 = vld [vmem:[#allocation6 + $0x340] sm:$0xff] }
  0xba   :  { %v1670_v20 = vadd.f32 %v1669_v15, %v1286_v9  ;;  %v917_v9 = vsub.f32 %v149_v2, %v533_v3  ;;  %v1300_v15 = vmul.f32 %v916_v4, %v916_v4  ;;  %v162_v3 = vld [vmem:[#allocation3 + $0x348] sm:$0xff] }
  0xbb   :  { %v546_v4 = vld [vmem:[#allocation6 + $0x348] sm:$0xff] }
  0xbc   :  { %v1671_v25 = vadd.f32 %v1670_v20, %v1287_v14  ;;  %v918_v14 = vsub.f32 %v150_v7, %v534_v8  ;;  %v1301_v20 = vmul.f32 %v917_v9, %v917_v9  ;;  %v163_v8 = vld [vmem:[#allocation3 + $0x350] sm:$0xff] }
  0xbd   :  { %v547_v9 = vld [vmem:[#allocation6 + $0x350] sm:$0xff] }
  0xbe   :  { %v1672_v30 = vadd.f32 %v1671_v25, %v1288_v19  ;;  %v919_v19 = vsub.f32 %v151_v12, %v535_v13  ;;  %v1302_v25 = vmul.f32 %v918_v14, %v918_v14  ;;  %v164_v13 = vld [vmem:[#allocation3 + $0x358] sm:$0xff] }
  0xbf   :  { %v548_v14 = vld [vmem:[#allocation6 + $0x358] sm:$0xff] }
  0xc0   :  { %v1673_v35 = vadd.f32 %v1672_v30, %v1289_v24  ;;  %v920_v24 = vsub.f32 %v152_v17, %v536_v18  ;;  %v1303_v30 = vmul.f32 %v919_v19, %v919_v19  ;;  %v165_v18 = vld [vmem:[#allocation3 + $0x360] sm:$0xff] }
  0xc1   :  { %v549_v19 = vld [vmem:[#allocation6 + $0x360] sm:$0xff] }
  0xc2   :  { %v1674_v40 = vadd.f32 %v1673_v35, %v1290_v29  ;;  %v921_v29 = vsub.f32 %v153_v22, %v537_v23  ;;  %v1304_v35 = vmul.f32 %v920_v24, %v920_v24  ;;  %v166_v23 = vld [vmem:[#allocation3 + $0x368] sm:$0xff] }
  0xc3   :  { %v550_v24 = vld [vmem:[#allocation6 + $0x368] sm:$0xff] }
  0xc4   :  { %v1675_v45 = vadd.f32 %v1674_v40, %v1291_v34  ;;  %v922_v34 = vsub.f32 %v154_v27, %v538_v28  ;;  %v1305_v40 = vmul.f32 %v921_v29, %v921_v29  ;;  %v167_v28 = vld [vmem:[#allocation3 + $0x370] sm:$0xff] }
  0xc5   :  { %v551_v29 = vld [vmem:[#allocation6 + $0x370] sm:$0xff] }
  0xc6   :  { %v1676_v50 = vadd.f32 %v1675_v45, %v1292_v39  ;;  %v923_v39 = vsub.f32 %v155_v32, %v539_v33  ;;  %v1306_v45 = vmul.f32 %v922_v34, %v922_v34  ;;  %v168_v33 = vld [vmem:[#allocation3 + $0x378] sm:$0xff] }
  0xc7   :  { %v552_v34 = vld [vmem:[#allocation6 + $0x378] sm:$0xff] }
  0xc8   :  { %v1677_v55 = vadd.f32 %v1676_v50, %v1293_v44  ;;  %v924_v44 = vsub.f32 %v156_v37, %v540_v38  ;;  %v1307_v50 = vmul.f32 %v923_v39, %v923_v39  ;;  %v169_v38 = vld [vmem:[#allocation3 + $0x380] sm:$0xff] }
  0xc9   :  { %v553_v39 = vld [vmem:[#allocation6 + $0x380] sm:$0xff] }
  0xca   :  { %v1678_v60 = vadd.f32 %v1677_v55, %v1294_v49  ;;  %v925_v49 = vsub.f32 %v157_v42, %v541_v43  ;;  %v1308_v55 = vmul.f32 %v924_v44, %v924_v44  ;;  %v170_v43 = vld [vmem:[#allocation3 + $0x388] sm:$0xff] }
  0xcb   :  { %v554_v44 = vld [vmem:[#allocation6 + $0x388] sm:$0xff] }
  0xcc   :  { %v1679_v1 = vadd.f32 %v1678_v60, %v1295_v54  ;;  %v926_v54 = vsub.f32 %v158_v47, %v542_v48  ;;  %v1309_v60 = vmul.f32 %v925_v49, %v925_v49  ;;  %v171_v48 = vld [vmem:[#allocation3 + $0x390] sm:$0xff] }
  0xcd   :  { %v555_v49 = vld [vmem:[#allocation6 + $0x390] sm:$0xff] }
  0xce   :  { %v1680_v6 = vadd.f32 %v1679_v1, %v1296_v59  ;;  %v927_v59 = vsub.f32 %v159_v52, %v543_v53  ;;  %v1310_v1 = vmul.f32 %v926_v54, %v926_v54  ;;  %v172_v53 = vld [vmem:[#allocation3 + $0x398] sm:$0xff] }
  0xcf   :  { %v556_v54 = vld [vmem:[#allocation6 + $0x398] sm:$0xff] }
  0xd0   :  { %v1681_v11 = vadd.f32 %v1680_v6, %v1297_v0  ;;  %v928_v0 = vsub.f32 %v160_v57, %v544_v58  ;;  %v1311_v6 = vmul.f32 %v927_v59, %v927_v59  ;;  %v173_v58 = vld [vmem:[#allocation3 + $0x3a0] sm:$0xff] }
  0xd1   :  { %v557_v59 = vld [vmem:[#allocation6 + $0x3a0] sm:$0xff] }
  0xd2   :  { %v1682_v16 = vadd.f32 %v1681_v11, %v1298_v5  ;;  %v929_v5 = vsub.f32 %v161_v62, %v545_v63  ;;  %v1312_v11 = vmul.f32 %v928_v0, %v928_v0  ;;  %v174_v63 = vld [vmem:[#allocation3 + $0x3a8] sm:$0xff] }
  0xd3   :  { %v558_v0 = vld [vmem:[#allocation6 + $0x3a8] sm:$0xff] }
  0xd4   :  { %v1683_v21 = vadd.f32 %v1682_v16, %v1299_v10  ;;  %v930_v10 = vsub.f32 %v162_v3, %v546_v4  ;;  %v1313_v16 = vmul.f32 %v929_v5, %v929_v5  ;;  %v175_v4 = vld [vmem:[#allocation3 + $0x3b0] sm:$0xff] }
  0xd5   :  { %v559_v5 = vld [vmem:[#allocation6 + $0x3b0] sm:$0xff] }
  0xd6   :  { %v1684_v26 = vadd.f32 %v1683_v21, %v1300_v15  ;;  %v931_v15 = vsub.f32 %v163_v8, %v547_v9  ;;  %v1314_v21 = vmul.f32 %v930_v10, %v930_v10  ;;  %v176_v9 = vld [vmem:[#allocation3 + $0x3b8] sm:$0xff] }
  0xd7   :  { %v560_v10 = vld [vmem:[#allocation6 + $0x3b8] sm:$0xff] }
  0xd8   :  { %v1685_v31 = vadd.f32 %v1684_v26, %v1301_v20  ;;  %v932_v20 = vsub.f32 %v164_v13, %v548_v14  ;;  %v1315_v26 = vmul.f32 %v931_v15, %v931_v15  ;;  %v177_v14 = vld [vmem:[#allocation3 + $0x3c0] sm:$0xff] }
  0xd9   :  { %v561_v15 = vld [vmem:[#allocation6 + $0x3c0] sm:$0xff] }
  0xda   :  { %v1686_v36 = vadd.f32 %v1685_v31, %v1302_v25  ;;  %v933_v25 = vsub.f32 %v165_v18, %v549_v19  ;;  %v1316_v31 = vmul.f32 %v932_v20, %v932_v20  ;;  %v178_v19 = vld [vmem:[#allocation3 + $0x3c8] sm:$0xff] }
  0xdb   :  { %v562_v20 = vld [vmem:[#allocation6 + $0x3c8] sm:$0xff] }
  0xdc   :  { %v1687_v41 = vadd.f32 %v1686_v36, %v1303_v30  ;;  %v934_v30 = vsub.f32 %v166_v23, %v550_v24  ;;  %v1317_v36 = vmul.f32 %v933_v25, %v933_v25  ;;  %v179_v24 = vld [vmem:[#allocation3 + $0x3d0] sm:$0xff] }
  0xdd   :  { %v563_v25 = vld [vmem:[#allocation6 + $0x3d0] sm:$0xff] }
  0xde   :  { %v1688_v46 = vadd.f32 %v1687_v41, %v1304_v35  ;;  %v935_v35 = vsub.f32 %v167_v28, %v551_v29  ;;  %v1318_v41 = vmul.f32 %v934_v30, %v934_v30  ;;  %v180_v29 = vld [vmem:[#allocation3 + $0x3d8] sm:$0xff] }
  0xdf   :  { %v564_v30 = vld [vmem:[#allocation6 + $0x3d8] sm:$0xff] }
  0xe0   :  { %v1689_v51 = vadd.f32 %v1688_v46, %v1305_v40  ;;  %v936_v40 = vsub.f32 %v168_v33, %v552_v34  ;;  %v1319_v46 = vmul.f32 %v935_v35, %v935_v35  ;;  %v181_v34 = vld [vmem:[#allocation3 + $0x3e0] sm:$0xff] }
  0xe1   :  { %v565_v35 = vld [vmem:[#allocation6 + $0x3e0] sm:$0xff] }
  0xe2   :  { %v1690_v56 = vadd.f32 %v1689_v51, %v1306_v45  ;;  %v937_v45 = vsub.f32 %v169_v38, %v553_v39  ;;  %v1320_v51 = vmul.f32 %v936_v40, %v936_v40  ;;  %v182_v39 = vld [vmem:[#allocation3 + $0x3e8] sm:$0xff] }
  0xe3   :  { %v566_v40 = vld [vmem:[#allocation6 + $0x3e8] sm:$0xff] }
  0xe4   :  { %v1691_v61 = vadd.f32 %v1690_v56, %v1307_v50  ;;  %v938_v50 = vsub.f32 %v170_v43, %v554_v44  ;;  %v1321_v56 = vmul.f32 %v937_v45, %v937_v45  ;;  %v183_v44 = vld [vmem:[#allocation3 + $0x3f0] sm:$0xff] }
  0xe5   :  { %v567_v45 = vld [vmem:[#allocation6 + $0x3f0] sm:$0xff] }
  0xe6   :  { %v1692_v2 = vadd.f32 %v1691_v61, %v1308_v55  ;;  %v939_v55 = vsub.f32 %v171_v48, %v555_v49  ;;  %v1322_v61 = vmul.f32 %v938_v50, %v938_v50  ;;  %v184_v49 = vld [vmem:[#allocation3 + $0x3f8] sm:$0xff] }
  0xe7   :  { %v568_v50 = vld [vmem:[#allocation6 + $0x3f8] sm:$0xff] }
  0xe8   :  { %v1693_v7 = vadd.f32 %v1692_v2, %v1309_v60  ;;  %v940_v60 = vsub.f32 %v172_v53, %v556_v54  ;;  %v1323_v2 = vmul.f32 %v939_v55, %v939_v55  ;;  %v185_v54 = vld [vmem:[#allocation3 + $0x400] sm:$0xff] }
  0xe9   :  { %v569_v55 = vld [vmem:[#allocation6 + $0x400] sm:$0xff] }
  0xea   :  { %v1694_v12 = vadd.f32 %v1693_v7, %v1310_v1  ;;  %v941_v1 = vsub.f32 %v173_v58, %v557_v59  ;;  %v1324_v7 = vmul.f32 %v940_v60, %v940_v60  ;;  %v186_v59 = vld [vmem:[#allocation3 + $0x408] sm:$0xff] }
  0xeb   :  { %v570_v60 = vld [vmem:[#allocation6 + $0x408] sm:$0xff] }
  0xec   :  { %v1695_v17 = vadd.f32 %v1694_v12, %v1311_v6  ;;  %v942_v6 = vsub.f32 %v174_v63, %v558_v0  ;;  %v1325_v12 = vmul.f32 %v941_v1, %v941_v1  ;;  %v187_v0 = vld [vmem:[#allocation3 + $0x410] sm:$0xff] }
  0xed   :  { %v571_v1 = vld [vmem:[#allocation6 + $0x410] sm:$0xff] }
  0xee   :  { %v1696_v22 = vadd.f32 %v1695_v17, %v1312_v11  ;;  %v943_v11 = vsub.f32 %v175_v4, %v559_v5  ;;  %v1326_v17 = vmul.f32 %v942_v6, %v942_v6  ;;  %v188_v5 = vld [vmem:[#allocation3 + $0x418] sm:$0xff] }
  0xef   :  { %v572_v6 = vld [vmem:[#allocation6 + $0x418] sm:$0xff] }
  0xf0   :  { %v1697_v27 = vadd.f32 %v1696_v22, %v1313_v16  ;;  %v944_v16 = vsub.f32 %v176_v9, %v560_v10  ;;  %v1327_v22 = vmul.f32 %v943_v11, %v943_v11  ;;  %v189_v10 = vld [vmem:[#allocation3 + $0x420] sm:$0xff] }
  0xf1   :  { %v573_v11 = vld [vmem:[#allocation6 + $0x420] sm:$0xff] }
  0xf2   :  { %v1698_v32 = vadd.f32 %v1697_v27, %v1314_v21  ;;  %v945_v21 = vsub.f32 %v177_v14, %v561_v15  ;;  %v1328_v27 = vmul.f32 %v944_v16, %v944_v16  ;;  %v190_v15 = vld [vmem:[#allocation3 + $0x428] sm:$0xff] }
  0xf3   :  { %v574_v16 = vld [vmem:[#allocation6 + $0x428] sm:$0xff] }
  0xf4   :  { %v1699_v37 = vadd.f32 %v1698_v32, %v1315_v26  ;;  %v946_v26 = vsub.f32 %v178_v19, %v562_v20  ;;  %v1329_v32 = vmul.f32 %v945_v21, %v945_v21  ;;  %v191_v20 = vld [vmem:[#allocation3 + $0x430] sm:$0xff] }
  0xf5   :  { %v575_v21 = vld [vmem:[#allocation6 + $0x430] sm:$0xff] }
  0xf6   :  { %v1700_v42 = vadd.f32 %v1699_v37, %v1316_v31  ;;  %v947_v31 = vsub.f32 %v179_v24, %v563_v25  ;;  %v1330_v37 = vmul.f32 %v946_v26, %v946_v26  ;;  %v192_v25 = vld [vmem:[#allocation3 + $0x438] sm:$0xff] }
  0xf7   :  { %v576_v26 = vld [vmem:[#allocation6 + $0x438] sm:$0xff] }
  0xf8   :  { %v1701_v47 = vadd.f32 %v1700_v42, %v1317_v36  ;;  %v948_v36 = vsub.f32 %v180_v29, %v564_v30  ;;  %v1331_v42 = vmul.f32 %v947_v31, %v947_v31  ;;  %v193_v30 = vld [vmem:[#allocation3 + $0x440] sm:$0xff] }
  0xf9   :  { %v577_v31 = vld [vmem:[#allocation6 + $0x440] sm:$0xff] }
  0xfa   :  { %v1702_v52 = vadd.f32 %v1701_v47, %v1318_v41  ;;  %v949_v41 = vsub.f32 %v181_v34, %v565_v35  ;;  %v1332_v47 = vmul.f32 %v948_v36, %v948_v36  ;;  %v194_v35 = vld [vmem:[#allocation3 + $0x448] sm:$0xff] }
  0xfb   :  { %v578_v36 = vld [vmem:[#allocation6 + $0x448] sm:$0xff] }
  0xfc   :  { %v1703_v57 = vadd.f32 %v1702_v52, %v1319_v46  ;;  %v950_v46 = vsub.f32 %v182_v39, %v566_v40  ;;  %v1333_v52 = vmul.f32 %v949_v41, %v949_v41  ;;  %v195_v40 = vld [vmem:[#allocation3 + $0x450] sm:$0xff] }
  0xfd   :  { %v579_v41 = vld [vmem:[#allocation6 + $0x450] sm:$0xff] }
  0xfe   :  { %v1704_v62 = vadd.f32 %v1703_v57, %v1320_v51  ;;  %v951_v51 = vsub.f32 %v183_v44, %v567_v45  ;;  %v1334_v57 = vmul.f32 %v950_v46, %v950_v46  ;;  %v196_v45 = vld [vmem:[#allocation3 + $0x458] sm:$0xff] }
  0xff   :  { %v580_v46 = vld [vmem:[#allocation6 + $0x458] sm:$0xff] }
 0x100   :  { %v1705_v3 = vadd.f32 %v1704_v62, %v1321_v56  ;;  %v952_v56 = vsub.f32 %v184_v49, %v568_v50  ;;  %v1335_v62 = vmul.f32 %v951_v51, %v951_v51  ;;  %v197_v50 = vld [vmem:[#allocation3 + $0x460] sm:$0xff] }
 0x101   :  { %v581_v51 = vld [vmem:[#allocation6 + $0x460] sm:$0xff] }
 0x102   :  { %v1706_v8 = vadd.f32 %v1705_v3, %v1322_v61  ;;  %v953_v61 = vsub.f32 %v185_v54, %v569_v55  ;;  %v1336_v3 = vmul.f32 %v952_v56, %v952_v56  ;;  %v198_v55 = vld [vmem:[#allocation3 + $0x468] sm:$0xff] }
 0x103   :  { %v582_v56 = vld [vmem:[#allocation6 + $0x468] sm:$0xff] }
 0x104   :  { %v1707_v13 = vadd.f32 %v1706_v8, %v1323_v2  ;;  %v954_v2 = vsub.f32 %v186_v59, %v570_v60  ;;  %v1337_v8 = vmul.f32 %v953_v61, %v953_v61  ;;  %v199_v60 = vld [vmem:[#allocation3 + $0x470] sm:$0xff] }
 0x105   :  { %v583_v61 = vld [vmem:[#allocation6 + $0x470] sm:$0xff] }
 0x106   :  { %v1708_v18 = vadd.f32 %v1707_v13, %v1324_v7  ;;  %v955_v7 = vsub.f32 %v187_v0, %v571_v1  ;;  %v1338_v13 = vmul.f32 %v954_v2, %v954_v2  ;;  %v200_v1 = vld [vmem:[#allocation3 + $0x478] sm:$0xff] }
 0x107   :  { %v584_v2 = vld [vmem:[#allocation6 + $0x478] sm:$0xff] }
 0x108   :  { %v1709_v23 = vadd.f32 %v1708_v18, %v1325_v12  ;;  %v956_v12 = vsub.f32 %v188_v5, %v572_v6  ;;  %v1339_v18 = vmul.f32 %v955_v7, %v955_v7  ;;  %v201_v6 = vld [vmem:[#allocation3 + $0x480] sm:$0xff] }
 0x109   :  { %v585_v7 = vld [vmem:[#allocation6 + $0x480] sm:$0xff] }
 0x10a   :  { %v1710_v28 = vadd.f32 %v1709_v23, %v1326_v17  ;;  %v957_v17 = vsub.f32 %v189_v10, %v573_v11  ;;  %v1340_v23 = vmul.f32 %v956_v12, %v956_v12  ;;  %v202_v11 = vld [vmem:[#allocation3 + $0x488] sm:$0xff] }
 0x10b   :  { %v586_v12 = vld [vmem:[#allocation6 + $0x488] sm:$0xff] }
 0x10c   :  { %v1711_v33 = vadd.f32 %v1710_v28, %v1327_v22  ;;  %v958_v22 = vsub.f32 %v190_v15, %v574_v16  ;;  %v1341_v28 = vmul.f32 %v957_v17, %v957_v17  ;;  %v203_v16 = vld [vmem:[#allocation3 + $0x490] sm:$0xff] }
 0x10d   :  { %v587_v17 = vld [vmem:[#allocation6 + $0x490] sm:$0xff] }
 0x10e   :  { %v1712_v38 = vadd.f32 %v1711_v33, %v1328_v27  ;;  %v959_v27 = vsub.f32 %v191_v20, %v575_v21  ;;  %v1342_v33 = vmul.f32 %v958_v22, %v958_v22  ;;  %v204_v21 = vld [vmem:[#allocation3 + $0x498] sm:$0xff] }
 0x10f   :  { %v588_v22 = vld [vmem:[#allocation6 + $0x498] sm:$0xff] }
 0x110   :  { %v1713_v43 = vadd.f32 %v1712_v38, %v1329_v32  ;;  %v960_v32 = vsub.f32 %v192_v25, %v576_v26  ;;  %v1343_v38 = vmul.f32 %v959_v27, %v959_v27  ;;  %v205_v26 = vld [vmem:[#allocation3 + $0x4a0] sm:$0xff] }
 0x111   :  { %v589_v27 = vld [vmem:[#allocation6 + $0x4a0] sm:$0xff] }
 0x112   :  { %v1714_v48 = vadd.f32 %v1713_v43, %v1330_v37  ;;  %v961_v37 = vsub.f32 %v193_v30, %v577_v31  ;;  %v1344_v43 = vmul.f32 %v960_v32, %v960_v32  ;;  %v206_v31 = vld [vmem:[#allocation3 + $0x4a8] sm:$0xff] }
 0x113   :  { %v590_v32 = vld [vmem:[#allocation6 + $0x4a8] sm:$0xff] }
 0x114   :  { %v1715_v53 = vadd.f32 %v1714_v48, %v1331_v42  ;;  %v962_v42 = vsub.f32 %v194_v35, %v578_v36  ;;  %v1345_v48 = vmul.f32 %v961_v37, %v961_v37  ;;  %v207_v36 = vld [vmem:[#allocation3 + $0x4b0] sm:$0xff] }
 0x115   :  { %v591_v37 = vld [vmem:[#allocation6 + $0x4b0] sm:$0xff] }
 0x116   :  { %v1716_v58 = vadd.f32 %v1715_v53, %v1332_v47  ;;  %v963_v47 = vsub.f32 %v195_v40, %v579_v41  ;;  %v1346_v53 = vmul.f32 %v962_v42, %v962_v42  ;;  %v208_v41 = vld [vmem:[#allocation3 + $0x4b8] sm:$0xff] }
 0x117   :  { %v592_v42 = vld [vmem:[#allocation6 + $0x4b8] sm:$0xff] }
 0x118   :  { %v1717_v63 = vadd.f32 %v1716_v58, %v1333_v52  ;;  %v964_v52 = vsub.f32 %v196_v45, %v580_v46  ;;  %v1347_v58 = vmul.f32 %v963_v47, %v963_v47  ;;  %v209_v46 = vld [vmem:[#allocation3 + $0x4c0] sm:$0xff] }
 0x119   :  { %v593_v47 = vld [vmem:[#allocation6 + $0x4c0] sm:$0xff] }
 0x11a   :  { %v1718_v4 = vadd.f32 %v1717_v63, %v1334_v57  ;;  %v965_v57 = vsub.f32 %v197_v50, %v581_v51  ;;  %v1348_v63 = vmul.f32 %v964_v52, %v964_v52  ;;  %v210_v51 = vld [vmem:[#allocation3 + $0x4c8] sm:$0xff] }
 0x11b   :  { %v594_v52 = vld [vmem:[#allocation6 + $0x4c8] sm:$0xff] }
 0x11c   :  { %v1719_v9 = vadd.f32 %v1718_v4, %v1335_v62  ;;  %v966_v62 = vsub.f32 %v198_v55, %v582_v56  ;;  %v1349_v4 = vmul.f32 %v965_v57, %v965_v57  ;;  %v211_v56 = vld [vmem:[#allocation3 + $0x4d0] sm:$0xff] }
 0x11d   :  { %v595_v57 = vld [vmem:[#allocation6 + $0x4d0] sm:$0xff] }
 0x11e   :  { %v1720_v14 = vadd.f32 %v1719_v9, %v1336_v3  ;;  %v967_v3 = vsub.f32 %v199_v60, %v583_v61  ;;  %v1350_v9 = vmul.f32 %v966_v62, %v966_v62  ;;  %v212_v61 = vld [vmem:[#allocation3 + $0x4d8] sm:$0xff] }
 0x11f   :  { %v596_v62 = vld [vmem:[#allocation6 + $0x4d8] sm:$0xff] }
 0x120   :  { %v1721_v19 = vadd.f32 %v1720_v14, %v1337_v8  ;;  %v968_v8 = vsub.f32 %v200_v1, %v584_v2  ;;  %v1351_v14 = vmul.f32 %v967_v3, %v967_v3  ;;  %v213_v2 = vld [vmem:[#allocation3 + $0x4e0] sm:$0xff] }
 0x121   :  { %v597_v3 = vld [vmem:[#allocation6 + $0x4e0] sm:$0xff] }
 0x122   :  { %v1722_v24 = vadd.f32 %v1721_v19, %v1338_v13  ;;  %v969_v13 = vsub.f32 %v201_v6, %v585_v7  ;;  %v1352_v19 = vmul.f32 %v968_v8, %v968_v8  ;;  %v214_v7 = vld [vmem:[#allocation3 + $0x4e8] sm:$0xff] }
 0x123   :  { %v598_v8 = vld [vmem:[#allocation6 + $0x4e8] sm:$0xff] }
 0x124   :  { %v1723_v29 = vadd.f32 %v1722_v24, %v1339_v18  ;;  %v970_v18 = vsub.f32 %v202_v11, %v586_v12  ;;  %v1353_v24 = vmul.f32 %v969_v13, %v969_v13  ;;  %v215_v12 = vld [vmem:[#allocation3 + $0x4f0] sm:$0xff] }
 0x125   :  { %v599_v13 = vld [vmem:[#allocation6 + $0x4f0] sm:$0xff] }
 0x126   :  { %v1724_v34 = vadd.f32 %v1723_v29, %v1340_v23  ;;  %v971_v23 = vsub.f32 %v203_v16, %v587_v17  ;;  %v1354_v29 = vmul.f32 %v970_v18, %v970_v18  ;;  %v216_v17 = vld [vmem:[#allocation3 + $0x4f8] sm:$0xff] }
 0x127   :  { %v600_v18 = vld [vmem:[#allocation6 + $0x4f8] sm:$0xff] }
 0x128   :  { %v1725_v39 = vadd.f32 %v1724_v34, %v1341_v28  ;;  %v972_v28 = vsub.f32 %v204_v21, %v588_v22  ;;  %v1355_v34 = vmul.f32 %v971_v23, %v971_v23  ;;  %v217_v22 = vld [vmem:[#allocation3 + $0x500] sm:$0xff] }
 0x129   :  { %v601_v23 = vld [vmem:[#allocation6 + $0x500] sm:$0xff] }
 0x12a   :  { %v1726_v44 = vadd.f32 %v1725_v39, %v1342_v33  ;;  %v973_v33 = vsub.f32 %v205_v26, %v589_v27  ;;  %v1356_v39 = vmul.f32 %v972_v28, %v972_v28  ;;  %v218_v27 = vld [vmem:[#allocation3 + $0x508] sm:$0xff] }
 0x12b   :  { %v602_v28 = vld [vmem:[#allocation6 + $0x508] sm:$0xff] }
 0x12c   :  { %v1727_v49 = vadd.f32 %v1726_v44, %v1343_v38  ;;  %v974_v38 = vsub.f32 %v206_v31, %v590_v32  ;;  %v1357_v44 = vmul.f32 %v973_v33, %v973_v33  ;;  %v219_v32 = vld [vmem:[#allocation3 + $0x510] sm:$0xff] }
 0x12d   :  { %v603_v33 = vld [vmem:[#allocation6 + $0x510] sm:$0xff] }
 0x12e   :  { %v1728_v54 = vadd.f32 %v1727_v49, %v1344_v43  ;;  %v975_v43 = vsub.f32 %v207_v36, %v591_v37  ;;  %v1358_v49 = vmul.f32 %v974_v38, %v974_v38  ;;  %v220_v37 = vld [vmem:[#allocation3 + $0x518] sm:$0xff] }
 0x12f   :  { %v604_v38 = vld [vmem:[#allocation6 + $0x518] sm:$0xff] }
 0x130   :  { %v1729_v59 = vadd.f32 %v1728_v54, %v1345_v48  ;;  %v976_v48 = vsub.f32 %v208_v41, %v592_v42  ;;  %v1359_v54 = vmul.f32 %v975_v43, %v975_v43  ;;  %v221_v42 = vld [vmem:[#allocation3 + $0x520] sm:$0xff] }
 0x131   :  { %v605_v43 = vld [vmem:[#allocation6 + $0x520] sm:$0xff] }
 0x132   :  { %v1730_v0 = vadd.f32 %v1729_v59, %v1346_v53  ;;  %v977_v53 = vsub.f32 %v209_v46, %v593_v47  ;;  %v1360_v59 = vmul.f32 %v976_v48, %v976_v48  ;;  %v222_v47 = vld [vmem:[#allocation3 + $0x528] sm:$0xff] }
 0x133   :  { %v606_v48 = vld [vmem:[#allocation6 + $0x528] sm:$0xff] }
 0x134   :  { %v1731_v5 = vadd.f32 %v1730_v0, %v1347_v58  ;;  %v978_v58 = vsub.f32 %v210_v51, %v594_v52  ;;  %v1361_v0 = vmul.f32 %v977_v53, %v977_v53  ;;  %v223_v52 = vld [vmem:[#allocation3 + $0x530] sm:$0xff] }
 0x135   :  { %v607_v53 = vld [vmem:[#allocation6 + $0x530] sm:$0xff] }
 0x136   :  { %v1732_v10 = vadd.f32 %v1731_v5, %v1348_v63  ;;  %v979_v63 = vsub.f32 %v211_v56, %v595_v57  ;;  %v1362_v5 = vmul.f32 %v978_v58, %v978_v58  ;;  %v224_v57 = vld [vmem:[#allocation3 + $0x538] sm:$0xff] }
 0x137   :  { %v608_v58 = vld [vmem:[#allocation6 + $0x538] sm:$0xff] }
 0x138   :  { %v1733_v15 = vadd.f32 %v1732_v10, %v1349_v4  ;;  %v980_v4 = vsub.f32 %v212_v61, %v596_v62  ;;  %v1363_v10 = vmul.f32 %v979_v63, %v979_v63  ;;  %v225_v62 = vld [vmem:[#allocation3 + $0x540] sm:$0xff] }
 0x139   :  { %v609_v63 = vld [vmem:[#allocation6 + $0x540] sm:$0xff] }
 0x13a   :  { %v1734_v20 = vadd.f32 %v1733_v15, %v1350_v9  ;;  %v981_v9 = vsub.f32 %v213_v2, %v597_v3  ;;  %v1364_v15 = vmul.f32 %v980_v4, %v980_v4  ;;  %v226_v3 = vld [vmem:[#allocation3 + $0x548] sm:$0xff] }
 0x13b   :  { %v610_v4 = vld [vmem:[#allocation6 + $0x548] sm:$0xff] }
 0x13c   :  { %v1735_v25 = vadd.f32 %v1734_v20, %v1351_v14  ;;  %v982_v14 = vsub.f32 %v214_v7, %v598_v8  ;;  %v1365_v20 = vmul.f32 %v981_v9, %v981_v9  ;;  %v227_v8 = vld [vmem:[#allocation3 + $0x550] sm:$0xff] }
 0x13d   :  { %v611_v9 = vld [vmem:[#allocation6 + $0x550] sm:$0xff] }
 0x13e   :  { %v1736_v30 = vadd.f32 %v1735_v25, %v1352_v19  ;;  %v983_v19 = vsub.f32 %v215_v12, %v599_v13  ;;  %v1366_v25 = vmul.f32 %v982_v14, %v982_v14  ;;  %v228_v13 = vld [vmem:[#allocation3 + $0x558] sm:$0xff] }
 0x13f   :  { %v612_v14 = vld [vmem:[#allocation6 + $0x558] sm:$0xff] }
 0x140   :  { %v1737_v35 = vadd.f32 %v1736_v30, %v1353_v24  ;;  %v984_v24 = vsub.f32 %v216_v17, %v600_v18  ;;  %v1367_v30 = vmul.f32 %v983_v19, %v983_v19  ;;  %v229_v18 = vld [vmem:[#allocation3 + $0x560] sm:$0xff] }
 0x141   :  { %v613_v19 = vld [vmem:[#allocation6 + $0x560] sm:$0xff] }
 0x142   :  { %v1738_v40 = vadd.f32 %v1737_v35, %v1354_v29  ;;  %v985_v29 = vsub.f32 %v217_v22, %v601_v23  ;;  %v1368_v35 = vmul.f32 %v984_v24, %v984_v24  ;;  %v230_v23 = vld [vmem:[#allocation3 + $0x568] sm:$0xff] }
 0x143   :  { %v614_v24 = vld [vmem:[#allocation6 + $0x568] sm:$0xff] }
 0x144   :  { %v1739_v45 = vadd.f32 %v1738_v40, %v1355_v34  ;;  %v986_v34 = vsub.f32 %v218_v27, %v602_v28  ;;  %v1369_v40 = vmul.f32 %v985_v29, %v985_v29  ;;  %v231_v28 = vld [vmem:[#allocation3 + $0x570] sm:$0xff] }
 0x145   :  { %v615_v29 = vld [vmem:[#allocation6 + $0x570] sm:$0xff] }
 0x146   :  { %v1740_v50 = vadd.f32 %v1739_v45, %v1356_v39  ;;  %v987_v39 = vsub.f32 %v219_v32, %v603_v33  ;;  %v1370_v45 = vmul.f32 %v986_v34, %v986_v34  ;;  %v232_v33 = vld [vmem:[#allocation3 + $0x578] sm:$0xff] }
 0x147   :  { %v616_v34 = vld [vmem:[#allocation6 + $0x578] sm:$0xff] }
 0x148   :  { %v1741_v55 = vadd.f32 %v1740_v50, %v1357_v44  ;;  %v988_v44 = vsub.f32 %v220_v37, %v604_v38  ;;  %v1371_v50 = vmul.f32 %v987_v39, %v987_v39  ;;  %v233_v38 = vld [vmem:[#allocation3 + $0x580] sm:$0xff] }
 0x149   :  { %v617_v39 = vld [vmem:[#allocation6 + $0x580] sm:$0xff] }
 0x14a   :  { %v1742_v60 = vadd.f32 %v1741_v55, %v1358_v49  ;;  %v989_v49 = vsub.f32 %v221_v42, %v605_v43  ;;  %v1372_v55 = vmul.f32 %v988_v44, %v988_v44  ;;  %v234_v43 = vld [vmem:[#allocation3 + $0x588] sm:$0xff] }
 0x14b   :  { %v618_v44 = vld [vmem:[#allocation6 + $0x588] sm:$0xff] }
 0x14c   :  { %v1743_v1 = vadd.f32 %v1742_v60, %v1359_v54  ;;  %v990_v54 = vsub.f32 %v222_v47, %v606_v48  ;;  %v1373_v60 = vmul.f32 %v989_v49, %v989_v49  ;;  %v235_v48 = vld [vmem:[#allocation3 + $0x590] sm:$0xff] }
 0x14d   :  { %v619_v49 = vld [vmem:[#allocation6 + $0x590] sm:$0xff] }
 0x14e   :  { %v1744_v6 = vadd.f32 %v1743_v1, %v1360_v59  ;;  %v991_v59 = vsub.f32 %v223_v52, %v607_v53  ;;  %v1374_v1 = vmul.f32 %v990_v54, %v990_v54  ;;  %v236_v53 = vld [vmem:[#allocation3 + $0x598] sm:$0xff] }
 0x14f   :  { %v620_v54 = vld [vmem:[#allocation6 + $0x598] sm:$0xff] }
 0x150   :  { %v1745_v11 = vadd.f32 %v1744_v6, %v1361_v0  ;;  %v992_v0 = vsub.f32 %v224_v57, %v608_v58  ;;  %v1375_v6 = vmul.f32 %v991_v59, %v991_v59  ;;  %v237_v58 = vld [vmem:[#allocation3 + $0x5a0] sm:$0xff] }
 0x151   :  { %v621_v59 = vld [vmem:[#allocation6 + $0x5a0] sm:$0xff] }
 0x152   :  { %v1746_v16 = vadd.f32 %v1745_v11, %v1362_v5  ;;  %v993_v5 = vsub.f32 %v225_v62, %v609_v63  ;;  %v1376_v11 = vmul.f32 %v992_v0, %v992_v0  ;;  %v238_v63 = vld [vmem:[#allocation3 + $0x5a8] sm:$0xff] }
 0x153   :  { %v622_v0 = vld [vmem:[#allocation6 + $0x5a8] sm:$0xff] }
 0x154   :  { %v1747_v21 = vadd.f32 %v1746_v16, %v1363_v10  ;;  %v994_v10 = vsub.f32 %v226_v3, %v610_v4  ;;  %v1377_v16 = vmul.f32 %v993_v5, %v993_v5  ;;  %v239_v4 = vld [vmem:[#allocation3 + $0x5b0] sm:$0xff] }
 0x155   :  { %v623_v5 = vld [vmem:[#allocation6 + $0x5b0] sm:$0xff] }
 0x156   :  { %v1748_v26 = vadd.f32 %v1747_v21, %v1364_v15  ;;  %v995_v15 = vsub.f32 %v227_v8, %v611_v9  ;;  %v1378_v21 = vmul.f32 %v994_v10, %v994_v10  ;;  %v240_v9 = vld [vmem:[#allocation3 + $0x5b8] sm:$0xff] }
 0x157   :  { %v624_v10 = vld [vmem:[#allocation6 + $0x5b8] sm:$0xff] }
 0x158   :  { %v1749_v31 = vadd.f32 %v1748_v26, %v1365_v20  ;;  %v996_v20 = vsub.f32 %v228_v13, %v612_v14  ;;  %v1379_v26 = vmul.f32 %v995_v15, %v995_v15  ;;  %v241_v14 = vld [vmem:[#allocation3 + $0x5c0] sm:$0xff] }
 0x159   :  { %v625_v15 = vld [vmem:[#allocation6 + $0x5c0] sm:$0xff] }
 0x15a   :  { %v1750_v36 = vadd.f32 %v1749_v31, %v1366_v25  ;;  %v997_v25 = vsub.f32 %v229_v18, %v613_v19  ;;  %v1380_v31 = vmul.f32 %v996_v20, %v996_v20  ;;  %v242_v19 = vld [vmem:[#allocation3 + $0x5c8] sm:$0xff] }
 0x15b   :  { %v626_v20 = vld [vmem:[#allocation6 + $0x5c8] sm:$0xff] }
 0x15c   :  { %v1751_v41 = vadd.f32 %v1750_v36, %v1367_v30  ;;  %v998_v30 = vsub.f32 %v230_v23, %v614_v24  ;;  %v1381_v36 = vmul.f32 %v997_v25, %v997_v25  ;;  %v243_v24 = vld [vmem:[#allocation3 + $0x5d0] sm:$0xff] }
 0x15d   :  { %v627_v25 = vld [vmem:[#allocation6 + $0x5d0] sm:$0xff] }
 0x15e   :  { %v1752_v46 = vadd.f32 %v1751_v41, %v1368_v35  ;;  %v999_v35 = vsub.f32 %v231_v28, %v615_v29  ;;  %v1382_v41 = vmul.f32 %v998_v30, %v998_v30  ;;  %v244_v29 = vld [vmem:[#allocation3 + $0x5d8] sm:$0xff] }
 0x15f   :  { %v628_v30 = vld [vmem:[#allocation6 + $0x5d8] sm:$0xff] }
 0x160   :  { %v1753_v51 = vadd.f32 %v1752_v46, %v1369_v40  ;;  %v1000_v40 = vsub.f32 %v232_v33, %v616_v34  ;;  %v1383_v46 = vmul.f32 %v999_v35, %v999_v35  ;;  %v245_v34 = vld [vmem:[#allocation3 + $0x5e0] sm:$0xff] }
 0x161   :  { %v629_v35 = vld [vmem:[#allocation6 + $0x5e0] sm:$0xff] }
 0x162   :  { %v1754_v56 = vadd.f32 %v1753_v51, %v1370_v45  ;;  %v1001_v45 = vsub.f32 %v233_v38, %v617_v39  ;;  %v1384_v51 = vmul.f32 %v1000_v40, %v1000_v40  ;;  %v246_v39 = vld [vmem:[#allocation3 + $0x5e8] sm:$0xff] }
 0x163   :  { %v630_v40 = vld [vmem:[#allocation6 + $0x5e8] sm:$0xff] }
 0x164   :  { %v1755_v61 = vadd.f32 %v1754_v56, %v1371_v50  ;;  %v1002_v50 = vsub.f32 %v234_v43, %v618_v44  ;;  %v1385_v56 = vmul.f32 %v1001_v45, %v1001_v45  ;;  %v247_v44 = vld [vmem:[#allocation3 + $0x5f0] sm:$0xff] }
 0x165   :  { %v631_v45 = vld [vmem:[#allocation6 + $0x5f0] sm:$0xff] }
 0x166   :  { %v1756_v2 = vadd.f32 %v1755_v61, %v1372_v55  ;;  %v1003_v55 = vsub.f32 %v235_v48, %v619_v49  ;;  %v1386_v61 = vmul.f32 %v1002_v50, %v1002_v50  ;;  %v248_v49 = vld [vmem:[#allocation3 + $0x5f8] sm:$0xff] }
 0x167   :  { %v632_v50 = vld [vmem:[#allocation6 + $0x5f8] sm:$0xff] }
 0x168   :  { %v1757_v7 = vadd.f32 %v1756_v2, %v1373_v60  ;;  %v1004_v60 = vsub.f32 %v236_v53, %v620_v54  ;;  %v1387_v2 = vmul.f32 %v1003_v55, %v1003_v55  ;;  %v249_v54 = vld [vmem:[#allocation3 + $0x600] sm:$0xff] }
 0x169   :  { %v633_v55 = vld [vmem:[#allocation6 + $0x600] sm:$0xff] }
 0x16a   :  { %v1758_v12 = vadd.f32 %v1757_v7, %v1374_v1  ;;  %v1005_v1 = vsub.f32 %v237_v58, %v621_v59  ;;  %v1388_v7 = vmul.f32 %v1004_v60, %v1004_v60  ;;  %v250_v59 = vld [vmem:[#allocation3 + $0x608] sm:$0xff] }
 0x16b   :  { %v634_v60 = vld [vmem:[#allocation6 + $0x608] sm:$0xff] }
 0x16c   :  { %v1759_v17 = vadd.f32 %v1758_v12, %v1375_v6  ;;  %v1006_v6 = vsub.f32 %v238_v63, %v622_v0  ;;  %v1389_v12 = vmul.f32 %v1005_v1, %v1005_v1  ;;  %v251_v0 = vld [vmem:[#allocation3 + $0x610] sm:$0xff] }
 0x16d   :  { %v635_v1 = vld [vmem:[#allocation6 + $0x610] sm:$0xff] }
 0x16e   :  { %v1760_v22 = vadd.f32 %v1759_v17, %v1376_v11  ;;  %v1007_v11 = vsub.f32 %v239_v4, %v623_v5  ;;  %v1390_v17 = vmul.f32 %v1006_v6, %v1006_v6  ;;  %v252_v5 = vld [vmem:[#allocation3 + $0x618] sm:$0xff] }
 0x16f   :  { %v636_v6 = vld [vmem:[#allocation6 + $0x618] sm:$0xff] }
 0x170   :  { %v1761_v27 = vadd.f32 %v1760_v22, %v1377_v16  ;;  %v1008_v16 = vsub.f32 %v240_v9, %v624_v10  ;;  %v1391_v22 = vmul.f32 %v1007_v11, %v1007_v11  ;;  %v253_v10 = vld [vmem:[#allocation3 + $0x620] sm:$0xff] }
 0x171   :  { %v637_v11 = vld [vmem:[#allocation6 + $0x620] sm:$0xff] }
 0x172   :  { %v1762_v32 = vadd.f32 %v1761_v27, %v1378_v21  ;;  %v1009_v21 = vsub.f32 %v241_v14, %v625_v15  ;;  %v1392_v27 = vmul.f32 %v1008_v16, %v1008_v16  ;;  %v254_v15 = vld [vmem:[#allocation3 + $0x628] sm:$0xff] }
 0x173   :  { %v638_v16 = vld [vmem:[#allocation6 + $0x628] sm:$0xff] }
 0x174   :  { %v1763_v37 = vadd.f32 %v1762_v32, %v1379_v26  ;;  %v1010_v26 = vsub.f32 %v242_v19, %v626_v20  ;;  %v1393_v32 = vmul.f32 %v1009_v21, %v1009_v21  ;;  %v255_v20 = vld [vmem:[#allocation3 + $0x630] sm:$0xff] }
 0x175   :  { %v639_v21 = vld [vmem:[#allocation6 + $0x630] sm:$0xff] }
 0x176   :  { %v1764_v42 = vadd.f32 %v1763_v37, %v1380_v31  ;;  %v1011_v31 = vsub.f32 %v243_v24, %v627_v25  ;;  %v1394_v37 = vmul.f32 %v1010_v26, %v1010_v26  ;;  %v256_v25 = vld [vmem:[#allocation3 + $0x638] sm:$0xff] }
 0x177   :  { %v640_v26 = vld [vmem:[#allocation6 + $0x638] sm:$0xff] }
 0x178   :  { %v1765_v47 = vadd.f32 %v1764_v42, %v1381_v36  ;;  %v1012_v36 = vsub.f32 %v244_v29, %v628_v30  ;;  %v1395_v42 = vmul.f32 %v1011_v31, %v1011_v31  ;;  %v257_v30 = vld [vmem:[#allocation3 + $0x640] sm:$0xff] }
 0x179   :  { %v641_v31 = vld [vmem:[#allocation6 + $0x640] sm:$0xff] }
 0x17a   :  { %v1766_v52 = vadd.f32 %v1765_v47, %v1382_v41  ;;  %v1013_v41 = vsub.f32 %v245_v34, %v629_v35  ;;  %v1396_v47 = vmul.f32 %v1012_v36, %v1012_v36  ;;  %v258_v35 = vld [vmem:[#allocation3 + $0x648] sm:$0xff] }
 0x17b   :  { %v642_v36 = vld [vmem:[#allocation6 + $0x648] sm:$0xff] }
 0x17c   :  { %v1767_v57 = vadd.f32 %v1766_v52, %v1383_v46  ;;  %v1014_v46 = vsub.f32 %v246_v39, %v630_v40  ;;  %v1397_v52 = vmul.f32 %v1013_v41, %v1013_v41  ;;  %v259_v40 = vld [vmem:[#allocation3 + $0x650] sm:$0xff] }
 0x17d   :  { %v643_v41 = vld [vmem:[#allocation6 + $0x650] sm:$0xff] }
 0x17e   :  { %v1768_v62 = vadd.f32 %v1767_v57, %v1384_v51  ;;  %v1015_v51 = vsub.f32 %v247_v44, %v631_v45  ;;  %v1398_v57 = vmul.f32 %v1014_v46, %v1014_v46  ;;  %v260_v45 = vld [vmem:[#allocation3 + $0x658] sm:$0xff] }
 0x17f   :  { %v644_v46 = vld [vmem:[#allocation6 + $0x658] sm:$0xff] }
 0x180   :  { %v1769_v3 = vadd.f32 %v1768_v62, %v1385_v56  ;;  %v1016_v56 = vsub.f32 %v248_v49, %v632_v50  ;;  %v1399_v62 = vmul.f32 %v1015_v51, %v1015_v51  ;;  %v261_v50 = vld [vmem:[#allocation3 + $0x660] sm:$0xff] }
 0x181   :  { %v645_v51 = vld [vmem:[#allocation6 + $0x660] sm:$0xff] }
 0x182   :  { %v1770_v8 = vadd.f32 %v1769_v3, %v1386_v61  ;;  %v1017_v61 = vsub.f32 %v249_v54, %v633_v55  ;;  %v1400_v3 = vmul.f32 %v1016_v56, %v1016_v56  ;;  %v262_v55 = vld [vmem:[#allocation3 + $0x668] sm:$0xff] }
 0x183   :  { %v646_v56 = vld [vmem:[#allocation6 + $0x668] sm:$0xff] }
 0x184   :  { %v1771_v13 = vadd.f32 %v1770_v8, %v1387_v2  ;;  %v1018_v2 = vsub.f32 %v250_v59, %v634_v60  ;;  %v1401_v8 = vmul.f32 %v1017_v61, %v1017_v61  ;;  %v263_v60 = vld [vmem:[#allocation3 + $0x670] sm:$0xff] }
 0x185   :  { %v647_v61 = vld [vmem:[#allocation6 + $0x670] sm:$0xff] }
 0x186   :  { %v1772_v18 = vadd.f32 %v1771_v13, %v1388_v7  ;;  %v1019_v7 = vsub.f32 %v251_v0, %v635_v1  ;;  %v1402_v13 = vmul.f32 %v1018_v2, %v1018_v2  ;;  %v264_v1 = vld [vmem:[#allocation3 + $0x678] sm:$0xff] }
 0x187   :  { %v648_v2 = vld [vmem:[#allocation6 + $0x678] sm:$0xff] }
 0x188   :  { %v1773_v23 = vadd.f32 %v1772_v18, %v1389_v12  ;;  %v1020_v12 = vsub.f32 %v252_v5, %v636_v6  ;;  %v1403_v18 = vmul.f32 %v1019_v7, %v1019_v7  ;;  %v265_v6 = vld [vmem:[#allocation3 + $0x680] sm:$0xff] }
 0x189   :  { %v649_v7 = vld [vmem:[#allocation6 + $0x680] sm:$0xff] }
 0x18a   :  { %v1774_v28 = vadd.f32 %v1773_v23, %v1390_v17  ;;  %v1021_v17 = vsub.f32 %v253_v10, %v637_v11  ;;  %v1404_v23 = vmul.f32 %v1020_v12, %v1020_v12  ;;  %v266_v11 = vld [vmem:[#allocation3 + $0x688] sm:$0xff] }
 0x18b   :  { %v650_v12 = vld [vmem:[#allocation6 + $0x688] sm:$0xff] }
 0x18c   :  { %v1775_v33 = vadd.f32 %v1774_v28, %v1391_v22  ;;  %v1022_v22 = vsub.f32 %v254_v15, %v638_v16  ;;  %v1405_v28 = vmul.f32 %v1021_v17, %v1021_v17  ;;  %v267_v16 = vld [vmem:[#allocation3 + $0x690] sm:$0xff] }
 0x18d   :  { %v651_v17 = vld [vmem:[#allocation6 + $0x690] sm:$0xff] }
 0x18e   :  { %v1776_v38 = vadd.f32 %v1775_v33, %v1392_v27  ;;  %v1023_v27 = vsub.f32 %v255_v20, %v639_v21  ;;  %v1406_v33 = vmul.f32 %v1022_v22, %v1022_v22  ;;  %v268_v21 = vld [vmem:[#allocation3 + $0x698] sm:$0xff] }
 0x18f   :  { %v652_v22 = vld [vmem:[#allocation6 + $0x698] sm:$0xff] }
 0x190   :  { %v1777_v43 = vadd.f32 %v1776_v38, %v1393_v32  ;;  %v1024_v32 = vsub.f32 %v256_v25, %v640_v26  ;;  %v1407_v38 = vmul.f32 %v1023_v27, %v1023_v27  ;;  %v269_v26 = vld [vmem:[#allocation3 + $0x6a0] sm:$0xff] }
 0x191   :  { %v653_v27 = vld [vmem:[#allocation6 + $0x6a0] sm:$0xff] }
 0x192   :  { %v1778_v48 = vadd.f32 %v1777_v43, %v1394_v37  ;;  %v1025_v37 = vsub.f32 %v257_v30, %v641_v31  ;;  %v1408_v43 = vmul.f32 %v1024_v32, %v1024_v32  ;;  %v270_v31 = vld [vmem:[#allocation3 + $0x6a8] sm:$0xff] }
 0x193   :  { %v654_v32 = vld [vmem:[#allocation6 + $0x6a8] sm:$0xff] }
 0x194   :  { %v1779_v53 = vadd.f32 %v1778_v48, %v1395_v42  ;;  %v1026_v42 = vsub.f32 %v258_v35, %v642_v36  ;;  %v1409_v48 = vmul.f32 %v1025_v37, %v1025_v37  ;;  %v271_v36 = vld [vmem:[#allocation3 + $0x6b0] sm:$0xff] }
 0x195   :  { %v655_v37 = vld [vmem:[#allocation6 + $0x6b0] sm:$0xff] }
 0x196   :  { %v1780_v58 = vadd.f32 %v1779_v53, %v1396_v47  ;;  %v1027_v47 = vsub.f32 %v259_v40, %v643_v41  ;;  %v1410_v53 = vmul.f32 %v1026_v42, %v1026_v42  ;;  %v272_v41 = vld [vmem:[#allocation3 + $0x6b8] sm:$0xff] }
 0x197   :  { %v656_v42 = vld [vmem:[#allocation6 + $0x6b8] sm:$0xff] }
 0x198   :  { %v1781_v63 = vadd.f32 %v1780_v58, %v1397_v52  ;;  %v1028_v52 = vsub.f32 %v260_v45, %v644_v46  ;;  %v1411_v58 = vmul.f32 %v1027_v47, %v1027_v47  ;;  %v273_v46 = vld [vmem:[#allocation3 + $0x6c0] sm:$0xff] }
 0x199   :  { %v657_v47 = vld [vmem:[#allocation6 + $0x6c0] sm:$0xff] }
 0x19a   :  { %v1782_v4 = vadd.f32 %v1781_v63, %v1398_v57  ;;  %v1029_v57 = vsub.f32 %v261_v50, %v645_v51  ;;  %v1412_v63 = vmul.f32 %v1028_v52, %v1028_v52  ;;  %v274_v51 = vld [vmem:[#allocation3 + $0x6c8] sm:$0xff] }
 0x19b   :  { %v658_v52 = vld [vmem:[#allocation6 + $0x6c8] sm:$0xff] }
 0x19c   :  { %v1783_v9 = vadd.f32 %v1782_v4, %v1399_v62  ;;  %v1030_v62 = vsub.f32 %v262_v55, %v646_v56  ;;  %v1413_v4 = vmul.f32 %v1029_v57, %v1029_v57  ;;  %v275_v56 = vld [vmem:[#allocation3 + $0x6d0] sm:$0xff] }
 0x19d   :  { %v659_v57 = vld [vmem:[#allocation6 + $0x6d0] sm:$0xff] }
 0x19e   :  { %v1784_v14 = vadd.f32 %v1783_v9, %v1400_v3  ;;  %v1031_v3 = vsub.f32 %v263_v60, %v647_v61  ;;  %v1414_v9 = vmul.f32 %v1030_v62, %v1030_v62  ;;  %v276_v61 = vld [vmem:[#allocation3 + $0x6d8] sm:$0xff] }
 0x19f   :  { %v660_v62 = vld [vmem:[#allocation6 + $0x6d8] sm:$0xff] }
 0x1a0   :  { %v1785_v19 = vadd.f32 %v1784_v14, %v1401_v8  ;;  %v1032_v8 = vsub.f32 %v264_v1, %v648_v2  ;;  %v1415_v14 = vmul.f32 %v1031_v3, %v1031_v3  ;;  %v277_v2 = vld [vmem:[#allocation3 + $0x6e0] sm:$0xff] }
 0x1a1   :  { %v661_v3 = vld [vmem:[#allocation6 + $0x6e0] sm:$0xff] }
 0x1a2   :  { %v1786_v24 = vadd.f32 %v1785_v19, %v1402_v13  ;;  %v1033_v13 = vsub.f32 %v265_v6, %v649_v7  ;;  %v1416_v19 = vmul.f32 %v1032_v8, %v1032_v8  ;;  %v278_v7 = vld [vmem:[#allocation3 + $0x6e8] sm:$0xff] }
 0x1a3   :  { %v662_v8 = vld [vmem:[#allocation6 + $0x6e8] sm:$0xff] }
 0x1a4   :  { %v1787_v29 = vadd.f32 %v1786_v24, %v1403_v18  ;;  %v1034_v18 = vsub.f32 %v266_v11, %v650_v12  ;;  %v1417_v24 = vmul.f32 %v1033_v13, %v1033_v13  ;;  %v279_v12 = vld [vmem:[#allocation3 + $0x6f0] sm:$0xff] }
 0x1a5   :  { %v663_v13 = vld [vmem:[#allocation6 + $0x6f0] sm:$0xff] }
 0x1a6   :  { %v1788_v34 = vadd.f32 %v1787_v29, %v1404_v23  ;;  %v1035_v23 = vsub.f32 %v267_v16, %v651_v17  ;;  %v1418_v29 = vmul.f32 %v1034_v18, %v1034_v18  ;;  %v280_v17 = vld [vmem:[#allocation3 + $0x6f8] sm:$0xff] }
 0x1a7   :  { %v664_v18 = vld [vmem:[#allocation6 + $0x6f8] sm:$0xff] }
 0x1a8   :  { %v1789_v39 = vadd.f32 %v1788_v34, %v1405_v28  ;;  %v1036_v28 = vsub.f32 %v268_v21, %v652_v22  ;;  %v1419_v34 = vmul.f32 %v1035_v23, %v1035_v23  ;;  %v281_v22 = vld [vmem:[#allocation3 + $0x700] sm:$0xff] }
 0x1a9   :  { %v665_v23 = vld [vmem:[#allocation6 + $0x700] sm:$0xff] }
 0x1aa   :  { %v1790_v44 = vadd.f32 %v1789_v39, %v1406_v33  ;;  %v1037_v33 = vsub.f32 %v269_v26, %v653_v27  ;;  %v1420_v39 = vmul.f32 %v1036_v28, %v1036_v28  ;;  %v282_v27 = vld [vmem:[#allocation3 + $0x708] sm:$0xff] }
 0x1ab   :  { %v666_v28 = vld [vmem:[#allocation6 + $0x708] sm:$0xff] }
 0x1ac   :  { %v1791_v49 = vadd.f32 %v1790_v44, %v1407_v38  ;;  %v1038_v38 = vsub.f32 %v270_v31, %v654_v32  ;;  %v1421_v44 = vmul.f32 %v1037_v33, %v1037_v33  ;;  %v283_v32 = vld [vmem:[#allocation3 + $0x710] sm:$0xff] }
 0x1ad   :  { %v667_v33 = vld [vmem:[#allocation6 + $0x710] sm:$0xff] }
 0x1ae   :  { %v1792_v54 = vadd.f32 %v1791_v49, %v1408_v43  ;;  %v1039_v43 = vsub.f32 %v271_v36, %v655_v37  ;;  %v1422_v49 = vmul.f32 %v1038_v38, %v1038_v38  ;;  %v284_v37 = vld [vmem:[#allocation3 + $0x718] sm:$0xff] }
 0x1af   :  { %v668_v38 = vld [vmem:[#allocation6 + $0x718] sm:$0xff] }
 0x1b0   :  { %v1793_v59 = vadd.f32 %v1792_v54, %v1409_v48  ;;  %v1040_v48 = vsub.f32 %v272_v41, %v656_v42  ;;  %v1423_v54 = vmul.f32 %v1039_v43, %v1039_v43  ;;  %v285_v42 = vld [vmem:[#allocation3 + $0x720] sm:$0xff] }
 0x1b1   :  { %v669_v43 = vld [vmem:[#allocation6 + $0x720] sm:$0xff] }
 0x1b2   :  { %v1794_v0 = vadd.f32 %v1793_v59, %v1410_v53  ;;  %v1041_v53 = vsub.f32 %v273_v46, %v657_v47  ;;  %v1424_v59 = vmul.f32 %v1040_v48, %v1040_v48  ;;  %v286_v47 = vld [vmem:[#allocation3 + $0x728] sm:$0xff] }
 0x1b3   :  { %v670_v48 = vld [vmem:[#allocation6 + $0x728] sm:$0xff] }
 0x1b4   :  { %v1795_v5 = vadd.f32 %v1794_v0, %v1411_v58  ;;  %v1042_v58 = vsub.f32 %v274_v51, %v658_v52  ;;  %v1425_v0 = vmul.f32 %v1041_v53, %v1041_v53  ;;  %v287_v52 = vld [vmem:[#allocation3 + $0x730] sm:$0xff] }
 0x1b5   :  { %v671_v53 = vld [vmem:[#allocation6 + $0x730] sm:$0xff] }
 0x1b6   :  { %v1796_v10 = vadd.f32 %v1795_v5, %v1412_v63  ;;  %v1043_v63 = vsub.f32 %v275_v56, %v659_v57  ;;  %v1426_v5 = vmul.f32 %v1042_v58, %v1042_v58  ;;  %v288_v57 = vld [vmem:[#allocation3 + $0x738] sm:$0xff] }
 0x1b7   :  { %v672_v58 = vld [vmem:[#allocation6 + $0x738] sm:$0xff] }
 0x1b8   :  { %v1797_v15 = vadd.f32 %v1796_v10, %v1413_v4  ;;  %v1044_v4 = vsub.f32 %v276_v61, %v660_v62  ;;  %v1427_v10 = vmul.f32 %v1043_v63, %v1043_v63  ;;  %v289_v62 = vld [vmem:[#allocation3 + $0x740] sm:$0xff] }
 0x1b9   :  { %v673_v63 = vld [vmem:[#allocation6 + $0x740] sm:$0xff] }
 0x1ba   :  { %v1798_v20 = vadd.f32 %v1797_v15, %v1414_v9  ;;  %v1045_v9 = vsub.f32 %v277_v2, %v661_v3  ;;  %v1428_v15 = vmul.f32 %v1044_v4, %v1044_v4  ;;  %v290_v3 = vld [vmem:[#allocation3 + $0x748] sm:$0xff] }
 0x1bb   :  { %v674_v4 = vld [vmem:[#allocation6 + $0x748] sm:$0xff] }
 0x1bc   :  { %v1799_v25 = vadd.f32 %v1798_v20, %v1415_v14  ;;  %v1046_v14 = vsub.f32 %v278_v7, %v662_v8  ;;  %v1429_v20 = vmul.f32 %v1045_v9, %v1045_v9  ;;  %v291_v8 = vld [vmem:[#allocation3 + $0x750] sm:$0xff] }
 0x1bd   :  { %v675_v9 = vld [vmem:[#allocation6 + $0x750] sm:$0xff] }
 0x1be   :  { %v1800_v30 = vadd.f32 %v1799_v25, %v1416_v19  ;;  %v1047_v19 = vsub.f32 %v279_v12, %v663_v13  ;;  %v1430_v25 = vmul.f32 %v1046_v14, %v1046_v14  ;;  %v292_v13 = vld [vmem:[#allocation3 + $0x758] sm:$0xff] }
 0x1bf   :  { %v676_v14 = vld [vmem:[#allocation6 + $0x758] sm:$0xff] }
 0x1c0   :  { %v1801_v35 = vadd.f32 %v1800_v30, %v1417_v24  ;;  %v1048_v24 = vsub.f32 %v280_v17, %v664_v18  ;;  %v1431_v30 = vmul.f32 %v1047_v19, %v1047_v19  ;;  %v293_v18 = vld [vmem:[#allocation3 + $0x760] sm:$0xff] }
 0x1c1   :  { %v677_v19 = vld [vmem:[#allocation6 + $0x760] sm:$0xff] }
 0x1c2   :  { %v1802_v40 = vadd.f32 %v1801_v35, %v1418_v29  ;;  %v1049_v29 = vsub.f32 %v281_v22, %v665_v23  ;;  %v1432_v35 = vmul.f32 %v1048_v24, %v1048_v24  ;;  %v294_v23 = vld [vmem:[#allocation3 + $0x768] sm:$0xff] }
 0x1c3   :  { %v678_v24 = vld [vmem:[#allocation6 + $0x768] sm:$0xff] }
 0x1c4   :  { %v1803_v45 = vadd.f32 %v1802_v40, %v1419_v34  ;;  %v1050_v34 = vsub.f32 %v282_v27, %v666_v28  ;;  %v1433_v40 = vmul.f32 %v1049_v29, %v1049_v29  ;;  %v295_v28 = vld [vmem:[#allocation3 + $0x770] sm:$0xff] }
 0x1c5   :  { %v679_v29 = vld [vmem:[#allocation6 + $0x770] sm:$0xff] }
 0x1c6   :  { %v1804_v50 = vadd.f32 %v1803_v45, %v1420_v39  ;;  %v1051_v39 = vsub.f32 %v283_v32, %v667_v33  ;;  %v1434_v45 = vmul.f32 %v1050_v34, %v1050_v34  ;;  %v296_v33 = vld [vmem:[#allocation3 + $0x778] sm:$0xff] }
 0x1c7   :  { %v680_v34 = vld [vmem:[#allocation6 + $0x778] sm:$0xff] }
 0x1c8   :  { %v1805_v55 = vadd.f32 %v1804_v50, %v1421_v44  ;;  %v1052_v44 = vsub.f32 %v284_v37, %v668_v38  ;;  %v1435_v50 = vmul.f32 %v1051_v39, %v1051_v39  ;;  %v297_v38 = vld [vmem:[#allocation3 + $0x780] sm:$0xff] }
 0x1c9   :  { %v681_v39 = vld [vmem:[#allocation6 + $0x780] sm:$0xff] }
 0x1ca   :  { %v1806_v60 = vadd.f32 %v1805_v55, %v1422_v49  ;;  %v1053_v49 = vsub.f32 %v285_v42, %v669_v43  ;;  %v1436_v55 = vmul.f32 %v1052_v44, %v1052_v44  ;;  %v298_v43 = vld [vmem:[#allocation3 + $0x788] sm:$0xff] }
 0x1cb   :  { %v682_v44 = vld [vmem:[#allocation6 + $0x788] sm:$0xff] }
 0x1cc   :  { %v1807_v1 = vadd.f32 %v1806_v60, %v1423_v54  ;;  %v1054_v54 = vsub.f32 %v286_v47, %v670_v48  ;;  %v1437_v60 = vmul.f32 %v1053_v49, %v1053_v49  ;;  %v299_v48 = vld [vmem:[#allocation3 + $0x790] sm:$0xff] }
 0x1cd   :  { %v683_v49 = vld [vmem:[#allocation6 + $0x790] sm:$0xff] }
 0x1ce   :  { %v1808_v6 = vadd.f32 %v1807_v1, %v1424_v59  ;;  %v1055_v59 = vsub.f32 %v287_v52, %v671_v53  ;;  %v1438_v1 = vmul.f32 %v1054_v54, %v1054_v54  ;;  %v300_v53 = vld [vmem:[#allocation3 + $0x798] sm:$0xff] }
 0x1cf   :  { %v684_v54 = vld [vmem:[#allocation6 + $0x798] sm:$0xff] }
 0x1d0   :  { %v1809_v11 = vadd.f32 %v1808_v6, %v1425_v0  ;;  %v1056_v0 = vsub.f32 %v288_v57, %v672_v58  ;;  %v1439_v6 = vmul.f32 %v1055_v59, %v1055_v59  ;;  %v301_v58 = vld [vmem:[#allocation3 + $0x7a0] sm:$0xff] }
 0x1d1   :  { %v685_v59 = vld [vmem:[#allocation6 + $0x7a0] sm:$0xff] }
 0x1d2   :  { %v1810_v16 = vadd.f32 %v1809_v11, %v1426_v5  ;;  %v1057_v5 = vsub.f32 %v289_v62, %v673_v63  ;;  %v1440_v11 = vmul.f32 %v1056_v0, %v1056_v0  ;;  %v302_v63 = vld [vmem:[#allocation3 + $0x7a8] sm:$0xff] }
 0x1d3   :  { %v686_v0 = vld [vmem:[#allocation6 + $0x7a8] sm:$0xff] }
 0x1d4   :  { %v1811_v21 = vadd.f32 %v1810_v16, %v1427_v10  ;;  %v1058_v10 = vsub.f32 %v290_v3, %v674_v4  ;;  %v1441_v16 = vmul.f32 %v1057_v5, %v1057_v5  ;;  %v303_v4 = vld [vmem:[#allocation3 + $0x7b0] sm:$0xff] }
 0x1d5   :  { %v687_v5 = vld [vmem:[#allocation6 + $0x7b0] sm:$0xff] }
 0x1d6   :  { %v1812_v26 = vadd.f32 %v1811_v21, %v1428_v15  ;;  %v1059_v15 = vsub.f32 %v291_v8, %v675_v9  ;;  %v1442_v21 = vmul.f32 %v1058_v10, %v1058_v10  ;;  %v304_v9 = vld [vmem:[#allocation3 + $0x7b8] sm:$0xff] }
 0x1d7   :  { %v688_v10 = vld [vmem:[#allocation6 + $0x7b8] sm:$0xff] }
 0x1d8   :  { %v1813_v31 = vadd.f32 %v1812_v26, %v1429_v20  ;;  %v1060_v20 = vsub.f32 %v292_v13, %v676_v14  ;;  %v1443_v26 = vmul.f32 %v1059_v15, %v1059_v15  ;;  %v305_v14 = vld [vmem:[#allocation3 + $0x7c0] sm:$0xff] }
 0x1d9   :  { %v689_v15 = vld [vmem:[#allocation6 + $0x7c0] sm:$0xff] }
 0x1da   :  { %v1814_v36 = vadd.f32 %v1813_v31, %v1430_v25  ;;  %v1061_v25 = vsub.f32 %v293_v18, %v677_v19  ;;  %v1444_v31 = vmul.f32 %v1060_v20, %v1060_v20  ;;  %v306_v19 = vld [vmem:[#allocation3 + $0x7c8] sm:$0xff] }
 0x1db   :  { %v690_v20 = vld [vmem:[#allocation6 + $0x7c8] sm:$0xff] }
 0x1dc   :  { %v1815_v41 = vadd.f32 %v1814_v36, %v1431_v30  ;;  %v1062_v30 = vsub.f32 %v294_v23, %v678_v24  ;;  %v1445_v36 = vmul.f32 %v1061_v25, %v1061_v25  ;;  %v307_v24 = vld [vmem:[#allocation3 + $0x7d0] sm:$0xff] }
 0x1dd   :  { %v691_v25 = vld [vmem:[#allocation6 + $0x7d0] sm:$0xff] }
 0x1de   :  { %v1816_v46 = vadd.f32 %v1815_v41, %v1432_v35  ;;  %v1063_v35 = vsub.f32 %v295_v28, %v679_v29  ;;  %v1446_v41 = vmul.f32 %v1062_v30, %v1062_v30  ;;  %v308_v29 = vld [vmem:[#allocation3 + $0x7d8] sm:$0xff] }
 0x1df   :  { %v692_v30 = vld [vmem:[#allocation6 + $0x7d8] sm:$0xff] }
 0x1e0   :  { %v1817_v51 = vadd.f32 %v1816_v46, %v1433_v40  ;;  %v1064_v40 = vsub.f32 %v296_v33, %v680_v34  ;;  %v1447_v46 = vmul.f32 %v1063_v35, %v1063_v35  ;;  %v309_v34 = vld [vmem:[#allocation3 + $0x7e0] sm:$0xff] }
 0x1e1   :  { %v693_v35 = vld [vmem:[#allocation6 + $0x7e0] sm:$0xff] }
 0x1e2   :  { %v1818_v56 = vadd.f32 %v1817_v51, %v1434_v45  ;;  %v1065_v45 = vsub.f32 %v297_v38, %v681_v39  ;;  %v1448_v51 = vmul.f32 %v1064_v40, %v1064_v40  ;;  %v310_v39 = vld [vmem:[#allocation3 + $0x7e8] sm:$0xff] }
 0x1e3   :  { %v694_v40 = vld [vmem:[#allocation6 + $0x7e8] sm:$0xff] }
 0x1e4   :  { %v1819_v61 = vadd.f32 %v1818_v56, %v1435_v50  ;;  %v1066_v50 = vsub.f32 %v298_v43, %v682_v44  ;;  %v1449_v56 = vmul.f32 %v1065_v45, %v1065_v45  ;;  %v311_v44 = vld [vmem:[#allocation3 + $0x7f0] sm:$0xff] }
 0x1e5   :  { %v695_v45 = vld [vmem:[#allocation6 + $0x7f0] sm:$0xff] }
 0x1e6   :  { %v1820_v2 = vadd.f32 %v1819_v61, %v1436_v55  ;;  %v1067_v55 = vsub.f32 %v299_v48, %v683_v49  ;;  %v1450_v61 = vmul.f32 %v1066_v50, %v1066_v50  ;;  %v312_v49 = vld [vmem:[#allocation3 + $0x7f8] sm:$0xff] }
 0x1e7   :  { %v696_v50 = vld [vmem:[#allocation6 + $0x7f8] sm:$0xff] }
 0x1e8   :  { %v1821_v7 = vadd.f32 %v1820_v2, %v1437_v60  ;;  %v1068_v60 = vsub.f32 %v300_v53, %v684_v54  ;;  %v1451_v2 = vmul.f32 %v1067_v55, %v1067_v55  ;;  %v313_v54 = vld [vmem:[#allocation3 + $0x800] sm:$0xff] }
 0x1e9   :  { %v697_v55 = vld [vmem:[#allocation6 + $0x800] sm:$0xff] }
 0x1ea   :  { %v1822_v12 = vadd.f32 %v1821_v7, %v1438_v1  ;;  %v1069_v1 = vsub.f32 %v301_v58, %v685_v59  ;;  %v1452_v7 = vmul.f32 %v1068_v60, %v1068_v60  ;;  %v314_v59 = vld [vmem:[#allocation3 + $0x808] sm:$0xff] }
 0x1eb   :  { %v698_v60 = vld [vmem:[#allocation6 + $0x808] sm:$0xff] }
 0x1ec   :  { %v1823_v17 = vadd.f32 %v1822_v12, %v1439_v6  ;;  %v1070_v6 = vsub.f32 %v302_v63, %v686_v0  ;;  %v1453_v12 = vmul.f32 %v1069_v1, %v1069_v1  ;;  %v315_v0 = vld [vmem:[#allocation3 + $0x810] sm:$0xff] }
 0x1ed   :  { %v699_v1 = vld [vmem:[#allocation6 + $0x810] sm:$0xff] }
 0x1ee   :  { %v1824_v22 = vadd.f32 %v1823_v17, %v1440_v11  ;;  %v1071_v11 = vsub.f32 %v303_v4, %v687_v5  ;;  %v1454_v17 = vmul.f32 %v1070_v6, %v1070_v6  ;;  %v316_v5 = vld [vmem:[#allocation3 + $0x818] sm:$0xff] }
 0x1ef   :  { %v700_v6 = vld [vmem:[#allocation6 + $0x818] sm:$0xff] }
 0x1f0   :  { %v1825_v27 = vadd.f32 %v1824_v22, %v1441_v16  ;;  %v1072_v16 = vsub.f32 %v304_v9, %v688_v10  ;;  %v1455_v22 = vmul.f32 %v1071_v11, %v1071_v11  ;;  %v317_v10 = vld [vmem:[#allocation3 + $0x820] sm:$0xff] }
 0x1f1   :  { %v701_v11 = vld [vmem:[#allocation6 + $0x820] sm:$0xff] }
 0x1f2   :  { %v1826_v32 = vadd.f32 %v1825_v27, %v1442_v21  ;;  %v1073_v21 = vsub.f32 %v305_v14, %v689_v15  ;;  %v1456_v27 = vmul.f32 %v1072_v16, %v1072_v16  ;;  %v318_v15 = vld [vmem:[#allocation3 + $0x828] sm:$0xff] }
 0x1f3   :  { %v702_v16 = vld [vmem:[#allocation6 + $0x828] sm:$0xff] }
 0x1f4   :  { %v1827_v37 = vadd.f32 %v1826_v32, %v1443_v26  ;;  %v1074_v26 = vsub.f32 %v306_v19, %v690_v20  ;;  %v1457_v32 = vmul.f32 %v1073_v21, %v1073_v21  ;;  %v319_v20 = vld [vmem:[#allocation3 + $0x830] sm:$0xff] }
 0x1f5   :  { %v703_v21 = vld [vmem:[#allocation6 + $0x830] sm:$0xff] }
 0x1f6   :  { %v1828_v42 = vadd.f32 %v1827_v37, %v1444_v31  ;;  %v1075_v31 = vsub.f32 %v307_v24, %v691_v25  ;;  %v1458_v37 = vmul.f32 %v1074_v26, %v1074_v26  ;;  %v320_v25 = vld [vmem:[#allocation3 + $0x838] sm:$0xff] }
 0x1f7   :  { %v704_v26 = vld [vmem:[#allocation6 + $0x838] sm:$0xff] }
 0x1f8   :  { %v1829_v47 = vadd.f32 %v1828_v42, %v1445_v36  ;;  %v1076_v36 = vsub.f32 %v308_v29, %v692_v30  ;;  %v1459_v42 = vmul.f32 %v1075_v31, %v1075_v31  ;;  %v321_v30 = vld [vmem:[#allocation3 + $0x840] sm:$0xff] }
 0x1f9   :  { %v705_v31 = vld [vmem:[#allocation6 + $0x840] sm:$0xff] }
 0x1fa   :  { %v1830_v52 = vadd.f32 %v1829_v47, %v1446_v41  ;;  %v1077_v41 = vsub.f32 %v309_v34, %v693_v35  ;;  %v1460_v47 = vmul.f32 %v1076_v36, %v1076_v36  ;;  %v322_v35 = vld [vmem:[#allocation3 + $0x848] sm:$0xff] }
 0x1fb   :  { %v706_v36 = vld [vmem:[#allocation6 + $0x848] sm:$0xff] }
 0x1fc   :  { %v1831_v57 = vadd.f32 %v1830_v52, %v1447_v46  ;;  %v1078_v46 = vsub.f32 %v310_v39, %v694_v40  ;;  %v1461_v52 = vmul.f32 %v1077_v41, %v1077_v41  ;;  %v323_v40 = vld [vmem:[#allocation3 + $0x850] sm:$0xff] }
 0x1fd   :  { %v707_v41 = vld [vmem:[#allocation6 + $0x850] sm:$0xff] }
 0x1fe   :  { %v1832_v62 = vadd.f32 %v1831_v57, %v1448_v51  ;;  %v1079_v51 = vsub.f32 %v311_v44, %v695_v45  ;;  %v1462_v57 = vmul.f32 %v1078_v46, %v1078_v46  ;;  %v324_v45 = vld [vmem:[#allocation3 + $0x858] sm:$0xff] }
 0x1ff   :  { %v708_v46 = vld [vmem:[#allocation6 + $0x858] sm:$0xff] }
 0x200   :  { %v1833_v3 = vadd.f32 %v1832_v62, %v1449_v56  ;;  %v1080_v56 = vsub.f32 %v312_v49, %v696_v50  ;;  %v1463_v62 = vmul.f32 %v1079_v51, %v1079_v51  ;;  %v325_v50 = vld [vmem:[#allocation3 + $0x860] sm:$0xff] }
 0x201   :  { %v709_v51 = vld [vmem:[#allocation6 + $0x860] sm:$0xff] }
 0x202   :  { %v1834_v8 = vadd.f32 %v1833_v3, %v1450_v61  ;;  %v1081_v61 = vsub.f32 %v313_v54, %v697_v55  ;;  %v1464_v3 = vmul.f32 %v1080_v56, %v1080_v56  ;;  %v326_v55 = vld [vmem:[#allocation3 + $0x868] sm:$0xff] }
 0x203   :  { %v710_v56 = vld [vmem:[#allocation6 + $0x868] sm:$0xff] }
 0x204   :  { %v1835_v13 = vadd.f32 %v1834_v8, %v1451_v2  ;;  %v1082_v2 = vsub.f32 %v314_v59, %v698_v60  ;;  %v1465_v8 = vmul.f32 %v1081_v61, %v1081_v61  ;;  %v327_v60 = vld [vmem:[#allocation3 + $0x870] sm:$0xff] }
 0x205   :  { %v711_v61 = vld [vmem:[#allocation6 + $0x870] sm:$0xff] }
 0x206   :  { %v1836_v18 = vadd.f32 %v1835_v13, %v1452_v7  ;;  %v1083_v7 = vsub.f32 %v315_v0, %v699_v1  ;;  %v1466_v13 = vmul.f32 %v1082_v2, %v1082_v2  ;;  %v328_v1 = vld [vmem:[#allocation3 + $0x878] sm:$0xff] }
 0x207   :  { %v712_v2 = vld [vmem:[#allocation6 + $0x878] sm:$0xff] }
 0x208   :  { %v1837_v23 = vadd.f32 %v1836_v18, %v1453_v12  ;;  %v1084_v12 = vsub.f32 %v316_v5, %v700_v6  ;;  %v1467_v18 = vmul.f32 %v1083_v7, %v1083_v7  ;;  %v329_v6 = vld [vmem:[#allocation3 + $0x880] sm:$0xff] }
 0x209   :  { %v713_v7 = vld [vmem:[#allocation6 + $0x880] sm:$0xff] }
 0x20a   :  { %v1838_v28 = vadd.f32 %v1837_v23, %v1454_v17  ;;  %v1085_v17 = vsub.f32 %v317_v10, %v701_v11  ;;  %v1468_v23 = vmul.f32 %v1084_v12, %v1084_v12  ;;  %v330_v11 = vld [vmem:[#allocation3 + $0x888] sm:$0xff] }
 0x20b   :  { %v714_v12 = vld [vmem:[#allocation6 + $0x888] sm:$0xff] }
 0x20c   :  { %v1839_v33 = vadd.f32 %v1838_v28, %v1455_v22  ;;  %v1086_v22 = vsub.f32 %v318_v15, %v702_v16  ;;  %v1469_v28 = vmul.f32 %v1085_v17, %v1085_v17  ;;  %v331_v16 = vld [vmem:[#allocation3 + $0x890] sm:$0xff] }
 0x20d   :  { %v715_v17 = vld [vmem:[#allocation6 + $0x890] sm:$0xff] }
 0x20e   :  { %v1840_v38 = vadd.f32 %v1839_v33, %v1456_v27  ;;  %v1087_v27 = vsub.f32 %v319_v20, %v703_v21  ;;  %v1470_v33 = vmul.f32 %v1086_v22, %v1086_v22  ;;  %v332_v21 = vld [vmem:[#allocation3 + $0x898] sm:$0xff] }
 0x20f   :  { %v716_v22 = vld [vmem:[#allocation6 + $0x898] sm:$0xff] }
 0x210   :  { %v1841_v43 = vadd.f32 %v1840_v38, %v1457_v32  ;;  %v1088_v32 = vsub.f32 %v320_v25, %v704_v26  ;;  %v1471_v38 = vmul.f32 %v1087_v27, %v1087_v27  ;;  %v333_v26 = vld [vmem:[#allocation3 + $0x8a0] sm:$0xff] }
 0x211   :  { %v717_v27 = vld [vmem:[#allocation6 + $0x8a0] sm:$0xff] }
 0x212   :  { %v1842_v48 = vadd.f32 %v1841_v43, %v1458_v37  ;;  %v1089_v37 = vsub.f32 %v321_v30, %v705_v31  ;;  %v1472_v43 = vmul.f32 %v1088_v32, %v1088_v32  ;;  %v334_v31 = vld [vmem:[#allocation3 + $0x8a8] sm:$0xff] }
 0x213   :  { %v718_v32 = vld [vmem:[#allocation6 + $0x8a8] sm:$0xff] }
 0x214   :  { %v1843_v53 = vadd.f32 %v1842_v48, %v1459_v42  ;;  %v1090_v42 = vsub.f32 %v322_v35, %v706_v36  ;;  %v1473_v48 = vmul.f32 %v1089_v37, %v1089_v37  ;;  %v335_v36 = vld [vmem:[#allocation3 + $0x8b0] sm:$0xff] }
 0x215   :  { %v719_v37 = vld [vmem:[#allocation6 + $0x8b0] sm:$0xff] }
 0x216   :  { %v1844_v58 = vadd.f32 %v1843_v53, %v1460_v47  ;;  %v1091_v47 = vsub.f32 %v323_v40, %v707_v41  ;;  %v1474_v53 = vmul.f32 %v1090_v42, %v1090_v42  ;;  %v336_v41 = vld [vmem:[#allocation3 + $0x8b8] sm:$0xff] }
 0x217   :  { %v720_v42 = vld [vmem:[#allocation6 + $0x8b8] sm:$0xff] }
 0x218   :  { %v1845_v63 = vadd.f32 %v1844_v58, %v1461_v52  ;;  %v1092_v52 = vsub.f32 %v324_v45, %v708_v46  ;;  %v1475_v58 = vmul.f32 %v1091_v47, %v1091_v47  ;;  %v337_v46 = vld [vmem:[#allocation3 + $0x8c0] sm:$0xff] }
 0x219   :  { %v721_v47 = vld [vmem:[#allocation6 + $0x8c0] sm:$0xff] }
 0x21a   :  { %v1846_v4 = vadd.f32 %v1845_v63, %v1462_v57  ;;  %v1093_v57 = vsub.f32 %v325_v50, %v709_v51  ;;  %v1476_v63 = vmul.f32 %v1092_v52, %v1092_v52  ;;  %v338_v51 = vld [vmem:[#allocation3 + $0x8c8] sm:$0xff] }
 0x21b   :  { %v722_v52 = vld [vmem:[#allocation6 + $0x8c8] sm:$0xff] }
 0x21c   :  { %v1847_v9 = vadd.f32 %v1846_v4, %v1463_v62  ;;  %v1094_v62 = vsub.f32 %v326_v55, %v710_v56  ;;  %v1477_v4 = vmul.f32 %v1093_v57, %v1093_v57  ;;  %v339_v56 = vld [vmem:[#allocation3 + $0x8d0] sm:$0xff] }
 0x21d   :  { %v723_v57 = vld [vmem:[#allocation6 + $0x8d0] sm:$0xff] }
 0x21e   :  { %v1848_v14 = vadd.f32 %v1847_v9, %v1464_v3  ;;  %v1095_v3 = vsub.f32 %v327_v60, %v711_v61  ;;  %v1478_v9 = vmul.f32 %v1094_v62, %v1094_v62  ;;  %v340_v61 = vld [vmem:[#allocation3 + $0x8d8] sm:$0xff] }
 0x21f   :  { %v724_v62 = vld [vmem:[#allocation6 + $0x8d8] sm:$0xff] }
 0x220   :  { %v1849_v19 = vadd.f32 %v1848_v14, %v1465_v8  ;;  %v1096_v8 = vsub.f32 %v328_v1, %v712_v2  ;;  %v1479_v14 = vmul.f32 %v1095_v3, %v1095_v3  ;;  %v341_v2 = vld [vmem:[#allocation3 + $0x8e0] sm:$0xff] }
 0x221   :  { %v725_v3 = vld [vmem:[#allocation6 + $0x8e0] sm:$0xff] }
 0x222   :  { %v1850_v24 = vadd.f32 %v1849_v19, %v1466_v13  ;;  %v1097_v13 = vsub.f32 %v329_v6, %v713_v7  ;;  %v1480_v19 = vmul.f32 %v1096_v8, %v1096_v8  ;;  %v342_v7 = vld [vmem:[#allocation3 + $0x8e8] sm:$0xff] }
 0x223   :  { %v726_v8 = vld [vmem:[#allocation6 + $0x8e8] sm:$0xff] }
 0x224   :  { %v1851_v29 = vadd.f32 %v1850_v24, %v1467_v18  ;;  %v1098_v18 = vsub.f32 %v330_v11, %v714_v12  ;;  %v1481_v24 = vmul.f32 %v1097_v13, %v1097_v13  ;;  %v343_v12 = vld [vmem:[#allocation3 + $0x8f0] sm:$0xff] }
 0x225   :  { %v727_v13 = vld [vmem:[#allocation6 + $0x8f0] sm:$0xff] }
 0x226   :  { %v1852_v34 = vadd.f32 %v1851_v29, %v1468_v23  ;;  %v1099_v23 = vsub.f32 %v331_v16, %v715_v17  ;;  %v1482_v29 = vmul.f32 %v1098_v18, %v1098_v18  ;;  %v344_v17 = vld [vmem:[#allocation3 + $0x8f8] sm:$0xff] }
 0x227   :  { %v728_v18 = vld [vmem:[#allocation6 + $0x8f8] sm:$0xff] }
 0x228   :  { %v1853_v39 = vadd.f32 %v1852_v34, %v1469_v28  ;;  %v1100_v28 = vsub.f32 %v332_v21, %v716_v22  ;;  %v1483_v34 = vmul.f32 %v1099_v23, %v1099_v23  ;;  %v345_v22 = vld [vmem:[#allocation3 + $0x900] sm:$0xff] }
 0x229   :  { %v729_v23 = vld [vmem:[#allocation6 + $0x900] sm:$0xff] }
 0x22a   :  { %v1854_v44 = vadd.f32 %v1853_v39, %v1470_v33  ;;  %v1101_v33 = vsub.f32 %v333_v26, %v717_v27  ;;  %v1484_v39 = vmul.f32 %v1100_v28, %v1100_v28  ;;  %v346_v27 = vld [vmem:[#allocation3 + $0x908] sm:$0xff] }
 0x22b   :  { %v730_v28 = vld [vmem:[#allocation6 + $0x908] sm:$0xff] }
 0x22c   :  { %v1855_v49 = vadd.f32 %v1854_v44, %v1471_v38  ;;  %v1102_v38 = vsub.f32 %v334_v31, %v718_v32  ;;  %v1485_v44 = vmul.f32 %v1101_v33, %v1101_v33  ;;  %v347_v32 = vld [vmem:[#allocation3 + $0x910] sm:$0xff] }
 0x22d   :  { %v731_v33 = vld [vmem:[#allocation6 + $0x910] sm:$0xff] }
 0x22e   :  { %v1856_v54 = vadd.f32 %v1855_v49, %v1472_v43  ;;  %v1103_v43 = vsub.f32 %v335_v36, %v719_v37  ;;  %v1486_v49 = vmul.f32 %v1102_v38, %v1102_v38  ;;  %v348_v37 = vld [vmem:[#allocation3 + $0x918] sm:$0xff] }
 0x22f   :  { %v732_v38 = vld [vmem:[#allocation6 + $0x918] sm:$0xff] }
 0x230   :  { %v1857_v59 = vadd.f32 %v1856_v54, %v1473_v48  ;;  %v1104_v48 = vsub.f32 %v336_v41, %v720_v42  ;;  %v1487_v54 = vmul.f32 %v1103_v43, %v1103_v43  ;;  %v349_v42 = vld [vmem:[#allocation3 + $0x920] sm:$0xff] }
 0x231   :  { %v733_v43 = vld [vmem:[#allocation6 + $0x920] sm:$0xff] }
 0x232   :  { %v1858_v0 = vadd.f32 %v1857_v59, %v1474_v53  ;;  %v1105_v53 = vsub.f32 %v337_v46, %v721_v47  ;;  %v1488_v59 = vmul.f32 %v1104_v48, %v1104_v48  ;;  %v350_v47 = vld [vmem:[#allocation3 + $0x928] sm:$0xff] }
 0x233   :  { %v734_v48 = vld [vmem:[#allocation6 + $0x928] sm:$0xff] }
 0x234   :  { %v1859_v5 = vadd.f32 %v1858_v0, %v1475_v58  ;;  %v1106_v58 = vsub.f32 %v338_v51, %v722_v52  ;;  %v1489_v0 = vmul.f32 %v1105_v53, %v1105_v53  ;;  %v351_v52 = vld [vmem:[#allocation3 + $0x930] sm:$0xff] }
 0x235   :  { %v735_v53 = vld [vmem:[#allocation6 + $0x930] sm:$0xff] }
 0x236   :  { %v1860_v10 = vadd.f32 %v1859_v5, %v1476_v63  ;;  %v1107_v63 = vsub.f32 %v339_v56, %v723_v57  ;;  %v1490_v5 = vmul.f32 %v1106_v58, %v1106_v58  ;;  %v352_v57 = vld [vmem:[#allocation3 + $0x938] sm:$0xff] }
 0x237   :  { %v736_v58 = vld [vmem:[#allocation6 + $0x938] sm:$0xff] }
 0x238   :  { %v1861_v15 = vadd.f32 %v1860_v10, %v1477_v4  ;;  %v1108_v4 = vsub.f32 %v340_v61, %v724_v62  ;;  %v1491_v10 = vmul.f32 %v1107_v63, %v1107_v63  ;;  %v353_v62 = vld [vmem:[#allocation3 + $0x940] sm:$0xff] }
 0x239   :  { %v737_v63 = vld [vmem:[#allocation6 + $0x940] sm:$0xff] }
 0x23a   :  { %v1862_v20 = vadd.f32 %v1861_v15, %v1478_v9  ;;  %v1109_v9 = vsub.f32 %v341_v2, %v725_v3  ;;  %v1492_v15 = vmul.f32 %v1108_v4, %v1108_v4  ;;  %v354_v3 = vld [vmem:[#allocation3 + $0x948] sm:$0xff] }
 0x23b   :  { %v738_v4 = vld [vmem:[#allocation6 + $0x948] sm:$0xff] }
 0x23c   :  { %v1863_v25 = vadd.f32 %v1862_v20, %v1479_v14  ;;  %v1110_v14 = vsub.f32 %v342_v7, %v726_v8  ;;  %v1493_v20 = vmul.f32 %v1109_v9, %v1109_v9  ;;  %v355_v8 = vld [vmem:[#allocation3 + $0x950] sm:$0xff] }
 0x23d   :  { %v739_v9 = vld [vmem:[#allocation6 + $0x950] sm:$0xff] }
 0x23e   :  { %v1864_v30 = vadd.f32 %v1863_v25, %v1480_v19  ;;  %v1111_v19 = vsub.f32 %v343_v12, %v727_v13  ;;  %v1494_v25 = vmul.f32 %v1110_v14, %v1110_v14  ;;  %v356_v13 = vld [vmem:[#allocation3 + $0x958] sm:$0xff] }
 0x23f   :  { %v740_v14 = vld [vmem:[#allocation6 + $0x958] sm:$0xff] }
 0x240   :  { %v1865_v35 = vadd.f32 %v1864_v30, %v1481_v24  ;;  %v1112_v24 = vsub.f32 %v344_v17, %v728_v18  ;;  %v1495_v30 = vmul.f32 %v1111_v19, %v1111_v19  ;;  %v357_v18 = vld [vmem:[#allocation3 + $0x960] sm:$0xff] }
 0x241   :  { %v741_v19 = vld [vmem:[#allocation6 + $0x960] sm:$0xff] }
 0x242   :  { %v1866_v40 = vadd.f32 %v1865_v35, %v1482_v29  ;;  %v1113_v29 = vsub.f32 %v345_v22, %v729_v23  ;;  %v1496_v35 = vmul.f32 %v1112_v24, %v1112_v24  ;;  %v358_v23 = vld [vmem:[#allocation3 + $0x968] sm:$0xff] }
 0x243   :  { %v742_v24 = vld [vmem:[#allocation6 + $0x968] sm:$0xff] }
 0x244   :  { %v1867_v45 = vadd.f32 %v1866_v40, %v1483_v34  ;;  %v1114_v34 = vsub.f32 %v346_v27, %v730_v28  ;;  %v1497_v40 = vmul.f32 %v1113_v29, %v1113_v29  ;;  %v359_v28 = vld [vmem:[#allocation3 + $0x970] sm:$0xff] }
 0x245   :  { %v743_v29 = vld [vmem:[#allocation6 + $0x970] sm:$0xff] }
 0x246   :  { %v1868_v50 = vadd.f32 %v1867_v45, %v1484_v39  ;;  %v1115_v39 = vsub.f32 %v347_v32, %v731_v33  ;;  %v1498_v45 = vmul.f32 %v1114_v34, %v1114_v34  ;;  %v360_v33 = vld [vmem:[#allocation3 + $0x978] sm:$0xff] }
 0x247   :  { %v744_v34 = vld [vmem:[#allocation6 + $0x978] sm:$0xff] }
 0x248   :  { %v1869_v55 = vadd.f32 %v1868_v50, %v1485_v44  ;;  %v1116_v44 = vsub.f32 %v348_v37, %v732_v38  ;;  %v1499_v50 = vmul.f32 %v1115_v39, %v1115_v39  ;;  %v361_v38 = vld [vmem:[#allocation3 + $0x980] sm:$0xff] }
 0x249   :  { %v745_v39 = vld [vmem:[#allocation6 + $0x980] sm:$0xff] }
 0x24a   :  { %v1870_v60 = vadd.f32 %v1869_v55, %v1486_v49  ;;  %v1117_v49 = vsub.f32 %v349_v42, %v733_v43  ;;  %v1500_v55 = vmul.f32 %v1116_v44, %v1116_v44  ;;  %v362_v43 = vld [vmem:[#allocation3 + $0x988] sm:$0xff] }
 0x24b   :  { %v746_v44 = vld [vmem:[#allocation6 + $0x988] sm:$0xff] }
 0x24c   :  { %v1871_v1 = vadd.f32 %v1870_v60, %v1487_v54  ;;  %v1118_v54 = vsub.f32 %v350_v47, %v734_v48  ;;  %v1501_v60 = vmul.f32 %v1117_v49, %v1117_v49  ;;  %v363_v48 = vld [vmem:[#allocation3 + $0x990] sm:$0xff] }
 0x24d   :  { %v747_v49 = vld [vmem:[#allocation6 + $0x990] sm:$0xff] }
 0x24e   :  { %v1872_v6 = vadd.f32 %v1871_v1, %v1488_v59  ;;  %v1119_v59 = vsub.f32 %v351_v52, %v735_v53  ;;  %v1502_v1 = vmul.f32 %v1118_v54, %v1118_v54  ;;  %v364_v53 = vld [vmem:[#allocation3 + $0x998] sm:$0xff] }
 0x24f   :  { %v748_v54 = vld [vmem:[#allocation6 + $0x998] sm:$0xff] }
 0x250   :  { %v1873_v11 = vadd.f32 %v1872_v6, %v1489_v0  ;;  %v1120_v0 = vsub.f32 %v352_v57, %v736_v58  ;;  %v1503_v6 = vmul.f32 %v1119_v59, %v1119_v59  ;;  %v365_v58 = vld [vmem:[#allocation3 + $0x9a0] sm:$0xff] }
 0x251   :  { %v749_v59 = vld [vmem:[#allocation6 + $0x9a0] sm:$0xff] }
 0x252   :  { %v1874_v16 = vadd.f32 %v1873_v11, %v1490_v5  ;;  %v1121_v5 = vsub.f32 %v353_v62, %v737_v63  ;;  %v1504_v11 = vmul.f32 %v1120_v0, %v1120_v0  ;;  %v366_v63 = vld [vmem:[#allocation3 + $0x9a8] sm:$0xff] }
 0x253   :  { %v750_v0 = vld [vmem:[#allocation6 + $0x9a8] sm:$0xff] }
 0x254   :  { %v1875_v21 = vadd.f32 %v1874_v16, %v1491_v10  ;;  %v1122_v10 = vsub.f32 %v354_v3, %v738_v4  ;;  %v1505_v16 = vmul.f32 %v1121_v5, %v1121_v5  ;;  %v367_v4 = vld [vmem:[#allocation3 + $0x9b0] sm:$0xff] }
 0x255   :  { %v751_v5 = vld [vmem:[#allocation6 + $0x9b0] sm:$0xff] }
 0x256   :  { %v1876_v26 = vadd.f32 %v1875_v21, %v1492_v15  ;;  %v1123_v15 = vsub.f32 %v355_v8, %v739_v9  ;;  %v1506_v21 = vmul.f32 %v1122_v10, %v1122_v10  ;;  %v368_v9 = vld [vmem:[#allocation3 + $0x9b8] sm:$0xff] }
 0x257   :  { %v752_v10 = vld [vmem:[#allocation6 + $0x9b8] sm:$0xff] }
 0x258   :  { %v1877_v31 = vadd.f32 %v1876_v26, %v1493_v20  ;;  %v1124_v20 = vsub.f32 %v356_v13, %v740_v14  ;;  %v1507_v26 = vmul.f32 %v1123_v15, %v1123_v15  ;;  %v369_v14 = vld [vmem:[#allocation3 + $0x9c0] sm:$0xff] }
 0x259   :  { %v753_v15 = vld [vmem:[#allocation6 + $0x9c0] sm:$0xff] }
 0x25a   :  { %v1878_v36 = vadd.f32 %v1877_v31, %v1494_v25  ;;  %v1125_v25 = vsub.f32 %v357_v18, %v741_v19  ;;  %v1508_v31 = vmul.f32 %v1124_v20, %v1124_v20  ;;  %v370_v19 = vld [vmem:[#allocation3 + $0x9c8] sm:$0xff] }
 0x25b   :  { %v754_v20 = vld [vmem:[#allocation6 + $0x9c8] sm:$0xff] }
 0x25c   :  { %v1879_v41 = vadd.f32 %v1878_v36, %v1495_v30  ;;  %v1126_v30 = vsub.f32 %v358_v23, %v742_v24  ;;  %v1509_v36 = vmul.f32 %v1125_v25, %v1125_v25  ;;  %v371_v24 = vld [vmem:[#allocation3 + $0x9d0] sm:$0xff] }
 0x25d   :  { %v755_v25 = vld [vmem:[#allocation6 + $0x9d0] sm:$0xff] }
 0x25e   :  { %v1880_v46 = vadd.f32 %v1879_v41, %v1496_v35  ;;  %v1127_v35 = vsub.f32 %v359_v28, %v743_v29  ;;  %v1510_v41 = vmul.f32 %v1126_v30, %v1126_v30  ;;  %v372_v29 = vld [vmem:[#allocation3 + $0x9d8] sm:$0xff] }
 0x25f   :  { %v756_v30 = vld [vmem:[#allocation6 + $0x9d8] sm:$0xff] }
 0x260   :  { %v1881_v51 = vadd.f32 %v1880_v46, %v1497_v40  ;;  %v1128_v40 = vsub.f32 %v360_v33, %v744_v34  ;;  %v1511_v46 = vmul.f32 %v1127_v35, %v1127_v35  ;;  %v373_v34 = vld [vmem:[#allocation3 + $0x9e0] sm:$0xff] }
 0x261   :  { %v757_v35 = vld [vmem:[#allocation6 + $0x9e0] sm:$0xff] }
 0x262   :  { %v1882_v56 = vadd.f32 %v1881_v51, %v1498_v45  ;;  %v1129_v45 = vsub.f32 %v361_v38, %v745_v39  ;;  %v1512_v51 = vmul.f32 %v1128_v40, %v1128_v40  ;;  %v374_v39 = vld [vmem:[#allocation3 + $0x9e8] sm:$0xff] }
 0x263   :  { %v758_v40 = vld [vmem:[#allocation6 + $0x9e8] sm:$0xff] }
 0x264   :  { %v1883_v61 = vadd.f32 %v1882_v56, %v1499_v50  ;;  %v1130_v50 = vsub.f32 %v362_v43, %v746_v44  ;;  %v1513_v56 = vmul.f32 %v1129_v45, %v1129_v45  ;;  %v375_v44 = vld [vmem:[#allocation3 + $0x9f0] sm:$0xff] }
 0x265   :  { %v759_v45 = vld [vmem:[#allocation6 + $0x9f0] sm:$0xff] }
 0x266   :  { %v1884_v2 = vadd.f32 %v1883_v61, %v1500_v55  ;;  %v1131_v55 = vsub.f32 %v363_v48, %v747_v49  ;;  %v1514_v61 = vmul.f32 %v1130_v50, %v1130_v50  ;;  %v376_v49 = vld [vmem:[#allocation3 + $0x9f8] sm:$0xff] }
 0x267   :  { %v760_v50 = vld [vmem:[#allocation6 + $0x9f8] sm:$0xff] }
 0x268   :  { %v1885_v7 = vadd.f32 %v1884_v2, %v1501_v60  ;;  %v1132_v60 = vsub.f32 %v364_v53, %v748_v54  ;;  %v1515_v2 = vmul.f32 %v1131_v55, %v1131_v55  ;;  %v377_v54 = vld [vmem:[#allocation3 + $0xa00] sm:$0xff] }
 0x269   :  { %v761_v55 = vld [vmem:[#allocation6 + $0xa00] sm:$0xff] }
 0x26a   :  { %v1886_v12 = vadd.f32 %v1885_v7, %v1502_v1  ;;  %v1133_v1 = vsub.f32 %v365_v58, %v749_v59  ;;  %v1516_v7 = vmul.f32 %v1132_v60, %v1132_v60  ;;  %v378_v59 = vld [vmem:[#allocation3 + $0xa08] sm:$0xff] }
 0x26b   :  { %v762_v60 = vld [vmem:[#allocation6 + $0xa08] sm:$0xff] }
 0x26c   :  { %v1887_v17 = vadd.f32 %v1886_v12, %v1503_v6  ;;  %v1134_v6 = vsub.f32 %v366_v63, %v750_v0  ;;  %v1517_v12 = vmul.f32 %v1133_v1, %v1133_v1  ;;  %v379_v0 = vld [vmem:[#allocation3 + $0xa10] sm:$0xff] }
 0x26d   :  { %v763_v1 = vld [vmem:[#allocation6 + $0xa10] sm:$0xff] }
 0x26e   :  { %v1888_v22 = vadd.f32 %v1887_v17, %v1504_v11  ;;  %v1135_v11 = vsub.f32 %v367_v4, %v751_v5  ;;  %v1518_v17 = vmul.f32 %v1134_v6, %v1134_v6  ;;  %v380_v5 = vld [vmem:[#allocation3 + $0xa18] sm:$0xff] }
 0x26f   :  { %v764_v6 = vld [vmem:[#allocation6 + $0xa18] sm:$0xff] }
 0x270   :  { %v1889_v27 = vadd.f32 %v1888_v22, %v1505_v16  ;;  %v1136_v16 = vsub.f32 %v368_v9, %v752_v10  ;;  %v1519_v22 = vmul.f32 %v1135_v11, %v1135_v11  ;;  %v381_v10 = vld [vmem:[#allocation3 + $0xa20] sm:$0xff] }
 0x271   :  { %v765_v11 = vld [vmem:[#allocation6 + $0xa20] sm:$0xff] }
 0x272   :  { %v1890_v32 = vadd.f32 %v1889_v27, %v1506_v21  ;;  %v1137_v21 = vsub.f32 %v369_v14, %v753_v15  ;;  %v1520_v27 = vmul.f32 %v1136_v16, %v1136_v16  ;;  %v382_v15 = vld [vmem:[#allocation3 + $0xa28] sm:$0xff] }
 0x273   :  { %v766_v16 = vld [vmem:[#allocation6 + $0xa28] sm:$0xff] }
 0x274   :  { %v1891_v37 = vadd.f32 %v1890_v32, %v1507_v26  ;;  %v1138_v26 = vsub.f32 %v370_v19, %v754_v20  ;;  %v1521_v32 = vmul.f32 %v1137_v21, %v1137_v21  ;;  %v383_v20 = vld [vmem:[#allocation3 + $0xa30] sm:$0xff] }
 0x275   :  { %v767_v21 = vld [vmem:[#allocation6 + $0xa30] sm:$0xff] }
 0x276   :  { %v1892_v42 = vadd.f32 %v1891_v37, %v1508_v31  ;;  %v1139_v31 = vsub.f32 %v371_v24, %v755_v25  ;;  %v1522_v37 = vmul.f32 %v1138_v26, %v1138_v26  ;;  %v384_v25 = vld [vmem:[#allocation3 + $0xa38] sm:$0xff] }
 0x277   :  { %v768_v26 = vld [vmem:[#allocation6 + $0xa38] sm:$0xff] }
 0x278   :  { %v1893_v47 = vadd.f32 %v1892_v42, %v1509_v36  ;;  %v1140_v36 = vsub.f32 %v372_v29, %v756_v30  ;;  %v1523_v42 = vmul.f32 %v1139_v31, %v1139_v31  ;;  %v385_v30 = vld [vmem:[#allocation3 + $0xa40] sm:$0xff] }
 0x279   :  { %v769_v31 = vld [vmem:[#allocation6 + $0xa40] sm:$0xff] }
 0x27a   :  { %v1894_v52 = vadd.f32 %v1893_v47, %v1510_v41  ;;  %v1141_v41 = vsub.f32 %v373_v34, %v757_v35  ;;  %v1524_v47 = vmul.f32 %v1140_v36, %v1140_v36  ;;  %v386_v35 = vld [vmem:[#allocation3 + $0xa48] sm:$0xff] }
 0x27b   :  { %v770_v36 = vld [vmem:[#allocation6 + $0xa48] sm:$0xff] }
 0x27c   :  { %v1895_v57 = vadd.f32 %v1894_v52, %v1511_v46  ;;  %v1142_v46 = vsub.f32 %v374_v39, %v758_v40  ;;  %v1525_v52 = vmul.f32 %v1141_v41, %v1141_v41  ;;  %v387_v40 = vld [vmem:[#allocation3 + $0xa50] sm:$0xff] }
 0x27d   :  { %v771_v41 = vld [vmem:[#allocation6 + $0xa50] sm:$0xff] }
 0x27e   :  { %v1896_v62 = vadd.f32 %v1895_v57, %v1512_v51  ;;  %v1143_v51 = vsub.f32 %v375_v44, %v759_v45  ;;  %v1526_v57 = vmul.f32 %v1142_v46, %v1142_v46  ;;  %v388_v45 = vld [vmem:[#allocation3 + $0xa58] sm:$0xff] }
 0x27f   :  { %v772_v46 = vld [vmem:[#allocation6 + $0xa58] sm:$0xff] }
 0x280   :  { %v1897_v3 = vadd.f32 %v1896_v62, %v1513_v56  ;;  %v1144_v56 = vsub.f32 %v376_v49, %v760_v50  ;;  %v1527_v62 = vmul.f32 %v1143_v51, %v1143_v51  ;;  %v389_v50 = vld [vmem:[#allocation3 + $0xa60] sm:$0xff] }
 0x281   :  { %v773_v51 = vld [vmem:[#allocation6 + $0xa60] sm:$0xff] }
 0x282   :  { %v1898_v8 = vadd.f32 %v1897_v3, %v1514_v61  ;;  %v1145_v61 = vsub.f32 %v377_v54, %v761_v55  ;;  %v1528_v3 = vmul.f32 %v1144_v56, %v1144_v56  ;;  %v390_v55 = vld [vmem:[#allocation3 + $0xa68] sm:$0xff] }
 0x283   :  { %v774_v56 = vld [vmem:[#allocation6 + $0xa68] sm:$0xff] }
 0x284   :  { %v1899_v13 = vadd.f32 %v1898_v8, %v1515_v2  ;;  %v1146_v2 = vsub.f32 %v378_v59, %v762_v60  ;;  %v1529_v8 = vmul.f32 %v1145_v61, %v1145_v61  ;;  %v391_v60 = vld [vmem:[#allocation3 + $0xa70] sm:$0xff] }
 0x285   :  { %v775_v61 = vld [vmem:[#allocation6 + $0xa70] sm:$0xff] }
 0x286   :  { %v1900_v18 = vadd.f32 %v1899_v13, %v1516_v7  ;;  %v1147_v7 = vsub.f32 %v379_v0, %v763_v1  ;;  %v1530_v13 = vmul.f32 %v1146_v2, %v1146_v2  ;;  %v392_v1 = vld [vmem:[#allocation3 + $0xa78] sm:$0xff] }
 0x287   :  { %v776_v2 = vld [vmem:[#allocation6 + $0xa78] sm:$0xff] }
 0x288   :  { %v1901_v23 = vadd.f32 %v1900_v18, %v1517_v12  ;;  %v1148_v12 = vsub.f32 %v380_v5, %v764_v6  ;;  %v1531_v18 = vmul.f32 %v1147_v7, %v1147_v7  ;;  %v393_v6 = vld [vmem:[#allocation3 + $0xa80] sm:$0xff] }
 0x289   :  { %v777_v7 = vld [vmem:[#allocation6 + $0xa80] sm:$0xff] }
 0x28a   :  { %v1902_v28 = vadd.f32 %v1901_v23, %v1518_v17  ;;  %v1149_v17 = vsub.f32 %v381_v10, %v765_v11  ;;  %v1532_v23 = vmul.f32 %v1148_v12, %v1148_v12  ;;  %v394_v11 = vld [vmem:[#allocation3 + $0xa88] sm:$0xff] }
 0x28b   :  { %v778_v12 = vld [vmem:[#allocation6 + $0xa88] sm:$0xff] }
 0x28c   :  { %v1903_v33 = vadd.f32 %v1902_v28, %v1519_v22  ;;  %v1150_v22 = vsub.f32 %v382_v15, %v766_v16  ;;  %v1533_v28 = vmul.f32 %v1149_v17, %v1149_v17  ;;  %v395_v16 = vld [vmem:[#allocation3 + $0xa90] sm:$0xff] }
 0x28d   :  { %v779_v17 = vld [vmem:[#allocation6 + $0xa90] sm:$0xff] }
 0x28e   :  { %v1904_v38 = vadd.f32 %v1903_v33, %v1520_v27  ;;  %v1151_v27 = vsub.f32 %v383_v20, %v767_v21  ;;  %v1534_v33 = vmul.f32 %v1150_v22, %v1150_v22  ;;  %v396_v21 = vld [vmem:[#allocation3 + $0xa98] sm:$0xff] }
 0x28f   :  { %v780_v22 = vld [vmem:[#allocation6 + $0xa98] sm:$0xff] }
 0x290   :  { %v1905_v43 = vadd.f32 %v1904_v38, %v1521_v32  ;;  %v1152_v32 = vsub.f32 %v384_v25, %v768_v26  ;;  %v1535_v38 = vmul.f32 %v1151_v27, %v1151_v27  ;;  %v397_v26 = vld [vmem:[#allocation3 + $0xaa0] sm:$0xff] }
 0x291   :  { %v781_v27 = vld [vmem:[#allocation6 + $0xaa0] sm:$0xff] }
 0x292   :  { %v1906_v48 = vadd.f32 %v1905_v43, %v1522_v37  ;;  %v1153_v37 = vsub.f32 %v385_v30, %v769_v31  ;;  %v1536_v43 = vmul.f32 %v1152_v32, %v1152_v32  ;;  %v398_v31 = vld [vmem:[#allocation3 + $0xaa8] sm:$0xff] }
 0x293   :  { %v782_v32 = vld [vmem:[#allocation6 + $0xaa8] sm:$0xff] }
 0x294   :  { %v1907_v53 = vadd.f32 %v1906_v48, %v1523_v42  ;;  %v1154_v42 = vsub.f32 %v386_v35, %v770_v36  ;;  %v1537_v48 = vmul.f32 %v1153_v37, %v1153_v37  ;;  %v399_v36 = vld [vmem:[#allocation3 + $0xab0] sm:$0xff] }
 0x295   :  { %v783_v37 = vld [vmem:[#allocation6 + $0xab0] sm:$0xff] }
 0x296   :  { %v1908_v58 = vadd.f32 %v1907_v53, %v1524_v47  ;;  %v1155_v47 = vsub.f32 %v387_v40, %v771_v41  ;;  %v1538_v53 = vmul.f32 %v1154_v42, %v1154_v42  ;;  %v400_v41 = vld [vmem:[#allocation3 + $0xab8] sm:$0xff] }
 0x297   :  { %v784_v42 = vld [vmem:[#allocation6 + $0xab8] sm:$0xff] }
 0x298   :  { %v1909_v63 = vadd.f32 %v1908_v58, %v1525_v52  ;;  %v1156_v52 = vsub.f32 %v388_v45, %v772_v46  ;;  %v1539_v58 = vmul.f32 %v1155_v47, %v1155_v47  ;;  %v401_v46 = vld [vmem:[#allocation3 + $0xac0] sm:$0xff] }
 0x299   :  { %v785_v47 = vld [vmem:[#allocation6 + $0xac0] sm:$0xff] }
 0x29a   :  { %v1910_v4 = vadd.f32 %v1909_v63, %v1526_v57  ;;  %v1157_v57 = vsub.f32 %v389_v50, %v773_v51  ;;  %v1540_v63 = vmul.f32 %v1156_v52, %v1156_v52  ;;  %v402_v51 = vld [vmem:[#allocation3 + $0xac8] sm:$0xff] }
 0x29b   :  { %v786_v52 = vld [vmem:[#allocation6 + $0xac8] sm:$0xff] }
 0x29c   :  { %v1911_v9 = vadd.f32 %v1910_v4, %v1527_v62  ;;  %v1158_v62 = vsub.f32 %v390_v55, %v774_v56  ;;  %v1541_v4 = vmul.f32 %v1157_v57, %v1157_v57  ;;  %v403_v56 = vld [vmem:[#allocation3 + $0xad0] sm:$0xff] }
 0x29d   :  { %v787_v57 = vld [vmem:[#allocation6 + $0xad0] sm:$0xff] }
 0x29e   :  { %v1912_v14 = vadd.f32 %v1911_v9, %v1528_v3  ;;  %v1159_v3 = vsub.f32 %v391_v60, %v775_v61  ;;  %v1542_v9 = vmul.f32 %v1158_v62, %v1158_v62  ;;  %v404_v61 = vld [vmem:[#allocation3 + $0xad8] sm:$0xff] }
 0x29f   :  { %v788_v62 = vld [vmem:[#allocation6 + $0xad8] sm:$0xff] }
 0x2a0   :  { %v1913_v19 = vadd.f32 %v1912_v14, %v1529_v8  ;;  %v1160_v8 = vsub.f32 %v392_v1, %v776_v2  ;;  %v1543_v14 = vmul.f32 %v1159_v3, %v1159_v3  ;;  %v405_v2 = vld [vmem:[#allocation3 + $0xae0] sm:$0xff] }
 0x2a1   :  { %v789_v3 = vld [vmem:[#allocation6 + $0xae0] sm:$0xff] }
 0x2a2   :  { %v1914_v24 = vadd.f32 %v1913_v19, %v1530_v13  ;;  %v1161_v13 = vsub.f32 %v393_v6, %v777_v7  ;;  %v1544_v19 = vmul.f32 %v1160_v8, %v1160_v8  ;;  %v406_v7 = vld [vmem:[#allocation3 + $0xae8] sm:$0xff] }
 0x2a3   :  { %v790_v8 = vld [vmem:[#allocation6 + $0xae8] sm:$0xff] }
 0x2a4   :  { %v1915_v29 = vadd.f32 %v1914_v24, %v1531_v18  ;;  %v1162_v18 = vsub.f32 %v394_v11, %v778_v12  ;;  %v1545_v24 = vmul.f32 %v1161_v13, %v1161_v13  ;;  %v407_v12 = vld [vmem:[#allocation3 + $0xaf0] sm:$0xff] }
 0x2a5   :  { %v791_v13 = vld [vmem:[#allocation6 + $0xaf0] sm:$0xff] }
 0x2a6   :  { %v1916_v34 = vadd.f32 %v1915_v29, %v1532_v23  ;;  %v1163_v23 = vsub.f32 %v395_v16, %v779_v17  ;;  %v1546_v29 = vmul.f32 %v1162_v18, %v1162_v18  ;;  %v408_v17 = vld [vmem:[#allocation3 + $0xaf8] sm:$0xff] }
 0x2a7   :  { %v792_v18 = vld [vmem:[#allocation6 + $0xaf8] sm:$0xff] }
 0x2a8   :  { %v1917_v39 = vadd.f32 %v1916_v34, %v1533_v28  ;;  %v1164_v28 = vsub.f32 %v396_v21, %v780_v22  ;;  %v1547_v34 = vmul.f32 %v1163_v23, %v1163_v23  ;;  %v409_v22 = vld [vmem:[#allocation3 + $0xb00] sm:$0xff] }
 0x2a9   :  { %v793_v23 = vld [vmem:[#allocation6 + $0xb00] sm:$0xff] }
 0x2aa   :  { %v1918_v44 = vadd.f32 %v1917_v39, %v1534_v33  ;;  %v1165_v33 = vsub.f32 %v397_v26, %v781_v27  ;;  %v1548_v39 = vmul.f32 %v1164_v28, %v1164_v28  ;;  %v410_v27 = vld [vmem:[#allocation3 + $0xb08] sm:$0xff] }
 0x2ab   :  { %v794_v28 = vld [vmem:[#allocation6 + $0xb08] sm:$0xff] }
 0x2ac   :  { %v1919_v49 = vadd.f32 %v1918_v44, %v1535_v38  ;;  %v1166_v38 = vsub.f32 %v398_v31, %v782_v32  ;;  %v1549_v44 = vmul.f32 %v1165_v33, %v1165_v33  ;;  %v411_v32 = vld [vmem:[#allocation3 + $0xb10] sm:$0xff] }
 0x2ad   :  { %v795_v33 = vld [vmem:[#allocation6 + $0xb10] sm:$0xff] }
 0x2ae   :  { %v1920_v54 = vadd.f32 %v1919_v49, %v1536_v43  ;;  %v1167_v43 = vsub.f32 %v399_v36, %v783_v37  ;;  %v1550_v49 = vmul.f32 %v1166_v38, %v1166_v38  ;;  %v412_v37 = vld [vmem:[#allocation3 + $0xb18] sm:$0xff] }
 0x2af   :  { %v796_v38 = vld [vmem:[#allocation6 + $0xb18] sm:$0xff] }
 0x2b0   :  { %v1921_v59 = vadd.f32 %v1920_v54, %v1537_v48  ;;  %v1168_v48 = vsub.f32 %v400_v41, %v784_v42  ;;  %v1551_v54 = vmul.f32 %v1167_v43, %v1167_v43  ;;  %v413_v42 = vld [vmem:[#allocation3 + $0xb20] sm:$0xff] }
 0x2b1   :  { %v797_v43 = vld [vmem:[#allocation6 + $0xb20] sm:$0xff] }
 0x2b2   :  { %v1922_v0 = vadd.f32 %v1921_v59, %v1538_v53  ;;  %v1169_v53 = vsub.f32 %v401_v46, %v785_v47  ;;  %v1552_v59 = vmul.f32 %v1168_v48, %v1168_v48  ;;  %v414_v47 = vld [vmem:[#allocation3 + $0xb28] sm:$0xff] }
 0x2b3   :  { %v798_v48 = vld [vmem:[#allocation6 + $0xb28] sm:$0xff] }
 0x2b4   :  { %v1923_v5 = vadd.f32 %v1922_v0, %v1539_v58  ;;  %v1170_v58 = vsub.f32 %v402_v51, %v786_v52  ;;  %v1553_v0 = vmul.f32 %v1169_v53, %v1169_v53  ;;  %v415_v52 = vld [vmem:[#allocation3 + $0xb30] sm:$0xff] }
 0x2b5   :  { %v799_v53 = vld [vmem:[#allocation6 + $0xb30] sm:$0xff] }
 0x2b6   :  { %v1924_v10 = vadd.f32 %v1923_v5, %v1540_v63  ;;  %v1171_v63 = vsub.f32 %v403_v56, %v787_v57  ;;  %v1554_v5 = vmul.f32 %v1170_v58, %v1170_v58  ;;  %v416_v57 = vld [vmem:[#allocation3 + $0xb38] sm:$0xff] }
 0x2b7   :  { %v800_v58 = vld [vmem:[#allocation6 + $0xb38] sm:$0xff] }
 0x2b8   :  { %v1925_v15 = vadd.f32 %v1924_v10, %v1541_v4  ;;  %v1172_v4 = vsub.f32 %v404_v61, %v788_v62  ;;  %v1555_v10 = vmul.f32 %v1171_v63, %v1171_v63  ;;  %v417_v62 = vld [vmem:[#allocation3 + $0xb40] sm:$0xff] }
 0x2b9   :  { %v801_v63 = vld [vmem:[#allocation6 + $0xb40] sm:$0xff] }
 0x2ba   :  { %v1926_v20 = vadd.f32 %v1925_v15, %v1542_v9  ;;  %v1173_v9 = vsub.f32 %v405_v2, %v789_v3  ;;  %v1556_v15 = vmul.f32 %v1172_v4, %v1172_v4  ;;  %v418_v3 = vld [vmem:[#allocation3 + $0xb48] sm:$0xff] }
 0x2bb   :  { %v802_v4 = vld [vmem:[#allocation6 + $0xb48] sm:$0xff] }
 0x2bc   :  { %v1927_v25 = vadd.f32 %v1926_v20, %v1543_v14  ;;  %v1174_v14 = vsub.f32 %v406_v7, %v790_v8  ;;  %v1557_v20 = vmul.f32 %v1173_v9, %v1173_v9  ;;  %v419_v8 = vld [vmem:[#allocation3 + $0xb50] sm:$0xff] }
 0x2bd   :  { %v803_v9 = vld [vmem:[#allocation6 + $0xb50] sm:$0xff] }
 0x2be   :  { %v1928_v30 = vadd.f32 %v1927_v25, %v1544_v19  ;;  %v1175_v19 = vsub.f32 %v407_v12, %v791_v13  ;;  %v1558_v25 = vmul.f32 %v1174_v14, %v1174_v14  ;;  %v420_v13 = vld [vmem:[#allocation3 + $0xb58] sm:$0xff] }
 0x2bf   :  { %v804_v14 = vld [vmem:[#allocation6 + $0xb58] sm:$0xff] }
 0x2c0   :  { %v1929_v35 = vadd.f32 %v1928_v30, %v1545_v24  ;;  %v1176_v24 = vsub.f32 %v408_v17, %v792_v18  ;;  %v1559_v30 = vmul.f32 %v1175_v19, %v1175_v19  ;;  %v421_v18 = vld [vmem:[#allocation3 + $0xb60] sm:$0xff] }
 0x2c1   :  { %v805_v19 = vld [vmem:[#allocation6 + $0xb60] sm:$0xff] }
 0x2c2   :  { %v1930_v40 = vadd.f32 %v1929_v35, %v1546_v29  ;;  %v1177_v29 = vsub.f32 %v409_v22, %v793_v23  ;;  %v1560_v35 = vmul.f32 %v1176_v24, %v1176_v24  ;;  %v422_v23 = vld [vmem:[#allocation3 + $0xb68] sm:$0xff] }
 0x2c3   :  { %v806_v24 = vld [vmem:[#allocation6 + $0xb68] sm:$0xff] }
 0x2c4   :  { %v1931_v45 = vadd.f32 %v1930_v40, %v1547_v34  ;;  %v1178_v34 = vsub.f32 %v410_v27, %v794_v28  ;;  %v1561_v40 = vmul.f32 %v1177_v29, %v1177_v29  ;;  %v423_v28 = vld [vmem:[#allocation3 + $0xb70] sm:$0xff] }
 0x2c5   :  { %v807_v29 = vld [vmem:[#allocation6 + $0xb70] sm:$0xff] }
 0x2c6   :  { %v1932_v50 = vadd.f32 %v1931_v45, %v1548_v39  ;;  %v1179_v39 = vsub.f32 %v411_v32, %v795_v33  ;;  %v1562_v45 = vmul.f32 %v1178_v34, %v1178_v34  ;;  %v424_v33 = vld [vmem:[#allocation3 + $0xb78] sm:$0xff] }
 0x2c7   :  { %v808_v34 = vld [vmem:[#allocation6 + $0xb78] sm:$0xff] }
 0x2c8   :  { %v1933_v55 = vadd.f32 %v1932_v50, %v1549_v44  ;;  %v1180_v44 = vsub.f32 %v412_v37, %v796_v38  ;;  %v1563_v50 = vmul.f32 %v1179_v39, %v1179_v39  ;;  %v425_v38 = vld [vmem:[#allocation3 + $0xb80] sm:$0xff] }
 0x2c9   :  { %v809_v39 = vld [vmem:[#allocation6 + $0xb80] sm:$0xff] }
 0x2ca   :  { %v1934_v60 = vadd.f32 %v1933_v55, %v1550_v49  ;;  %v1181_v49 = vsub.f32 %v413_v42, %v797_v43  ;;  %v1564_v55 = vmul.f32 %v1180_v44, %v1180_v44  ;;  %v426_v43 = vld [vmem:[#allocation3 + $0xb88] sm:$0xff] }
 0x2cb   :  { %v810_v44 = vld [vmem:[#allocation6 + $0xb88] sm:$0xff] }
 0x2cc   :  { %v1935_v1 = vadd.f32 %v1934_v60, %v1551_v54  ;;  %v1182_v54 = vsub.f32 %v414_v47, %v798_v48  ;;  %v1565_v60 = vmul.f32 %v1181_v49, %v1181_v49  ;;  %v427_v48 = vld [vmem:[#allocation3 + $0xb90] sm:$0xff] }
 0x2cd   :  { %v811_v49 = vld [vmem:[#allocation6 + $0xb90] sm:$0xff] }
 0x2ce   :  { %v1936_v6 = vadd.f32 %v1935_v1, %v1552_v59  ;;  %v1183_v59 = vsub.f32 %v415_v52, %v799_v53  ;;  %v1566_v1 = vmul.f32 %v1182_v54, %v1182_v54  ;;  %v428_v53 = vld [vmem:[#allocation3 + $0xb98] sm:$0xff] }
 0x2cf   :  { %v812_v54 = vld [vmem:[#allocation6 + $0xb98] sm:$0xff] }
 0x2d0   :  { %v1937_v11 = vadd.f32 %v1936_v6, %v1553_v0  ;;  %v1184_v0 = vsub.f32 %v416_v57, %v800_v58  ;;  %v1567_v6 = vmul.f32 %v1183_v59, %v1183_v59  ;;  %v429_v58 = vld [vmem:[#allocation3 + $0xba0] sm:$0xff] }
 0x2d1   :  { %v813_v59 = vld [vmem:[#allocation6 + $0xba0] sm:$0xff] }
 0x2d2   :  { %v1938_v16 = vadd.f32 %v1937_v11, %v1554_v5  ;;  %v1185_v5 = vsub.f32 %v417_v62, %v801_v63  ;;  %v1568_v11 = vmul.f32 %v1184_v0, %v1184_v0  ;;  %v430_v63 = vld [vmem:[#allocation3 + $0xba8] sm:$0xff] }
 0x2d3   :  { %v814_v0 = vld [vmem:[#allocation6 + $0xba8] sm:$0xff] }
 0x2d4   :  { %v1939_v21 = vadd.f32 %v1938_v16, %v1555_v10  ;;  %v1186_v10 = vsub.f32 %v418_v3, %v802_v4  ;;  %v1569_v16 = vmul.f32 %v1185_v5, %v1185_v5  ;;  %v431_v4 = vld [vmem:[#allocation3 + $0xbb0] sm:$0xff] }
 0x2d5   :  { %v815_v5 = vld [vmem:[#allocation6 + $0xbb0] sm:$0xff] }
 0x2d6   :  { %v1940_v26 = vadd.f32 %v1939_v21, %v1556_v15  ;;  %v1187_v15 = vsub.f32 %v419_v8, %v803_v9  ;;  %v1570_v21 = vmul.f32 %v1186_v10, %v1186_v10  ;;  %v432_v9 = vld [vmem:[#allocation3 + $0xbb8] sm:$0xff] }
 0x2d7   :  { %v816_v10 = vld [vmem:[#allocation6 + $0xbb8] sm:$0xff] }
 0x2d8   :  { %v1941_v31 = vadd.f32 %v1940_v26, %v1557_v20  ;;  %v1188_v20 = vsub.f32 %v420_v13, %v804_v14  ;;  %v1571_v26 = vmul.f32 %v1187_v15, %v1187_v15  ;;  %v433_v14 = vld [vmem:[#allocation3 + $0xbc0] sm:$0xff] }
 0x2d9   :  { %v817_v15 = vld [vmem:[#allocation6 + $0xbc0] sm:$0xff] }
 0x2da   :  { %v1942_v36 = vadd.f32 %v1941_v31, %v1558_v25  ;;  %v1189_v25 = vsub.f32 %v421_v18, %v805_v19  ;;  %v1572_v31 = vmul.f32 %v1188_v20, %v1188_v20  ;;  %v434_v19 = vld [vmem:[#allocation3 + $0xbc8] sm:$0xff] }
 0x2db   :  { %v818_v20 = vld [vmem:[#allocation6 + $0xbc8] sm:$0xff] }
 0x2dc   :  { %v1943_v41 = vadd.f32 %v1942_v36, %v1559_v30  ;;  %v1190_v30 = vsub.f32 %v422_v23, %v806_v24  ;;  %v1573_v36 = vmul.f32 %v1189_v25, %v1189_v25  ;;  %v435_v24 = vld [vmem:[#allocation3 + $0xbd0] sm:$0xff] }
 0x2dd   :  { %v819_v25 = vld [vmem:[#allocation6 + $0xbd0] sm:$0xff] }
 0x2de   :  { %v1944_v46 = vadd.f32 %v1943_v41, %v1560_v35  ;;  %v1191_v35 = vsub.f32 %v423_v28, %v807_v29  ;;  %v1574_v41 = vmul.f32 %v1190_v30, %v1190_v30  ;;  %v436_v29 = vld [vmem:[#allocation3 + $0xbd8] sm:$0xff] }
 0x2df   :  { %v820_v30 = vld [vmem:[#allocation6 + $0xbd8] sm:$0xff] }
 0x2e0   :  { %v1945_v51 = vadd.f32 %v1944_v46, %v1561_v40  ;;  %v1192_v40 = vsub.f32 %v424_v33, %v808_v34  ;;  %v1575_v46 = vmul.f32 %v1191_v35, %v1191_v35  ;;  %v437_v34 = vld [vmem:[#allocation3 + $0xbe0] sm:$0xff] }
 0x2e1   :  { %v821_v35 = vld [vmem:[#allocation6 + $0xbe0] sm:$0xff] }
 0x2e2   :  { %v1946_v56 = vadd.f32 %v1945_v51, %v1562_v45  ;;  %v1193_v45 = vsub.f32 %v425_v38, %v809_v39  ;;  %v1576_v51 = vmul.f32 %v1192_v40, %v1192_v40  ;;  %v438_v39 = vld [vmem:[#allocation3 + $0xbe8] sm:$0xff] }
 0x2e3   :  { %v822_v40 = vld [vmem:[#allocation6 + $0xbe8] sm:$0xff] }
 0x2e4   :  { %v1947_v61 = vadd.f32 %v1946_v56, %v1563_v50  ;;  %v1194_v50 = vsub.f32 %v426_v43, %v810_v44  ;;  %v1577_v56 = vmul.f32 %v1193_v45, %v1193_v45  ;;  %v439_v44 = vld [vmem:[#allocation3 + $0xbf0] sm:$0xff] }
 0x2e5   :  { %v823_v45 = vld [vmem:[#allocation6 + $0xbf0] sm:$0xff] }
 0x2e6   :  { %v1948_v2 = vadd.f32 %v1947_v61, %v1564_v55  ;;  %v1195_v55 = vsub.f32 %v427_v48, %v811_v49  ;;  %v1578_v61 = vmul.f32 %v1194_v50, %v1194_v50  ;;  %v440_v49 = vld [vmem:[#allocation3 + $0xbf8] sm:$0xff] }
 0x2e7   :  { %v824_v50 = vld [vmem:[#allocation6 + $0xbf8] sm:$0xff] }
 0x2e8   :  { %v1949_v7 = vadd.f32 %v1948_v2, %v1565_v60  ;;  %v1196_v60 = vsub.f32 %v428_v53, %v812_v54  ;;  %v1579_v2 = vmul.f32 %v1195_v55, %v1195_v55  ;;  %v1208_v54 = vsub.f32 %v440_v49, %v824_v50 }
 0x2ea   :  { %v1950_v12 = vadd.f32 %v1949_v7, %v1566_v1  ;;  %v1197_v1 = vsub.f32 %v429_v58, %v813_v59  ;;  %v1580_v7 = vmul.f32 %v1196_v60, %v1196_v60  ;;  %v1592_v59 = vmul.f32 %v1208_v54, %v1208_v54 }
 0x2ec   :  { %v1951_v17 = vadd.f32 %v1950_v12, %v1567_v6  ;;  %v1198_v6 = vsub.f32 %v430_v63, %v814_v0  ;;  %v1581_v12 = vmul.f32 %v1197_v1, %v1197_v1 }
 0x2ee   :  { %v1952_v22 = vadd.f32 %v1951_v17, %v1568_v11  ;;  %v1199_v11 = vsub.f32 %v431_v4, %v815_v5  ;;  %v1582_v17 = vmul.f32 %v1198_v6, %v1198_v6 }
 0x2f0   :  { %v1953_v27 = vadd.f32 %v1952_v22, %v1569_v16  ;;  %v1200_v16 = vsub.f32 %v432_v9, %v816_v10  ;;  %v1583_v22 = vmul.f32 %v1199_v11, %v1199_v11 }
 0x2f2   :  { %v1954_v32 = vadd.f32 %v1953_v27, %v1570_v21  ;;  %v1201_v21 = vsub.f32 %v433_v14, %v817_v15  ;;  %v1584_v27 = vmul.f32 %v1200_v16, %v1200_v16 }
 0x2f4   :  { %v1955_v37 = vadd.f32 %v1954_v32, %v1571_v26  ;;  %v1202_v26 = vsub.f32 %v434_v19, %v818_v20  ;;  %v1585_v32 = vmul.f32 %v1201_v21, %v1201_v21 }
 0x2f6   :  { %v1956_v42 = vadd.f32 %v1955_v37, %v1572_v31  ;;  %v1203_v31 = vsub.f32 %v435_v24, %v819_v25  ;;  %v1586_v37 = vmul.f32 %v1202_v26, %v1202_v26 }
 0x2f8   :  { %v1957_v47 = vadd.f32 %v1956_v42, %v1573_v36  ;;  %v1204_v36 = vsub.f32 %v436_v29, %v820_v30  ;;  %v1587_v42 = vmul.f32 %v1203_v31, %v1203_v31 }
 0x2fa   :  { %v1958_v52 = vadd.f32 %v1957_v47, %v1574_v41  ;;  %v1205_v41 = vsub.f32 %v437_v34, %v821_v35  ;;  %v1588_v47 = vmul.f32 %v1204_v36, %v1204_v36 }
 0x2fc   :  { %v1959_v57 = vadd.f32 %v1958_v52, %v1575_v46  ;;  %v1206_v46 = vsub.f32 %v438_v39, %v822_v40  ;;  %v1589_v52 = vmul.f32 %v1205_v41, %v1205_v41 }
 0x2fe   :  { %v1960_v62 = vadd.f32 %v1959_v57, %v1576_v51  ;;  %v1207_v51 = vsub.f32 %v439_v44, %v823_v45  ;;  %v1590_v55 = vmul.f32 %v1206_v46, %v1206_v46 }
 0x300   :  { %v1961_v3 = vadd.f32 %v1960_v62, %v1577_v56  ;;  %v1591_v57 = vmul.f32 %v1207_v51, %v1207_v51 }
 0x302   :  { %v1962_v8 = vadd.f32 %v1961_v3, %v1578_v61 }
 0x304   :  { %v1963_v13 = vadd.f32 %v1962_v8, %v1579_v2 }
 0x306   :  { %v1964_v18 = vadd.f32 %v1963_v13, %v1580_v7 }
 0x308   :  { %v1965_v23 = vadd.f32 %v1964_v18, %v1581_v12 }
 0x30a   :  { %v1966_v28 = vadd.f32 %v1965_v23, %v1582_v17 }
 0x30c   :  { %v1967_v33 = vadd.f32 %v1966_v28, %v1583_v22 }
 0x30e   :  { %v1968_v38 = vadd.f32 %v1967_v33, %v1584_v27 }
 0x310   :  { %v1969_v43 = vadd.f32 %v1968_v38, %v1585_v32 }
 0x312   :  { %v1970_v48 = vadd.f32 %v1969_v43, %v1586_v37 }
 0x314   :  { %v1971_v53 = vadd.f32 %v1970_v48, %v1587_v42 }
 0x316   :  { %v1972_v56 = vadd.f32 %v1971_v53, %v1588_v47 }
 0x318   :  { %v1973_v58 = vadd.f32 %v1972_v56, %v1589_v52 }
 0x31a   :  { %v1974_v60 = vadd.f32 %v1973_v58, %v1590_v55 }
 0x31c   :  { %v1975_v61 = vadd.f32 %v1974_v60, %v1591_v57 }
 0x31e   :  { %v1976_v62 = vadd.f32 %v1975_v61, %v1592_v59 }
 0x320   :  { %1983 = vst [vmem:[#allocation8] sm:$0xff] %v1976_v62 }
 0x321   :  { %2056 = shalt.err (!%p2053_p0)
}
 0x322   :  { %1993 = dma.vmem_to_hbm [thread:$0]  %s1991_s1, 128, %s2102_s2, [#allocation5]  }
 0x323   :  { %2069 = dma.done.wait [#allocation5], 128  }
 0x324   :  { %2070 = vsyncadd [#allocation5], 4294967168 }
 0x325   :  { %1997 = vsyncpa [#allocation4], 1 }
 0x326   :  { %1998 = vsyncpa [#allocation7], 1 }
 0x327   :  { %1999 = vsyncpa [#allocation5], 1 }

</bundles_post_ra>
